<compile_context>
chip_gen: v5e
topology: v5e:2x2
jax: 0.10.0
libtpu: 0.0.40
codegen_flags: <defaults>
</compile_context>

<pallas_src>
import jax
import jax.numpy as jnp
from jax import lax
from jax.experimental import pallas as pl
from jax.experimental.pallas import tpu as pltpu


def _decoder_kernel(x_ref, h0_ref, c0_ref,
                    wih_ref, whh_ref, b_ref,
                    wlin_ref, blin_ref,
                    y_ref, hout_ref, cout_ref,
                    xg_s, out_s, h_s, c_s):
    """x:(T,Bp,Din)  h0/c0:(Bp,H)  wih:(Din,4H) whh:(H,4H) b:(1,4H)
       wlin:(H,Kpad) blin:(1,Kpad)  ->  y:(T*Bp,Kpad), h_n:(Bp,H), c_n:(Bp,H)"""
    T, Bp, Din = x_ref.shape
    H = whh_ref.shape[0]

    # ---- Hoisted input projection: one MXU pass for the whole sequence. ----
    x2d = x_ref[...].reshape(T * Bp, Din)            # leading-dim flatten: layout-free
    xg_s[...] = (jnp.dot(x2d, wih_ref[...], preferred_element_type=jnp.float32)
                 + b_ref[...])                       # bias folded in, broadcast once

    h_s[...] = h0_ref[...]
    c_s[...] = c0_ref[...]

    # ---- Sequential LSTM recurrence: only h @ W_hh + elementwise per step. ----
    def step(t, carry):
        r0 = pl.multiple_of(t * Bp, Bp)              # tile-aligned sublane offset
        gates = xg_s[pl.ds(r0, Bp), :] + jnp.dot(
            h_s[...], whh_ref[...], preferred_element_type=jnp.float32)
        i_g = jax.nn.sigmoid(gates[:, 0 * H:1 * H])
        f_g = jax.nn.sigmoid(gates[:, 1 * H:2 * H])
        g_g = jnp.tanh(gates[:, 2 * H:3 * H])
        o_g = jax.nn.sigmoid(gates[:, 3 * H:4 * H])
        c_new = f_g * c_s[...] + i_g * g_g
        h_new = o_g * jnp.tanh(c_new)
        c_s[...] = c_new
        h_s[...] = h_new
        out_s[pl.ds(r0, Bp), :] = h_new              # 2-D time-major scratch (no reshape later)
        return carry

    lax.fori_loop(0, T, step, 0, unroll=8)

    # ---- Linear + softmax over all T*Bp rows, lane-dense Kpad output. ----
    logits = (jnp.dot(out_s[...], wlin_ref[...], preferred_element_type=jnp.float32)
              + blin_ref[...])                       # padded lanes carry -1e30 bias
    m = jnp.max(logits, axis=-1, keepdims=True)
    e = jnp.exp(logits - m)
    denom = jnp.sum(e, axis=-1, keepdims=True)
    y_ref[...] = e * pl.reciprocal(denom, approx=True)

    hout_ref[...] = h_s[...]
    cout_ref[...] = c_s[...]


def decoder_forward(params, x, h, c):
    """x: (B, T, Din) float32 (batch_first LSTM), h/c: (1, B, H) float32."""
    B, T, Din = x.shape
    H = params["whh"].shape[0]
    K = params["wlin"].shape[1]

    Bp = ((B + 7) // 8) * 8                          # pad batch to full f32 sublanes
    Kpad = ((K + 127) // 128) * 128                  # lane-dense classifier output

    x_tm = jnp.transpose(x, (1, 0, 2))               # (T, B, Din) time-major
    h0 = h.reshape(B, H)
    c0 = c.reshape(B, H)
    if Bp != B:
        x_tm = jnp.pad(x_tm, ((0, 0), (0, Bp - B), (0, 0)))
        h0 = jnp.pad(h0, ((0, Bp - B), (0, 0)))
        c0 = jnp.pad(c0, ((0, Bp - B), (0, 0)))

    # Lane-pad the classifier: zero weight columns, -1e30 bias => softmax mass 0.
    wlin_p = jnp.pad(params["wlin"], ((0, 0), (0, Kpad - K)))
    blin_p = jnp.pad(params["blin"], ((0, 0), (0, Kpad - K)),
                     constant_values=-1e30)

    vmem = pl.BlockSpec(memory_space=pltpu.MemorySpace.VMEM)

    y, h_n, c_n = pl.pallas_call(
        _decoder_kernel,
        out_shape=(jax.ShapeDtypeStruct((T * Bp, Kpad), jnp.float32),
                   jax.ShapeDtypeStruct((Bp, H), jnp.float32),
                   jax.ShapeDtypeStruct((Bp, H), jnp.float32)),
        in_specs=[vmem] * 8,
        out_specs=(vmem, vmem, vmem),
        scratch_shapes=[pltpu.VMEM((T * Bp, 4 * H), jnp.float32),  # hoisted x@Wih + b
                        pltpu.VMEM((T * Bp, H), jnp.float32),      # per-step hidden
                        pltpu.VMEM((Bp, H), jnp.float32),          # h state
                        pltpu.VMEM((Bp, H), jnp.float32)],         # c state
        compiler_params=pltpu.CompilerParams(
            vmem_limit_bytes=32 * 1024 * 1024),      # safe on v5e/v6e/v7x
    )(x_tm, h0, c0,
      params["wih"], params["whh"], params["b"], wlin_p, blin_p)

    y = y.reshape(T, Bp, Kpad)[:, :B, :K]            # drop batch / lane padding
    y = jnp.transpose(y, (1, 0, 2))                  # (B, T, K)
    # Replicate torch's x.squeeze() before the linear (shape-only effect).
    squeeze_axes = tuple(ax for ax, s in enumerate((B, T)) if s == 1)
    if squeeze_axes:
        y = jnp.squeeze(y, axis=squeeze_axes)
    h_n = h_n[:B].reshape(1, B, H)
    c_n = c_n[:B].reshape(1, B, H)
    return y, (h_n, c_n)


def init_params(key, in_features, hidden, out_features=11):
    """Deterministic init mimicking torch's U(-1/sqrt(H), 1/sqrt(H))."""
    k1, k2, k3, k4, k5, k6 = jax.random.split(key, 6)
    s = float(1.0 / (hidden ** 0.5))
    wih = jax.random.uniform(k1, (4 * hidden, in_features), jnp.float32, -s, s)
    whh = jax.random.uniform(k2, (4 * hidden, hidden), jnp.float32, -s, s)
    bih = jax.random.uniform(k3, (4 * hidden,), jnp.float32, -s, s)
    bhh = jax.random.uniform(k4, (4 * hidden,), jnp.float32, -s, s)
    wl = jax.random.uniform(k5, (out_features, hidden), jnp.float32, -s, s)
    bl = jax.random.uniform(k6, (out_features,), jnp.float32, -s, s)
    return {
        "wih": jnp.transpose(wih),                       # (Din, 4H)
        "whh": jnp.transpose(whh),                       # (H, 4H)
        "b": (bih + bhh).reshape(1, 4 * hidden),         # (1, 4H)
        "wlin": jnp.transpose(wl),                       # (H, K)
        "blin": bl.reshape(1, out_features),             # (1, K)
    }


def reference(params, x, h, c):
    """Pure-JAX reference of the PyTorch forward (for correctness check)."""
    B, T, _ = x.shape
    H = params["whh"].shape[0]
    h_t, c_t = h[0], c[0]
    outs = []
    for t in range(T):
        gates = x[:, t] @ params["wih"] + h_t @ params["whh"] + params["b"]
        i = jax.nn.sigmoid(gates[:, :H])
        f = jax.nn.sigmoid(gates[:, H:2 * H])
        g = jnp.tanh(gates[:, 2 * H:3 * H])
        o = jax.nn.sigmoid(gates[:, 3 * H:])
        c_t = f * c_t + i * g
        h_t = o * jnp.tanh(c_t)
        outs.append(h_t)
    seq = jnp.stack(outs, axis=1)                        # (B, T, H)
    logits = seq @ params["wlin"] + params["blin"].reshape(1, 1, -1)
    y = jax.nn.softmax(logits, axis=-1)
    squeeze_axes = tuple(ax for ax, s in enumerate((B, T)) if s == 1)
    if squeeze_axes:
        y = jnp.squeeze(y, axis=squeeze_axes)
    return y, (h_t[None], c_t[None])


if __name__ == "__main__":
    # Module defaults: in_features=128, hidden_size=128, out_features=11.
    B, T, IN_F, HID, K = 2, 8, 128, 128, 11
    key = jax.random.PRNGKey(0)
    kp, kx, kh, kc = jax.random.split(key, 4)

    params = init_params(kp, IN_F, HID, K)
    x = jax.random.normal(kx, (B, T, IN_F), jnp.float32)
    h0 = jax.random.normal(kh, (1, B, HID), jnp.float32)
    c0 = jax.random.normal(kc, (1, B, HID), jnp.float32)

    y, (h_n, c_n) = decoder_forward(params, x, h0, c0)
    jax.block_until_ready((y, h_n, c_n))

    y_ref, (h_ref, c_ref) = reference(params, x, h0, c0)
    assert y.shape == y_ref.shape and h_n.shape == (1, B, HID)
    # y uses pl.reciprocal(approx=True) in the softmax -> slightly looser tol.
    assert jnp.allclose(y, y_ref, atol=2e-3, rtol=2e-3)
    assert jnp.allclose(h_n, h_ref, atol=1e-4, rtol=1e-4)
    assert jnp.allclose(c_n, c_ref, atol=1e-4, rtol=1e-4)

    print("KERNEL_OK")
</pallas_src>

<mosaic_0001>
module attributes {stable_mosaic.version = 11 : i64} {
  func.func @_decoder_kernel(%arg0: memref<8x8x128xf32, #tpu.memory_space<vmem>>, %arg1: memref<8x128xf32, #tpu.memory_space<vmem>>, %arg2: memref<8x128xf32, #tpu.memory_space<vmem>>, %arg3: memref<128x512xf32, #tpu.memory_space<vmem>>, %arg4: memref<128x512xf32, #tpu.memory_space<vmem>>, %arg5: memref<1x512xf32, #tpu.memory_space<vmem>>, %arg6: memref<128x128xf32, #tpu.memory_space<vmem>>, %arg7: memref<1x128xf32, #tpu.memory_space<vmem>>, %arg8: memref<64x128xf32, #tpu.memory_space<vmem>>, %arg9: memref<8x128xf32, #tpu.memory_space<vmem>>, %arg10: memref<8x128xf32, #tpu.memory_space<vmem>>, %arg11: memref<64x512xf32, #tpu.memory_space<vmem>>, %arg12: memref<64x128xf32, #tpu.memory_space<vmem>>, %arg13: memref<8x128xf32, #tpu.memory_space<vmem>>, %arg14: memref<8x128xf32, #tpu.memory_space<vmem>>) attributes {dimension_semantics = [], scalar_prefetch = 0 : i64, scratch_operands = 4 : i64, tpu.core_type = #tpu.core_type<tc>} {
    %c0 = arith.constant 0 : index
    %c0_0 = arith.constant 0 : index
    %c0_1 = arith.constant 0 : index
    %0 = vector.load %arg0[%c0, %c0_0, %c0_1] : memref<8x8x128xf32, #tpu.memory_space<vmem>>, vector<8x8x128xf32>
    %1 = vector.shape_cast %0 : vector<8x8x128xf32> to vector<64x128xf32>
    %c0_2 = arith.constant 0 : index
    %c0_3 = arith.constant 0 : index
    %2 = vector.load %arg3[%c0_2, %c0_3] : memref<128x512xf32, #tpu.memory_space<vmem>>, vector<128x512xf32>
    %cst = arith.constant dense<0.000000e+00> : vector<64x512xf32>
    %3 = tpu.matmul %1, %2, %cst {dimension_numbers = #tpu.dot_dimension_numbers<[1], [0], [0], [1], [0, 0, 1, 1], [], []>} : vector<64x128xf32>, vector<128x512xf32>, vector<64x512xf32> -> vector<64x512xf32>
    %c0_4 = arith.constant 0 : index
    %c0_5 = arith.constant 0 : index
    %4 = vector.load %arg5[%c0_4, %c0_5] : memref<1x512xf32, #tpu.memory_space<vmem>>, vector<1x512xf32>
    %5 = vector.broadcast %4 : vector<1x512xf32> to vector<64x512xf32>
    %6 = arith.addf %3, %5 : vector<64x512xf32>
    %c0_6 = arith.constant 0 : index
    %c0_7 = arith.constant 0 : index
    %7 = vector.load %arg11[%c0_6, %c0_7] : memref<64x512xf32, #tpu.memory_space<vmem>>, vector<64x512xf32>
    tpu.vector_store %arg11[%c0_6, %c0_7], %6 {strides = array<i32>} : memref<64x512xf32, #tpu.memory_space<vmem>>, vector<64x512xf32>,
    %c0_8 = arith.constant 0 : index
    %c0_9 = arith.constant 0 : index
    %8 = vector.load %arg1[%c0_8, %c0_9] : memref<8x128xf32, #tpu.memory_space<vmem>>, vector<8x128xf32>
    %c0_10 = arith.constant 0 : index
    %c0_11 = arith.constant 0 : index
    %9 = vector.load %arg13[%c0_10, %c0_11] : memref<8x128xf32, #tpu.memory_space<vmem>>, vector<8x128xf32>
    tpu.vector_store %arg13[%c0_10, %c0_11], %8 {strides = array<i32>} : memref<8x128xf32, #tpu.memory_space<vmem>>, vector<8x128xf32>,
    %c0_12 = arith.constant 0 : index
    %c0_13 = arith.constant 0 : index
    %10 = vector.load %arg2[%c0_12, %c0_13] : memref<8x128xf32, #tpu.memory_space<vmem>>, vector<8x128xf32>
    %c0_14 = arith.constant 0 : index
    %c0_15 = arith.constant 0 : index
    %11 = vector.load %arg14[%c0_14, %c0_15] : memref<8x128xf32, #tpu.memory_space<vmem>>, vector<8x128xf32>
    tpu.vector_store %arg14[%c0_14, %c0_15], %10 {strides = array<i32>} : memref<8x128xf32, #tpu.memory_space<vmem>>, vector<8x128xf32>,
    %c0_i32 = arith.constant 0 : i32
    %c8_i32 = arith.constant 8 : i32
    %12 = arith.muli %c0_i32, %c8_i32 : i32
    %13 = tpu.assume_multiple %12, 8 : i32
    %14 = arith.index_cast %13 : i32 to index
    %c0_16 = arith.constant 0 : index
    %15 = vector.load %arg11[%14, %c0_16] : memref<64x512xf32, #tpu.memory_space<vmem>>, vector<8x512xf32>
    %c0_17 = arith.constant 0 : index
    %c0_18 = arith.constant 0 : index
    %16 = vector.load %arg13[%c0_17, %c0_18] : memref<8x128xf32, #tpu.memory_space<vmem>>, vector<8x128xf32>
    %c0_19 = arith.constant 0 : index
    %c0_20 = arith.constant 0 : index
    %17 = vector.load %arg4[%c0_19, %c0_20] : memref<128x512xf32, #tpu.memory_space<vmem>>, vector<128x512xf32>
    %cst_21 = arith.constant dense<0.000000e+00> : vector<8x512xf32>
    %18 = tpu.matmul %16, %17, %cst_21 {dimension_numbers = #tpu.dot_dimension_numbers<[1], [0], [0], [1], [0, 0, 1, 1], [], []>} : vector<8x128xf32>, vector<128x512xf32>, vector<8x512xf32> -> vector<8x512xf32>
    %19 = arith.addf %15, %18 : vector<8x512xf32>
    %20 = vector.extract_strided_slice %19 {offsets = [0, 0], sizes = [8, 128], strides = [1, 1]} : vector<8x512xf32> to vector<8x128xf32>
    %21 = arith.negf %20 : vector<8x128xf32>
    %22 = math.exp %21 : vector<8x128xf32>
    %cst_22 = arith.constant 1.000000e+00 : f32
    %23 = vector.broadcast %cst_22 : f32 to vector<8x128xf32>
    %24 = arith.addf %23, %22 : vector<8x128xf32>
    %25 = arith.divf %23, %24 : vector<8x128xf32>
    %26 = vector.extract_strided_slice %19 {offsets = [0, 128], sizes = [8, 128], strides = [1, 1]} : vector<8x512xf32> to vector<8x128xf32>
    %27 = arith.negf %26 : vector<8x128xf32>
    %28 = math.exp %27 : vector<8x128xf32>
    %cst_23 = arith.constant 1.000000e+00 : f32
    %29 = vector.broadcast %cst_23 : f32 to vector<8x128xf32>
    %30 = arith.addf %29, %28 : vector<8x128xf32>
    %31 = arith.divf %29, %30 : vector<8x128xf32>
    %32 = vector.extract_strided_slice %19 {offsets = [0, 256], sizes = [8, 128], strides = [1, 1]} : vector<8x512xf32> to vector<8x128xf32>
    %33 = math.tanh %32 : vector<8x128xf32>
    %34 = vector.extract_strided_slice %19 {offsets = [0, 384], sizes = [8, 128], strides = [1, 1]} : vector<8x512xf32> to vector<8x128xf32>
    %35 = arith.negf %34 : vector<8x128xf32>
    %36 = math.exp %35 : vector<8x128xf32>
    %cst_24 = arith.constant 1.000000e+00 : f32
    %37 = vector.broadcast %cst_24 : f32 to vector<8x128xf32>
    %38 = arith.addf %37, %36 : vector<8x128xf32>
    %39 = arith.divf %37, %38 : vector<8x128xf32>
    %c0_25 = arith.constant 0 : index
    %c0_26 = arith.constant 0 : index
    %40 = vector.load %arg14[%c0_25, %c0_26] : memref<8x128xf32, #tpu.memory_space<vmem>>, vector<8x128xf32>
    %41 = arith.mulf %31, %40 : vector<8x128xf32>
    %42 = arith.mulf %25, %33 : vector<8x128xf32>
    %43 = arith.addf %41, %42 : vector<8x128xf32>
    %44 = math.tanh %43 : vector<8x128xf32>
    %45 = arith.mulf %39, %44 : vector<8x128xf32>
    %c0_27 = arith.constant 0 : index
    %c0_28 = arith.constant 0 : index
    %46 = vector.load %arg14[%c0_27, %c0_28] : memref<8x128xf32, #tpu.memory_space<vmem>>, vector<8x128xf32>
    tpu.vector_store %arg14[%c0_27, %c0_28], %43 {strides = array<i32>} : memref<8x128xf32, #tpu.memory_space<vmem>>, vector<8x128xf32>,
    %c0_29 = arith.constant 0 : index
    %c0_30 = arith.constant 0 : index
    %47 = vector.load %arg13[%c0_29, %c0_30] : memref<8x128xf32, #tpu.memory_space<vmem>>, vector<8x128xf32>
    tpu.vector_store %arg13[%c0_29, %c0_30], %45 {strides = array<i32>} : memref<8x128xf32, #tpu.memory_space<vmem>>, vector<8x128xf32>,
    %48 = arith.index_cast %13 : i32 to index
    %c0_31 = arith.constant 0 : index
    %49 = vector.load %arg12[%48, %c0_31] : memref<64x128xf32, #tpu.memory_space<vmem>>, vector<8x128xf32>
    tpu.vector_store %arg12[%48, %c0_31], %45 {strides = array<i32>} : memref<64x128xf32, #tpu.memory_space<vmem>>, vector<8x128xf32>,
    %c1_i32 = arith.constant 1 : i32
    %c8_i32_32 = arith.constant 8 : i32
    %50 = arith.muli %c1_i32, %c8_i32_32 : i32
    %51 = tpu.assume_multiple %50, 8 : i32
    %52 = arith.index_cast %51 : i32 to index
    %c0_33 = arith.constant 0 : index
    %53 = vector.load %arg11[%52, %c0_33] : memref<64x512xf32, #tpu.memory_space<vmem>>, vector<8x512xf32>
    %c0_34 = arith.constant 0 : index
    %c0_35 = arith.constant 0 : index
    %54 = vector.load %arg13[%c0_34, %c0_35] : memref<8x128xf32, #tpu.memory_space<vmem>>, vector<8x128xf32>
    %c0_36 = arith.constant 0 : index
    %c0_37 = arith.constant 0 : index
    %55 = vector.load %arg4[%c0_36, %c0_37] : memref<128x512xf32, #tpu.memory_space<vmem>>, vector<128x512xf32>
    %cst_38 = arith.constant dense<0.000000e+00> : vector<8x512xf32>
    %56 = tpu.matmul %54, %55, %cst_38 {dimension_numbers = #tpu.dot_dimension_numbers<[1], [0], [0], [1], [0, 0, 1, 1], [], []>} : vector<8x128xf32>, vector<128x512xf32>, vector<8x512xf32> -> vector<8x512xf32>
    %57 = arith.addf %53, %56 : vector<8x512xf32>
    %58 = vector.extract_strided_slice %57 {offsets = [0, 0], sizes = [8, 128], strides = [1, 1]} : vector<8x512xf32> to vector<8x128xf32>
    %59 = arith.negf %58 : vector<8x128xf32>
    %60 = math.exp %59 : vector<8x128xf32>
    %cst_39 = arith.constant 1.000000e+00 : f32
    %61 = vector.broadcast %cst_39 : f32 to vector<8x128xf32>
    %62 = arith.addf %61, %60 : vector<8x128xf32>
    %63 = arith.divf %61, %62 : vector<8x128xf32>
    %64 = vector.extract_strided_slice %57 {offsets = [0, 128], sizes = [8, 128], strides = [1, 1]} : vector<8x512xf32> to vector<8x128xf32>
    %65 = arith.negf %64 : vector<8x128xf32>
    %66 = math.exp %65 : vector<8x128xf32>
    %cst_40 = arith.constant 1.000000e+00 : f32
    %67 = vector.broadcast %cst_40 : f32 to vector<8x128xf32>
    %68 = arith.addf %67, %66 : vector<8x128xf32>
    %69 = arith.divf %67, %68 : vector<8x128xf32>
    %70 = vector.extract_strided_slice %57 {offsets = [0, 256], sizes = [8, 128], strides = [1, 1]} : vector<8x512xf32> to vector<8x128xf32>
    %71 = math.tanh %70 : vector<8x128xf32>
    %72 = vector.extract_strided_slice %57 {offsets = [0, 384], sizes = [8, 128], strides = [1, 1]} : vector<8x512xf32> to vector<8x128xf32>
    %73 = arith.negf %72 : vector<8x128xf32>
    %74 = math.exp %73 : vector<8x128xf32>
    %cst_41 = arith.constant 1.000000e+00 : f32
    %75 = vector.broadcast %cst_41 : f32 to vector<8x128xf32>
    %76 = arith.addf %75, %74 : vector<8x128xf32>
    %77 = arith.divf %75, %76 : vector<8x128xf32>
    %c0_42 = arith.constant 0 : index
    %c0_43 = arith.constant 0 : index
    %78 = vector.load %arg14[%c0_42, %c0_43] : memref<8x128xf32, #tpu.memory_space<vmem>>, vector<8x128xf32>
    %79 = arith.mulf %69, %78 : vector<8x128xf32>
    %80 = arith.mulf %63, %71 : vector<8x128xf32>
    %81 = arith.addf %79, %80 : vector<8x128xf32>
    %82 = math.tanh %81 : vector<8x128xf32>
    %83 = arith.mulf %77, %82 : vector<8x128xf32>
    %c0_44 = arith.constant 0 : index
    %c0_45 = arith.constant 0 : index
    %84 = vector.load %arg14[%c0_44, %c0_45] : memref<8x128xf32, #tpu.memory_space<vmem>>, vector<8x128xf32>
    tpu.vector_store %arg14[%c0_44, %c0_45], %81 {strides = array<i32>} : memref<8x128xf32, #tpu.memory_space<vmem>>, vector<8x128xf32>,
    %c0_46 = arith.constant 0 : index
    %c0_47 = arith.constant 0 : index
    %85 = vector.load %arg13[%c0_46, %c0_47] : memref<8x128xf32, #tpu.memory_space<vmem>>, vector<8x128xf32>
    tpu.vector_store %arg13[%c0_46, %c0_47], %83 {strides = array<i32>} : memref<8x128xf32, #tpu.memory_space<vmem>>, vector<8x128xf32>,
    %86 = arith.index_cast %51 : i32 to index
    %c0_48 = arith.constant 0 : index
    %87 = vector.load %arg12[%86, %c0_48] : memref<64x128xf32, #tpu.memory_space<vmem>>, vector<8x128xf32>
    tpu.vector_store %arg12[%86, %c0_48], %83 {strides = array<i32>} : memref<64x128xf32, #tpu.memory_space<vmem>>, vector<8x128xf32>,
    %c2_i32 = arith.constant 2 : i32
    %c8_i32_49 = arith.constant 8 : i32
    %88 = arith.muli %c2_i32, %c8_i32_49 : i32
    %89 = tpu.assume_multiple %88, 8 : i32
    %90 = arith.index_cast %89 : i32 to index
    %c0_50 = arith.constant 0 : index
    %91 = vector.load %arg11[%90, %c0_50] : memref<64x512xf32, #tpu.memory_space<vmem>>, vector<8x512xf32>
    %c0_51 = arith.constant 0 : index
    %c0_52 = arith.constant 0 : index
    %92 = vector.load %arg13[%c0_51, %c0_52] : memref<8x128xf32, #tpu.memory_space<vmem>>, vector<8x128xf32>
    %c0_53 = arith.constant 0 : index
    %c0_54 = arith.constant 0 : index
    %93 = vector.load %arg4[%c0_53, %c0_54] : memref<128x512xf32, #tpu.memory_space<vmem>>, vector<128x512xf32>
    %cst_55 = arith.constant dense<0.000000e+00> : vector<8x512xf32>
    %94 = tpu.matmul %92, %93, %cst_55 {dimension_numbers = #tpu.dot_dimension_numbers<[1], [0], [0], [1], [0, 0, 1, 1], [], []>} : vector<8x128xf32>, vector<128x512xf32>, vector<8x512xf32> -> vector<8x512xf32>
    %95 = arith.addf %91, %94 : vector<8x512xf32>
    %96 = vector.extract_strided_slice %95 {offsets = [0, 0], sizes = [8, 128], strides = [1, 1]} : vector<8x512xf32> to vector<8x128xf32>
    %97 = arith.negf %96 : vector<8x128xf32>
    %98 = math.exp %97 : vector<8x128xf32>
    %cst_56 = arith.constant 1.000000e+00 : f32
    %99 = vector.broadcast %cst_56 : f32 to vector<8x128xf32>
    %100 = arith.addf %99, %98 : vector<8x128xf32>
    %101 = arith.divf %99, %100 : vector<8x128xf32>
    %102 = vector.extract_strided_slice %95 {offsets = [0, 128], sizes = [8, 128], strides = [1, 1]} : vector<8x512xf32> to vector<8x128xf32>
    %103 = arith.negf %102 : vector<8x128xf32>
    %104 = math.exp %103 : vector<8x128xf32>
    %cst_57 = arith.constant 1.000000e+00 : f32
    %105 = vector.broadcast %cst_57 : f32 to vector<8x128xf32>
    %106 = arith.addf %105, %104 : vector<8x128xf32>
    %107 = arith.divf %105, %106 : vector<8x128xf32>
    %108 = vector.extract_strided_slice %95 {offsets = [0, 256], sizes = [8, 128], strides = [1, 1]} : vector<8x512xf32> to vector<8x128xf32>
    %109 = math.tanh %108 : vector<8x128xf32>
    %110 = vector.extract_strided_slice %95 {offsets = [0, 384], sizes = [8, 128], strides = [1, 1]} : vector<8x512xf32> to vector<8x128xf32>
    %111 = arith.negf %110 : vector<8x128xf32>
    %112 = math.exp %111 : vector<8x128xf32>
    %cst_58 = arith.constant 1.000000e+00 : f32
    %113 = vector.broadcast %cst_58 : f32 to vector<8x128xf32>
    %114 = arith.addf %113, %112 : vector<8x128xf32>
    %115 = arith.divf %113, %114 : vector<8x128xf32>
    %c0_59 = arith.constant 0 : index
    %c0_60 = arith.constant 0 : index
    %116 = vector.load %arg14[%c0_59, %c0_60] : memref<8x128xf32, #tpu.memory_space<vmem>>, vector<8x128xf32>
    %117 = arith.mulf %107, %116 : vector<8x128xf32>
    %118 = arith.mulf %101, %109 : vector<8x128xf32>
    %119 = arith.addf %117, %118 : vector<8x128xf32>
    %120 = math.tanh %119 : vector<8x128xf32>
    %121 = arith.mulf %115, %120 : vector<8x128xf32>
    %c0_61 = arith.constant 0 : index
    %c0_62 = arith.constant 0 : index
    %122 = vector.load %arg14[%c0_61, %c0_62] : memref<8x128xf32, #tpu.memory_space<vmem>>, vector<8x128xf32>
    tpu.vector_store %arg14[%c0_61, %c0_62], %119 {strides = array<i32>} : memref<8x128xf32, #tpu.memory_space<vmem>>, vector<8x128xf32>,
    %c0_63 = arith.constant 0 : index
    %c0_64 = arith.constant 0 : index
    %123 = vector.load %arg13[%c0_63, %c0_64] : memref<8x128xf32, #tpu.memory_space<vmem>>, vector<8x128xf32>
    tpu.vector_store %arg13[%c0_63, %c0_64], %121 {strides = array<i32>} : memref<8x128xf32, #tpu.memory_space<vmem>>, vector<8x128xf32>,
    %124 = arith.index_cast %89 : i32 to index
    %c0_65 = arith.constant 0 : index
    %125 = vector.load %arg12[%124, %c0_65] : memref<64x128xf32, #tpu.memory_space<vmem>>, vector<8x128xf32>
    tpu.vector_store %arg12[%124, %c0_65], %121 {strides = array<i32>} : memref<64x128xf32, #tpu.memory_space<vmem>>, vector<8x128xf32>,
    %c3_i32 = arith.constant 3 : i32
    %c8_i32_66 = arith.constant 8 : i32
    %126 = arith.muli %c3_i32, %c8_i32_66 : i32
    %127 = tpu.assume_multiple %126, 8 : i32
    %128 = arith.index_cast %127 : i32 to index
    %c0_67 = arith.constant 0 : index
    %129 = vector.load %arg11[%128, %c0_67] : memref<64x512xf32, #tpu.memory_space<vmem>>, vector<8x512xf32>
    %c0_68 = arith.constant 0 : index
    %c0_69 = arith.constant 0 : index
    %130 = vector.load %arg13[%c0_68, %c0_69] : memref<8x128xf32, #tpu.memory_space<vmem>>, vector<8x128xf32>
    %c0_70 = arith.constant 0 : index
    %c0_71 = arith.constant 0 : index
    %131 = vector.load %arg4[%c0_70, %c0_71] : memref<128x512xf32, #tpu.memory_space<vmem>>, vector<128x512xf32>
    %cst_72 = arith.constant dense<0.000000e+00> : vector<8x512xf32>
    %132 = tpu.matmul %130, %131, %cst_72 {dimension_numbers = #tpu.dot_dimension_numbers<[1], [0], [0], [1], [0, 0, 1, 1], [], []>} : vector<8x128xf32>, vector<128x512xf32>, vector<8x512xf32> -> vector<8x512xf32>
    %133 = arith.addf %129, %132 : vector<8x512xf32>
    %134 = vector.extract_strided_slice %133 {offsets = [0, 0], sizes = [8, 128], strides = [1, 1]} : vector<8x512xf32> to vector<8x128xf32>
    %135 = arith.negf %134 : vector<8x128xf32>
    %136 = math.exp %135 : vector<8x128xf32>
    %cst_73 = arith.constant 1.000000e+00 : f32
    %137 = vector.broadcast %cst_73 : f32 to vector<8x128xf32>
    %138 = arith.addf %137, %136 : vector<8x128xf32>
    %139 = arith.divf %137, %138 : vector<8x128xf32>
    %140 = vector.extract_strided_slice %133 {offsets = [0, 128], sizes = [8, 128], strides = [1, 1]} : vector<8x512xf32> to vector<8x128xf32>
    %141 = arith.negf %140 : vector<8x128xf32>
    %142 = math.exp %141 : vector<8x128xf32>
    %cst_74 = arith.constant 1.000000e+00 : f32
    %143 = vector.broadcast %cst_74 : f32 to vector<8x128xf32>
    %144 = arith.addf %143, %142 : vector<8x128xf32>
    %145 = arith.divf %143, %144 : vector<8x128xf32>
    %146 = vector.extract_strided_slice %133 {offsets = [0, 256], sizes = [8, 128], strides = [1, 1]} : vector<8x512xf32> to vector<8x128xf32>
    %147 = math.tanh %146 : vector<8x128xf32>
    %148 = vector.extract_strided_slice %133 {offsets = [0, 384], sizes = [8, 128], strides = [1, 1]} : vector<8x512xf32> to vector<8x128xf32>
    %149 = arith.negf %148 : vector<8x128xf32>
    %150 = math.exp %149 : vector<8x128xf32>
    %cst_75 = arith.constant 1.000000e+00 : f32
    %151 = vector.broadcast %cst_75 : f32 to vector<8x128xf32>
    %152 = arith.addf %151, %150 : vector<8x128xf32>
    %153 = arith.divf %151, %152 : vector<8x128xf32>
    %c0_76 = arith.constant 0 : index
    %c0_77 = arith.constant 0 : index
    %154 = vector.load %arg14[%c0_76, %c0_77] : memref<8x128xf32, #tpu.memory_space<vmem>>, vector<8x128xf32>
    %155 = arith.mulf %145, %154 : vector<8x128xf32>
    %156 = arith.mulf %139, %147 : vector<8x128xf32>
    %157 = arith.addf %155, %156 : vector<8x128xf32>
    %158 = math.tanh %157 : vector<8x128xf32>
    %159 = arith.mulf %153, %158 : vector<8x128xf32>
    %c0_78 = arith.constant 0 : index
    %c0_79 = arith.constant 0 : index
    %160 = vector.load %arg14[%c0_78, %c0_79] : memref<8x128xf32, #tpu.memory_space<vmem>>, vector<8x128xf32>
    tpu.vector_store %arg14[%c0_78, %c0_79], %157 {strides = array<i32>} : memref<8x128xf32, #tpu.memory_space<vmem>>, vector<8x128xf32>,
    %c0_80 = arith.constant 0 : index
    %c0_81 = arith.constant 0 : index
    %161 = vector.load %arg13[%c0_80, %c0_81] : memref<8x128xf32, #tpu.memory_space<vmem>>, vector<8x128xf32>
    tpu.vector_store %arg13[%c0_80, %c0_81], %159 {strides = array<i32>} : memref<8x128xf32, #tpu.memory_space<vmem>>, vector<8x128xf32>,
    %162 = arith.index_cast %127 : i32 to index
    %c0_82 = arith.constant 0 : index
    %163 = vector.load %arg12[%162, %c0_82] : memref<64x128xf32, #tpu.memory_space<vmem>>, vector<8x128xf32>
    tpu.vector_store %arg12[%162, %c0_82], %159 {strides = array<i32>} : memref<64x128xf32, #tpu.memory_space<vmem>>, vector<8x128xf32>,
    %c4_i32 = arith.constant 4 : i32
    %c8_i32_83 = arith.constant 8 : i32
    %164 = arith.muli %c4_i32, %c8_i32_83 : i32
    %165 = tpu.assume_multiple %164, 8 : i32
    %166 = arith.index_cast %165 : i32 to index
    %c0_84 = arith.constant 0 : index
    %167 = vector.load %arg11[%166, %c0_84] : memref<64x512xf32, #tpu.memory_space<vmem>>, vector<8x512xf32>
    %c0_85 = arith.constant 0 : index
    %c0_86 = arith.constant 0 : index
    %168 = vector.load %arg13[%c0_85, %c0_86] : memref<8x128xf32, #tpu.memory_space<vmem>>, vector<8x128xf32>
    %c0_87 = arith.constant 0 : index
    %c0_88 = arith.constant 0 : index
    %169 = vector.load %arg4[%c0_87, %c0_88] : memref<128x512xf32, #tpu.memory_space<vmem>>, vector<128x512xf32>
    %cst_89 = arith.constant dense<0.000000e+00> : vector<8x512xf32>
    %170 = tpu.matmul %168, %169, %cst_89 {dimension_numbers = #tpu.dot_dimension_numbers<[1], [0], [0], [1], [0, 0, 1, 1], [], []>} : vector<8x128xf32>, vector<128x512xf32>, vector<8x512xf32> -> vector<8x512xf32>
    %171 = arith.addf %167, %170 : vector<8x512xf32>
    %172 = vector.extract_strided_slice %171 {offsets = [0, 0], sizes = [8, 128], strides = [1, 1]} : vector<8x512xf32> to vector<8x128xf32>
    %173 = arith.negf %172 : vector<8x128xf32>
    %174 = math.exp %173 : vector<8x128xf32>
    %cst_90 = arith.constant 1.000000e+00 : f32
    %175 = vector.broadcast %cst_90 : f32 to vector<8x128xf32>
    %176 = arith.addf %175, %174 : vector<8x128xf32>
    %177 = arith.divf %175, %176 : vector<8x128xf32>
    %178 = vector.extract_strided_slice %171 {offsets = [0, 128], sizes = [8, 128], strides = [1, 1]} : vector<8x512xf32> to vector<8x128xf32>
    %179 = arith.negf %178 : vector<8x128xf32>
    %180 = math.exp %179 : vector<8x128xf32>
    %cst_91 = arith.constant 1.000000e+00 : f32
    %181 = vector.broadcast %cst_91 : f32 to vector<8x128xf32>
    %182 = arith.addf %181, %180 : vector<8x128xf32>
    %183 = arith.divf %181, %182 : vector<8x128xf32>
    %184 = vector.extract_strided_slice %171 {offsets = [0, 256], sizes = [8, 128], strides = [1, 1]} : vector<8x512xf32> to vector<8x128xf32>
    %185 = math.tanh %184 : vector<8x128xf32>
    %186 = vector.extract_strided_slice %171 {offsets = [0, 384], sizes = [8, 128], strides = [1, 1]} : vector<8x512xf32> to vector<8x128xf32>
    %187 = arith.negf %186 : vector<8x128xf32>
    %188 = math.exp %187 : vector<8x128xf32>
    %cst_92 = arith.constant 1.000000e+00 : f32
    %189 = vector.broadcast %cst_92 : f32 to vector<8x128xf32>
    %190 = arith.addf %189, %188 : vector<8x128xf32>
    %191 = arith.divf %189, %190 : vector<8x128xf32>
    %c0_93 = arith.constant 0 : index
    %c0_94 = arith.constant 0 : index
    %192 = vector.load %arg14[%c0_93, %c0_94] : memref<8x128xf32, #tpu.memory_space<vmem>>, vector<8x128xf32>
    %193 = arith.mulf %183, %192 : vector<8x128xf32>
    %194 = arith.mulf %177, %185 : vector<8x128xf32>
    %195 = arith.addf %193, %194 : vector<8x128xf32>
    %196 = math.tanh %195 : vector<8x128xf32>
    %197 = arith.mulf %191, %196 : vector<8x128xf32>
    %c0_95 = arith.constant 0 : index
    %c0_96 = arith.constant 0 : index
    %198 = vector.load %arg14[%c0_95, %c0_96] : memref<8x128xf32, #tpu.memory_space<vmem>>, vector<8x128xf32>
    tpu.vector_store %arg14[%c0_95, %c0_96], %195 {strides = array<i32>} : memref<8x128xf32, #tpu.memory_space<vmem>>, vector<8x128xf32>,
    %c0_97 = arith.constant 0 : index
    %c0_98 = arith.constant 0 : index
    %199 = vector.load %arg13[%c0_97, %c0_98] : memref<8x128xf32, #tpu.memory_space<vmem>>, vector<8x128xf32>
    tpu.vector_store %arg13[%c0_97, %c0_98], %197 {strides = array<i32>} : memref<8x128xf32, #tpu.memory_space<vmem>>, vector<8x128xf32>,
    %200 = arith.index_cast %165 : i32 to index
    %c0_99 = arith.constant 0 : index
    %201 = vector.load %arg12[%200, %c0_99] : memref<64x128xf32, #tpu.memory_space<vmem>>, vector<8x128xf32>
    tpu.vector_store %arg12[%200, %c0_99], %197 {strides = array<i32>} : memref<64x128xf32, #tpu.memory_space<vmem>>, vector<8x128xf32>,
    %c5_i32 = arith.constant 5 : i32
    %c8_i32_100 = arith.constant 8 : i32
    %202 = arith.muli %c5_i32, %c8_i32_100 : i32
    %203 = tpu.assume_multiple %202, 8 : i32
    %204 = arith.index_cast %203 : i32 to index
    %c0_101 = arith.constant 0 : index
    %205 = vector.load %arg11[%204, %c0_101] : memref<64x512xf32, #tpu.memory_space<vmem>>, vector<8x512xf32>
    %c0_102 = arith.constant 0 : index
    %c0_103 = arith.constant 0 : index
    %206 = vector.load %arg13[%c0_102, %c0_103] : memref<8x128xf32, #tpu.memory_space<vmem>>, vector<8x128xf32>
    %c0_104 = arith.constant 0 : index
    %c0_105 = arith.constant 0 : index
    %207 = vector.load %arg4[%c0_104, %c0_105] : memref<128x512xf32, #tpu.memory_space<vmem>>, vector<128x512xf32>
    %cst_106 = arith.constant dense<0.000000e+00> : vector<8x512xf32>
    %208 = tpu.matmul %206, %207, %cst_106 {dimension_numbers = #tpu.dot_dimension_numbers<[1], [0], [0], [1], [0, 0, 1, 1], [], []>} : vector<8x128xf32>, vector<128x512xf32>, vector<8x512xf32> -> vector<8x512xf32>
    %209 = arith.addf %205, %208 : vector<8x512xf32>
    %210 = vector.extract_strided_slice %209 {offsets = [0, 0], sizes = [8, 128], strides = [1, 1]} : vector<8x512xf32> to vector<8x128xf32>
    %211 = arith.negf %210 : vector<8x128xf32>
    %212 = math.exp %211 : vector<8x128xf32>
    %cst_107 = arith.constant 1.000000e+00 : f32
    %213 = vector.broadcast %cst_107 : f32 to vector<8x128xf32>
    %214 = arith.addf %213, %212 : vector<8x128xf32>
    %215 = arith.divf %213, %214 : vector<8x128xf32>
    %216 = vector.extract_strided_slice %209 {offsets = [0, 128], sizes = [8, 128], strides = [1, 1]} : vector<8x512xf32> to vector<8x128xf32>
    %217 = arith.negf %216 : vector<8x128xf32>
    %218 = math.exp %217 : vector<8x128xf32>
    %cst_108 = arith.constant 1.000000e+00 : f32
    %219 = vector.broadcast %cst_108 : f32 to vector<8x128xf32>
    %220 = arith.addf %219, %218 : vector<8x128xf32>
    %221 = arith.divf %219, %220 : vector<8x128xf32>
    %222 = vector.extract_strided_slice %209 {offsets = [0, 256], sizes = [8, 128], strides = [1, 1]} : vector<8x512xf32> to vector<8x128xf32>
    %223 = math.tanh %222 : vector<8x128xf32>
    %224 = vector.extract_strided_slice %209 {offsets = [0, 384], sizes = [8, 128], strides = [1, 1]} : vector<8x512xf32> to vector<8x128xf32>
    %225 = arith.negf %224 : vector<8x128xf32>
    %226 = math.exp %225 : vector<8x128xf32>
    %cst_109 = arith.constant 1.000000e+00 : f32
    %227 = vector.broadcast %cst_109 : f32 to vector<8x128xf32>
    %228 = arith.addf %227, %226 : vector<8x128xf32>
    %229 = arith.divf %227, %228 : vector<8x128xf32>
    %c0_110 = arith.constant 0 : index
    %c0_111 = arith.constant 0 : index
    %230 = vector.load %arg14[%c0_110, %c0_111] : memref<8x128xf32, #tpu.memory_space<vmem>>, vector<8x128xf32>
    %231 = arith.mulf %221, %230 : vector<8x128xf32>
    %232 = arith.mulf %215, %223 : vector<8x128xf32>
    %233 = arith.addf %231, %232 : vector<8x128xf32>
    %234 = math.tanh %233 : vector<8x128xf32>
    %235 = arith.mulf %229, %234 : vector<8x128xf32>
    %c0_112 = arith.constant 0 : index
    %c0_113 = arith.constant 0 : index
    %236 = vector.load %arg14[%c0_112, %c0_113] : memref<8x128xf32, #tpu.memory_space<vmem>>, vector<8x128xf32>
    tpu.vector_store %arg14[%c0_112, %c0_113], %233 {strides = array<i32>} : memref<8x128xf32, #tpu.memory_space<vmem>>, vector<8x128xf32>,
    %c0_114 = arith.constant 0 : index
    %c0_115 = arith.constant 0 : index
    %237 = vector.load %arg13[%c0_114, %c0_115] : memref<8x128xf32, #tpu.memory_space<vmem>>, vector<8x128xf32>
    tpu.vector_store %arg13[%c0_114, %c0_115], %235 {strides = array<i32>} : memref<8x128xf32, #tpu.memory_space<vmem>>, vector<8x128xf32>,
    %238 = arith.index_cast %203 : i32 to index
    %c0_116 = arith.constant 0 : index
    %239 = vector.load %arg12[%238, %c0_116] : memref<64x128xf32, #tpu.memory_space<vmem>>, vector<8x128xf32>
    tpu.vector_store %arg12[%238, %c0_116], %235 {strides = array<i32>} : memref<64x128xf32, #tpu.memory_space<vmem>>, vector<8x128xf32>,
    %c6_i32 = arith.constant 6 : i32
    %c8_i32_117 = arith.constant 8 : i32
    %240 = arith.muli %c6_i32, %c8_i32_117 : i32
    %241 = tpu.assume_multiple %240, 8 : i32
    %242 = arith.index_cast %241 : i32 to index
    %c0_118 = arith.constant 0 : index
    %243 = vector.load %arg11[%242, %c0_118] : memref<64x512xf32, #tpu.memory_space<vmem>>, vector<8x512xf32>
    %c0_119 = arith.constant 0 : index
    %c0_120 = arith.constant 0 : index
    %244 = vector.load %arg13[%c0_119, %c0_120] : memref<8x128xf32, #tpu.memory_space<vmem>>, vector<8x128xf32>
    %c0_121 = arith.constant 0 : index
    %c0_122 = arith.constant 0 : index
    %245 = vector.load %arg4[%c0_121, %c0_122] : memref<128x512xf32, #tpu.memory_space<vmem>>, vector<128x512xf32>
    %cst_123 = arith.constant dense<0.000000e+00> : vector<8x512xf32>
    %246 = tpu.matmul %244, %245, %cst_123 {dimension_numbers = #tpu.dot_dimension_numbers<[1], [0], [0], [1], [0, 0, 1, 1], [], []>} : vector<8x128xf32>, vector<128x512xf32>, vector<8x512xf32> -> vector<8x512xf32>
    %247 = arith.addf %243, %246 : vector<8x512xf32>
    %248 = vector.extract_strided_slice %247 {offsets = [0, 0], sizes = [8, 128], strides = [1, 1]} : vector<8x512xf32> to vector<8x128xf32>
    %249 = arith.negf %248 : vector<8x128xf32>
    %250 = math.exp %249 : vector<8x128xf32>
    %cst_124 = arith.constant 1.000000e+00 : f32
    %251 = vector.broadcast %cst_124 : f32 to vector<8x128xf32>
    %252 = arith.addf %251, %250 : vector<8x128xf32>
    %253 = arith.divf %251, %252 : vector<8x128xf32>
    %254 = vector.extract_strided_slice %247 {offsets = [0, 128], sizes = [8, 128], strides = [1, 1]} : vector<8x512xf32> to vector<8x128xf32>
    %255 = arith.negf %254 : vector<8x128xf32>
    %256 = math.exp %255 : vector<8x128xf32>
    %cst_125 = arith.constant 1.000000e+00 : f32
    %257 = vector.broadcast %cst_125 : f32 to vector<8x128xf32>
    %258 = arith.addf %257, %256 : vector<8x128xf32>
    %259 = arith.divf %257, %258 : vector<8x128xf32>
    %260 = vector.extract_strided_slice %247 {offsets = [0, 256], sizes = [8, 128], strides = [1, 1]} : vector<8x512xf32> to vector<8x128xf32>
    %261 = math.tanh %260 : vector<8x128xf32>
    %262 = vector.extract_strided_slice %247 {offsets = [0, 384], sizes = [8, 128], strides = [1, 1]} : vector<8x512xf32> to vector<8x128xf32>
    %263 = arith.negf %262 : vector<8x128xf32>
    %264 = math.exp %263 : vector<8x128xf32>
    %cst_126 = arith.constant 1.000000e+00 : f32
    %265 = vector.broadcast %cst_126 : f32 to vector<8x128xf32>
    %266 = arith.addf %265, %264 : vector<8x128xf32>
    %267 = arith.divf %265, %266 : vector<8x128xf32>
    %c0_127 = arith.constant 0 : index
    %c0_128 = arith.constant 0 : index
    %268 = vector.load %arg14[%c0_127, %c0_128] : memref<8x128xf32, #tpu.memory_space<vmem>>, vector<8x128xf32>
    %269 = arith.mulf %259, %268 : vector<8x128xf32>
    %270 = arith.mulf %253, %261 : vector<8x128xf32>
    %271 = arith.addf %269, %270 : vector<8x128xf32>
    %272 = math.tanh %271 : vector<8x128xf32>
    %273 = arith.mulf %267, %272 : vector<8x128xf32>
    %c0_129 = arith.constant 0 : index
    %c0_130 = arith.constant 0 : index
    %274 = vector.load %arg14[%c0_129, %c0_130] : memref<8x128xf32, #tpu.memory_space<vmem>>, vector<8x128xf32>
    tpu.vector_store %arg14[%c0_129, %c0_130], %271 {strides = array<i32>} : memref<8x128xf32, #tpu.memory_space<vmem>>, vector<8x128xf32>,
    %c0_131 = arith.constant 0 : index
    %c0_132 = arith.constant 0 : index
    %275 = vector.load %arg13[%c0_131, %c0_132] : memref<8x128xf32, #tpu.memory_space<vmem>>, vector<8x128xf32>
    tpu.vector_store %arg13[%c0_131, %c0_132], %273 {strides = array<i32>} : memref<8x128xf32, #tpu.memory_space<vmem>>, vector<8x128xf32>,
    %276 = arith.index_cast %241 : i32 to index
    %c0_133 = arith.constant 0 : index
    %277 = vector.load %arg12[%276, %c0_133] : memref<64x128xf32, #tpu.memory_space<vmem>>, vector<8x128xf32>
    tpu.vector_store %arg12[%276, %c0_133], %273 {strides = array<i32>} : memref<64x128xf32, #tpu.memory_space<vmem>>, vector<8x128xf32>,
    %c7_i32 = arith.constant 7 : i32
    %c8_i32_134 = arith.constant 8 : i32
    %278 = arith.muli %c7_i32, %c8_i32_134 : i32
    %279 = tpu.assume_multiple %278, 8 : i32
    %280 = arith.index_cast %279 : i32 to index
    %c0_135 = arith.constant 0 : index
    %281 = vector.load %arg11[%280, %c0_135] : memref<64x512xf32, #tpu.memory_space<vmem>>, vector<8x512xf32>
    %c0_136 = arith.constant 0 : index
    %c0_137 = arith.constant 0 : index
    %282 = vector.load %arg13[%c0_136, %c0_137] : memref<8x128xf32, #tpu.memory_space<vmem>>, vector<8x128xf32>
    %c0_138 = arith.constant 0 : index
    %c0_139 = arith.constant 0 : index
    %283 = vector.load %arg4[%c0_138, %c0_139] : memref<128x512xf32, #tpu.memory_space<vmem>>, vector<128x512xf32>
    %cst_140 = arith.constant dense<0.000000e+00> : vector<8x512xf32>
    %284 = tpu.matmul %282, %283, %cst_140 {dimension_numbers = #tpu.dot_dimension_numbers<[1], [0], [0], [1], [0, 0, 1, 1], [], []>} : vector<8x128xf32>, vector<128x512xf32>, vector<8x512xf32> -> vector<8x512xf32>
    %285 = arith.addf %281, %284 : vector<8x512xf32>
    %286 = vector.extract_strided_slice %285 {offsets = [0, 0], sizes = [8, 128], strides = [1, 1]} : vector<8x512xf32> to vector<8x128xf32>
    %287 = arith.negf %286 : vector<8x128xf32>
    %288 = math.exp %287 : vector<8x128xf32>
    %cst_141 = arith.constant 1.000000e+00 : f32
    %289 = vector.broadcast %cst_141 : f32 to vector<8x128xf32>
    %290 = arith.addf %289, %288 : vector<8x128xf32>
    %291 = arith.divf %289, %290 : vector<8x128xf32>
    %292 = vector.extract_strided_slice %285 {offsets = [0, 128], sizes = [8, 128], strides = [1, 1]} : vector<8x512xf32> to vector<8x128xf32>
    %293 = arith.negf %292 : vector<8x128xf32>
    %294 = math.exp %293 : vector<8x128xf32>
    %cst_142 = arith.constant 1.000000e+00 : f32
    %295 = vector.broadcast %cst_142 : f32 to vector<8x128xf32>
    %296 = arith.addf %295, %294 : vector<8x128xf32>
    %297 = arith.divf %295, %296 : vector<8x128xf32>
    %298 = vector.extract_strided_slice %285 {offsets = [0, 256], sizes = [8, 128], strides = [1, 1]} : vector<8x512xf32> to vector<8x128xf32>
    %299 = math.tanh %298 : vector<8x128xf32>
    %300 = vector.extract_strided_slice %285 {offsets = [0, 384], sizes = [8, 128], strides = [1, 1]} : vector<8x512xf32> to vector<8x128xf32>
    %301 = arith.negf %300 : vector<8x128xf32>
    %302 = math.exp %301 : vector<8x128xf32>
    %cst_143 = arith.constant 1.000000e+00 : f32
    %303 = vector.broadcast %cst_143 : f32 to vector<8x128xf32>
    %304 = arith.addf %303, %302 : vector<8x128xf32>
    %305 = arith.divf %303, %304 : vector<8x128xf32>
    %c0_144 = arith.constant 0 : index
    %c0_145 = arith.constant 0 : index
    %306 = vector.load %arg14[%c0_144, %c0_145] : memref<8x128xf32, #tpu.memory_space<vmem>>, vector<8x128xf32>
    %307 = arith.mulf %297, %306 : vector<8x128xf32>
    %308 = arith.mulf %291, %299 : vector<8x128xf32>
    %309 = arith.addf %307, %308 : vector<8x128xf32>
    %310 = math.tanh %309 : vector<8x128xf32>
    %311 = arith.mulf %305, %310 : vector<8x128xf32>
    %c0_146 = arith.constant 0 : index
    %c0_147 = arith.constant 0 : index
    %312 = vector.load %arg14[%c0_146, %c0_147] : memref<8x128xf32, #tpu.memory_space<vmem>>, vector<8x128xf32>
    tpu.vector_store %arg14[%c0_146, %c0_147], %309 {strides = array<i32>} : memref<8x128xf32, #tpu.memory_space<vmem>>, vector<8x128xf32>,
    %c0_148 = arith.constant 0 : index
    %c0_149 = arith.constant 0 : index
    %313 = vector.load %arg13[%c0_148, %c0_149] : memref<8x128xf32, #tpu.memory_space<vmem>>, vector<8x128xf32>
    tpu.vector_store %arg13[%c0_148, %c0_149], %311 {strides = array<i32>} : memref<8x128xf32, #tpu.memory_space<vmem>>, vector<8x128xf32>,
    %314 = arith.index_cast %279 : i32 to index
    %c0_150 = arith.constant 0 : index
    %315 = vector.load %arg12[%314, %c0_150] : memref<64x128xf32, #tpu.memory_space<vmem>>, vector<8x128xf32>
    tpu.vector_store %arg12[%314, %c0_150], %311 {strides = array<i32>} : memref<64x128xf32, #tpu.memory_space<vmem>>, vector<8x128xf32>,
    %c8_i32_151 = arith.constant 8 : i32
    %c0_152 = arith.constant 0 : index
    %c0_153 = arith.constant 0 : index
    %316 = vector.load %arg12[%c0_152, %c0_153] : memref<64x128xf32, #tpu.memory_space<vmem>>, vector<64x128xf32>
    %c0_154 = arith.constant 0 : index
    %c0_155 = arith.constant 0 : index
    %317 = vector.load %arg6[%c0_154, %c0_155] : memref<128x128xf32, #tpu.memory_space<vmem>>, vector<128x128xf32>
    %cst_156 = arith.constant dense<0.000000e+00> : vector<64x128xf32>
    %318 = tpu.matmul %316, %317, %cst_156 {dimension_numbers = #tpu.dot_dimension_numbers<[1], [0], [0], [1], [0, 0, 1, 1], [], []>} : vector<64x128xf32>, vector<128x128xf32>, vector<64x128xf32> -> vector<64x128xf32>
    %c0_157 = arith.constant 0 : index
    %c0_158 = arith.constant 0 : index
    %319 = vector.load %arg7[%c0_157, %c0_158] : memref<1x128xf32, #tpu.memory_space<vmem>>, vector<1x128xf32>
    %320 = vector.broadcast %319 : vector<1x128xf32> to vector<64x128xf32>
    %321 = arith.addf %318, %320 : vector<64x128xf32>
    %cst_159 = arith.constant dense<0xFF800000> : vector<64xf32>
    %322 = vector.multi_reduction <maximumf>, %321, %cst_159 [1] : vector<64x128xf32> to vector<64xf32>
    %323 = vector.shape_cast %322 : vector<64xf32> to vector<64x1xf32>
    %324 = vector.broadcast %323 : vector<64x1xf32> to vector<64x128xf32>
    %325 = arith.subf %321, %324 : vector<64x128xf32>
    %326 = math.exp %325 : vector<64x128xf32>
    %cst_160 = arith.constant dense<0.000000e+00> : vector<64xf32>
    %327 = vector.multi_reduction <add>, %326, %cst_160 [1] : vector<64x128xf32> to vector<64xf32>
    %328 = vector.shape_cast %327 : vector<64xf32> to vector<64x1xf32>
    %329 = tpu.reciprocal %328 {approx = true} : vector<64x1xf32> -> vector<64x1xf32>
    %330 = vector.broadcast %329 : vector<64x1xf32> to vector<64x128xf32>
    %331 = arith.mulf %326, %330 : vector<64x128xf32>
    %c0_161 = arith.constant 0 : index
    %c0_162 = arith.constant 0 : index
    %332 = vector.load %arg8[%c0_161, %c0_162] : memref<64x128xf32, #tpu.memory_space<vmem>>, vector<64x128xf32>
    tpu.vector_store %arg8[%c0_161, %c0_162], %331 {strides = array<i32>} : memref<64x128xf32, #tpu.memory_space<vmem>>, vector<64x128xf32>,
    %c0_163 = arith.constant 0 : index
    %c0_164 = arith.constant 0 : index
    %333 = vector.load %arg13[%c0_163, %c0_164] : memref<8x128xf32, #tpu.memory_space<vmem>>, vector<8x128xf32>
    %c0_165 = arith.constant 0 : index
    %c0_166 = arith.constant 0 : index
    %334 = vector.load %arg9[%c0_165, %c0_166] : memref<8x128xf32, #tpu.memory_space<vmem>>, vector<8x128xf32>
    tpu.vector_store %arg9[%c0_165, %c0_166], %333 {strides = array<i32>} : memref<8x128xf32, #tpu.memory_space<vmem>>, vector<8x128xf32>,
    %c0_167 = arith.constant 0 : index
    %c0_168 = arith.constant 0 : index
    %335 = vector.load %arg14[%c0_167, %c0_168] : memref<8x128xf32, #tpu.memory_space<vmem>>, vector<8x128xf32>
    %c0_169 = arith.constant 0 : index
    %c0_170 = arith.constant 0 : index
    %336 = vector.load %arg10[%c0_169, %c0_170] : memref<8x128xf32, #tpu.memory_space<vmem>>, vector<8x128xf32>
    tpu.vector_store %arg10[%c0_169, %c0_170], %335 {strides = array<i32>} : memref<8x128xf32, #tpu.memory_space<vmem>>, vector<8x128xf32>,
    return
  }
}

</mosaic_0001>

<bundles_post_ra>
// kernel: tpu_custom_call.1
= control target key start
LH: loop header
LB: loop body
LE: loop exit
PB: predicated region body
PF: predicated region fallthrough
CT: control target
= control target key end

     0   :  { %16 = vsyncpa [#allocation7], 0  ;;  %s4133_s0 = inlined_call_operand.hbm [shape: f32[8,8,128], index: 0, kind: input, shape index: {}]   ;;  %s4134_s1 = inlined_call_operand.hbm [shape: f32[8,128], index: 1, kind: input, shape index: {}]   ;;  %s4135_s2 = inlined_call_operand.hbm [shape: f32[8,128], index: 2, kind: input, shape index: {}]   ;;  %s4136_s3 = inlined_call_operand.hbm [shape: f32[128,512], index: 3, kind: input, shape index: {}]   ;;  %s4137_s4 = inlined_call_operand.hbm [shape: f32[128,512], index: 4, kind: input, shape index: {}]   ;;  %s4138_s5 = inlined_call_operand.vmem [shape: f32[1,512], index: 5, kind: input, shape index: {}]   ;;  %s4139_s6 = inlined_call_operand.hbm [shape: f32[128,128], index: 6, kind: input, shape index: {}]   ;;  %s4140_s7 = inlined_call_operand.vmem [shape: f32[1,128], index: 7, kind: input, shape index: {}]   ;;  %s4141_s8 = inlined_call_operand.hbm [shape: f32[64,128], index: 8, kind: output, shape index: {0}]   ;;  %s4142_s9 = inlined_call_operand.hbm [shape: f32[8,128], index: 9, kind: output, shape index: {1}]   ;;  %s4143_s10 = inlined_call_operand.hbm [shape: f32[8,128], index: 10, kind: output, shape index: {2}]  }
   0x1   :  { %17 = vsyncpa [#allocation10], 0 }
   0x2   :  { %18 = vsyncpa [#allocation13], 0 }
   0x3   :  { %19 = vsyncpa [#allocation16], 0 }
   0x4   :  { %20 = vsyncpa [#allocation8], 0  ;;  %s40_s15 = sshll.u32 %s4134_s1, 4  ;;  %s41_s15 = int_to_ptr.hbm [resolvable:$true] %s40_s15 }
   0x5   :  { %21 = vsyncpa [#allocation19], 0  ;;  %s2852_s16 = smov [#allocation9]   ;;  %s61_s20 = sshll.u32 %s4136_s3, 4  ;;  %s62_s20 = int_to_ptr.hbm [resolvable:$true] %s61_s20 }
   0x6   :  { %s42_s17 = sshll.u32 %s2852_s16, 4  ;;  %s2853_s21 = smov [#allocation12]   ;;  %s43_s17 = int_to_ptr.vmem [resolvable:$true] %s42_s17 }
   0x7   :  { %45 = dma.hbm_to_vmem [thread:$0]  %s41_s15, 128, %s43_s17, [#allocation10]  }
   0x8   :  { %s63_s22 = sshll.u32 %s2853_s21, 4  ;;  %s2854_s23 = smov 512   ;;  %s64_s22 = int_to_ptr.vmem [resolvable:$true] %s63_s22 }
   0x9   :  { %s2855_s24 = smov 32   ;;  %s26_s1 = sshll.u32 %s4133_s0, 4  ;;  %s27_s1 = int_to_ptr.hbm [resolvable:$true] %s26_s1 }
   0xa   :  { %69 = dma.hbm_to_vmem [thread:$0]  %s62_s20, 8192, %s64_s22, [#allocation13], %s2854_s23, %s2854_s23, %s2855_s24  }
   0xb   :  { %s2856_s27 = smov [#allocation6]   ;;  %s51_s3 = sshll.u32 %s4135_s2, 4  ;;  %s52_s3 = int_to_ptr.hbm [resolvable:$true] %s51_s3 }
   0xc   :  { %s28_s28 = sshll.u32 %s2856_s27, 4  ;;  %s2857_s11 = smov 128   ;;  %s29_s28 = int_to_ptr.vmem [resolvable:$true] %s28_s28 }
   0xd   :  { %s2858_s12 = smov 8   ;;  %s2859_s13 = smov [#allocation11]  }
   0xe   :  { %34 = dma.hbm_to_vmem [thread:$0]  %s27_s1, 1024, %s29_s28, [#allocation7], %s2857_s11, %s2857_s11, %s2858_s12  }
   0xf   :  { %s53_s14 = sshll.u32 %s2859_s13, 4  ;;  %s74_s0 = sshll.u32 %s4137_s4, 4  ;;  %s54_s14 = int_to_ptr.vmem [resolvable:$true] %s53_s14  ;;  %s75_s0 = int_to_ptr.hbm [resolvable:$true] %s74_s0 }
  0x10   :  { %56 = dma.hbm_to_vmem [thread:$0]  %s52_s3, 128, %s54_s14, [#allocation10]  }
  0x11   :  { %s89_s2 = sshll.u32 %s4139_s6, 4  ;;  %s2860_s19 = smov [#allocation14]   ;;  %s90_s2 = int_to_ptr.hbm [resolvable:$true] %s89_s2 }
  0x12   :  { %s76_s20 = sshll.u32 %s2860_s19, 4  ;;  %s2861_s21 = smov [#allocation15]   ;;  %s77_s20 = int_to_ptr.vmem [resolvable:$true] %s76_s20 }
  0x13   :  { %82 = dma.hbm_to_vmem [thread:$0]  %s75_s0, 8192, %s77_s20, [#allocation13], %s2854_s23, %s2854_s23, %s2855_s24  }
  0x14   :  { %s91_s22 = sshll.u32 %s2861_s21, 4  ;;  %s92_s22 = int_to_ptr.vmem [resolvable:$true] %s91_s22 }
  0x15   :  { %97 = dma.hbm_to_vmem [thread:$0]  %s90_s2, 2048, %s92_s22, [#allocation16], %s2857_s11, %s2857_s11, %s2858_s12  }
  0x16   :  { %2840 = dma.done.wait [#allocation7], 1024  }
  0x17   :  { %2841 = vsyncadd [#allocation7], 4294966272 }
  0x18   :  { %2842 = dma.done.wait [#allocation10], 256  }
  0x19   :  { %2843 = vsyncadd [#allocation10], 4294967040 }
  0x1a   :  { %2844 = dma.done.wait [#allocation13], 16384  }
  0x1b   :  { %2845 = vsyncadd [#allocation13], 4294950912 }
  0x1c   :  { %2846 = dma.done.wait [#allocation16], 2048  }
  0x1d   :  { %2847 = vsyncadd [#allocation16], 4294965248  ;;  %v192_v0 = vld [vmem:[#allocation12 + $0x1e0] sm:$0xff]  ;;  %v195_v1 = vld [vmem:[#allocation12 + $0x1f8] sm:$0xff]  ;;  %s2370_s1 = sshll.u32 %s4142_s9, 4  ;;  %s2863_s27 = smov [#allocation20]   ;;  %s2371_s1 = int_to_ptr.hbm [resolvable:$true] %s2370_s1 }
  0x1e   :  { %v188_v2 = vld [vmem:[#allocation12 + $0x1c0] sm:$0xff]  ;;  %206 = vmatpush.msra.mxu1 %v192_v0  ;;  %2434 = vmatpush.msra.mxu2 %v192_v0  ;;  %v191_v3 = vld [vmem:[#allocation12 + $0x1d8] sm:$0xff]  ;;  %v2988_v47 = vld [vmem:[#allocation6] sm:$0xff]  ;;  %s2379_s28 = sshll.u32 %s2863_s27, 4  ;;  %s2381_s3 = sshll.u32 %s4143_s10, 4  ;;  %s2380_s28 = int_to_ptr.vmem [resolvable:$true] %s2379_s28  ;;  %s2382_s3 = int_to_ptr.hbm [resolvable:$true] %s2381_s3 }
  0x1f   :  { %v2944_v4 = vld [vmem:[#allocation14 + $0x1e0] sm:$0xff]  ;;  %329 = vmatpush.msra.mxu3 %v195_v1  ;;  %v187_v7 = vld [vmem:[#allocation12 + $0x1b8] sm:$0xff]  ;;  %v2991_v48 = vld [vmem:[#allocation6 + $0x20] sm:$0xff]  ;;  %s2864_s9 = smov [#allocation17]   ;;  %s2356_s15 = sshll.u32 %s4141_s8, 4  ;;  %s2357_s15 = int_to_ptr.hbm [resolvable:$true] %s2356_s15 }
  0x20   :  { %478 = vmatpush.msra.mxu0 %v2944_v4  ;;  %v184_v5 = vld [vmem:[#allocation12 + $0x1a0] sm:$0xff]  ;;  %207 = vmatpush.msra.mxu1 %v188_v2  ;;  %v183_v10 = vld [vmem:[#allocation12 + $0x198] sm:$0xff]  ;;  %v193_v49 = vld [vmem:[#allocation12 + $0x1e8] sm:$0xff]  ;;  %s2354_s13 = sshll.u32 %s2864_s9, 4  ;;  %s2355_s13 = int_to_ptr.vmem [resolvable:$true] %s2354_s13 }
  0x21   :  { %v2947_v6 = vld [vmem:[#allocation14 + $0x1c0] sm:$0xff]  ;;  %2435 = vmatpush.msra.mxu2 %v188_v2  ;;  %330 = vmatpush.msra.mxu3 %v191_v3  ;;  %v179_v13 = vld [vmem:[#allocation12 + $0x178] sm:$0xff]  ;;  %v194_v50 = vld [vmem:[#allocation12 + $0x1f0] sm:$0xff] }
  0x22   :  { %v2949_v8 = vld [vmem:[#allocation14 + $0x1a0] sm:$0xff]  ;;  %479 = vmatpush.msra.mxu0 %v2947_v6  ;;  %208 = vmatpush.msra.mxu1 %v184_v5  ;;  %v175_v16 = vld [vmem:[#allocation12 + $0x158] sm:$0xff]  ;;  %v189_v52 = vld [vmem:[#allocation12 + $0x1c8] sm:$0xff] }
  0x23   :  { %v180_v9 = vld [vmem:[#allocation12 + $0x180] sm:$0xff]  ;;  %2436 = vmatpush.msra.mxu2 %v184_v5  ;;  %331 = vmatpush.msra.mxu3 %v187_v7  ;;  %v171_v19 = vld [vmem:[#allocation12 + $0x138] sm:$0xff]  ;;  %v2997_v53 = vld [vmem:[#allocation9] sm:$0xff] }
  0x24   :  { %v2952_v11 = vld [vmem:[#allocation14 + $0x180] sm:$0xff]  ;;  %480 = vmatpush.msra.mxu0 %v2949_v8  ;;  %209 = vmatpush.msra.mxu1 %v180_v9  ;;  %v167_v22 = vld [vmem:[#allocation12 + $0x118] sm:$0xff]  ;;  %v190_v54 = vld [vmem:[#allocation12 + $0x1d0] sm:$0xff] }
  0x25   :  { %v176_v12 = vld [vmem:[#allocation12 + $0x160] sm:$0xff]  ;;  %2437 = vmatpush.msra.mxu2 %v180_v9  ;;  %332 = vmatpush.msra.mxu3 %v183_v10  ;;  %v163_v25 = vld [vmem:[#allocation12 + $0xf8] sm:$0xff]  ;;  %v185_v55 = vld [vmem:[#allocation12 + $0x1a8] sm:$0xff] }
  0x26   :  { %v2955_v14 = vld [vmem:[#allocation14 + $0x160] sm:$0xff]  ;;  %481 = vmatpush.msra.mxu0 %v2952_v11  ;;  %210 = vmatpush.msra.mxu1 %v176_v12  ;;  %v159_v28 = vld [vmem:[#allocation12 + $0xd8] sm:$0xff]  ;;  %v186_v57 = vld [vmem:[#allocation12 + $0x1b0] sm:$0xff] }
  0x27   :  { %v172_v15 = vld [vmem:[#allocation12 + $0x140] sm:$0xff]  ;;  %2438 = vmatpush.msra.mxu2 %v176_v12  ;;  %333 = vmatpush.msra.mxu3 %v179_v13  ;;  %v155_v31 = vld [vmem:[#allocation12 + $0xb8] sm:$0xff]  ;;  %v181_v58 = vld [vmem:[#allocation12 + $0x188] sm:$0xff] }
  0x28   :  { %v2958_v17 = vld [vmem:[#allocation14 + $0x140] sm:$0xff]  ;;  %482 = vmatpush.msra.mxu0 %v2955_v14  ;;  %211 = vmatpush.msra.mxu1 %v172_v15  ;;  %v151_v34 = vld [vmem:[#allocation12 + $0x98] sm:$0xff]  ;;  %v182_v60 = vld [vmem:[#allocation12 + $0x190] sm:$0xff] }
  0x29   :  { %v168_v18 = vld [vmem:[#allocation12 + $0x120] sm:$0xff]  ;;  %2439 = vmatpush.msra.mxu2 %v172_v15  ;;  %334 = vmatpush.msra.mxu3 %v175_v16  ;;  %v147_v37 = vld [vmem:[#allocation12 + $0x78] sm:$0xff]  ;;  %v177_v63 = vld [vmem:[#allocation12 + $0x168] sm:$0xff] }
  0x2a   :  { %v2961_v20 = vld [vmem:[#allocation14 + $0x120] sm:$0xff]  ;;  %483 = vmatpush.msra.mxu0 %v2958_v17  ;;  %212 = vmatpush.msra.mxu1 %v168_v18  ;;  %v143_v40 = vld [vmem:[#allocation12 + $0x58] sm:$0xff]  ;;  %v178_v0 = vld [vmem:[#allocation12 + $0x170] sm:$0xff] }
  0x2b   :  { %v164_v21 = vld [vmem:[#allocation12 + $0x100] sm:$0xff]  ;;  %2440 = vmatpush.msra.mxu2 %v168_v18  ;;  %335 = vmatpush.msra.mxu3 %v171_v19  ;;  %v139_v43 = vld [vmem:[#allocation12 + $0x38] sm:$0xff]  ;;  %v173_v1 = vld [vmem:[#allocation12 + $0x148] sm:$0xff] }
  0x2c   :  { %v2964_v23 = vld [vmem:[#allocation14 + $0x100] sm:$0xff]  ;;  %484 = vmatpush.msra.mxu0 %v2961_v20  ;;  %213 = vmatpush.msra.mxu1 %v164_v21  ;;  %v135_v46 = vld [vmem:[#allocation12 + $0x18] sm:$0xff]  ;;  %v174_v3 = vld [vmem:[#allocation12 + $0x150] sm:$0xff] }
  0x2d   :  { %v160_v24 = vld [vmem:[#allocation12 + $0xe0] sm:$0xff]  ;;  %2441 = vmatpush.msra.mxu2 %v164_v21  ;;  %336 = vmatpush.msra.mxu3 %v167_v22  ;;  %v3000_v56 = vld [vmem:[#allocation14 + $0x1f8] sm:$0xff]  ;;  %v169_v5 = vld [vmem:[#allocation12 + $0x128] sm:$0xff] }
  0x2e   :  { %v2967_v26 = vld [vmem:[#allocation14 + $0xe0] sm:$0xff]  ;;  %485 = vmatpush.msra.mxu0 %v2964_v23  ;;  %214 = vmatpush.msra.mxu1 %v160_v24  ;;  %v3004_v59 = vld [vmem:[#allocation14 + $0x1d8] sm:$0xff]  ;;  %v165_v9 = vld [vmem:[#allocation12 + $0x108] sm:$0xff] }
  0x2f   :  { %v156_v27 = vld [vmem:[#allocation12 + $0xc0] sm:$0xff]  ;;  %2442 = vmatpush.msra.mxu2 %v160_v24  ;;  %337 = vmatpush.msra.mxu3 %v163_v25  ;;  %v3006_v61 = vld [vmem:[#allocation6 + $0x8] sm:$0xff]  ;;  %v166_v12 = vld [vmem:[#allocation12 + $0x110] sm:$0xff] }
  0x30   :  { %v2970_v29 = vld [vmem:[#allocation14 + $0xc0] sm:$0xff]  ;;  %486 = vmatpush.msra.mxu0 %v2967_v26  ;;  %215 = vmatpush.msra.mxu1 %v156_v27  ;;  %v3009_v62 = vld [vmem:[#allocation6 + $0x28] sm:$0xff]  ;;  %v161_v16 = vld [vmem:[#allocation12 + $0xe8] sm:$0xff] }
  0x31   :  { %v152_v30 = vld [vmem:[#allocation12 + $0xa0] sm:$0xff]  ;;  %2443 = vmatpush.msra.mxu2 %v156_v27  ;;  %338 = vmatpush.msra.mxu3 %v159_v28  ;;  %v3014_v2 = vld [vmem:[#allocation14 + $0x1b8] sm:$0xff]  ;;  %v162_v18 = vld [vmem:[#allocation12 + $0xf0] sm:$0xff] }
  0x32   :  { %v2973_v32 = vld [vmem:[#allocation14 + $0xa0] sm:$0xff]  ;;  %487 = vmatpush.msra.mxu0 %v2970_v29  ;;  %216 = vmatpush.msra.mxu1 %v152_v30  ;;  %v3018_v7 = vld [vmem:[#allocation14 + $0x198] sm:$0xff]  ;;  %v158_v21 = vld [vmem:[#allocation12 + $0xd0] sm:$0xff] }
  0x33   :  { %v148_v33 = vld [vmem:[#allocation12 + $0x80] sm:$0xff]  ;;  %2444 = vmatpush.msra.mxu2 %v152_v30  ;;  %339 = vmatpush.msra.mxu3 %v155_v31  ;;  %v3021_v10 = vld [vmem:[#allocation14 + $0x178] sm:$0xff]  ;;  %v153_v22 = vld [vmem:[#allocation12 + $0xa8] sm:$0xff] }
  0x34   :  { %v2976_v35 = vld [vmem:[#allocation14 + $0x80] sm:$0xff]  ;;  %488 = vmatpush.msra.mxu0 %v2973_v32  ;;  %217 = vmatpush.msra.mxu1 %v148_v33  ;;  %v3032_v19 = vld [vmem:[#allocation14 + $0x158] sm:$0xff]  ;;  %v149_v25 = vld [vmem:[#allocation12 + $0x88] sm:$0xff] }
  0x35   :  { %v144_v36 = vld [vmem:[#allocation12 + $0x60] sm:$0xff]  ;;  %2445 = vmatpush.msra.mxu2 %v148_v33  ;;  %340 = vmatpush.msra.mxu3 %v151_v34  ;;  %v3036_v24 = vld [vmem:[#allocation14 + $0x138] sm:$0xff]  ;;  %v150_v28 = vld [vmem:[#allocation12 + $0x90] sm:$0xff] }
  0x36   :  { %v2979_v38 = vld [vmem:[#allocation14 + $0x60] sm:$0xff]  ;;  %489 = vmatpush.msra.mxu0 %v2976_v35  ;;  %218 = vmatpush.msra.mxu1 %v144_v36  ;;  %v3039_v27 = vld [vmem:[#allocation14 + $0x118] sm:$0xff]  ;;  %v3042_v30 = vld [vmem:[#allocation6 + $0x18] sm:$0xff] }
  0x37   :  { %v140_v39 = vld [vmem:[#allocation12 + $0x40] sm:$0xff]  ;;  %2446 = vmatpush.msra.mxu2 %v144_v36  ;;  %341 = vmatpush.msra.mxu3 %v147_v37  ;;  %v3045_v31 = vld [vmem:[#allocation6 + $0x38] sm:$0xff]  ;;  %v146_v34 = vld [vmem:[#allocation12 + $0x70] sm:$0xff] }
  0x38   :  { %v2982_v41 = vld [vmem:[#allocation14 + $0x40] sm:$0xff]  ;;  %490 = vmatpush.msra.mxu0 %v2979_v38  ;;  %219 = vmatpush.msra.mxu1 %v140_v39  ;;  %v145_v33 = vld [vmem:[#allocation12 + $0x68] sm:$0xff]  ;;  %v3050_v36 = vld [vmem:[#allocation14 + $0xf8] sm:$0xff] }
  0x39   :  { %v136_v42 = vld [vmem:[#allocation12 + $0x20] sm:$0xff]  ;;  %2447 = vmatpush.msra.mxu2 %v140_v39  ;;  %342 = vmatpush.msra.mxu3 %v143_v40  ;;  %v142_v37 = vld [vmem:[#allocation12 + $0x50] sm:$0xff]  ;;  %v137_v39 = vld [vmem:[#allocation12 + $0x28] sm:$0xff] }
  0x3a   :  { %v2985_v44 = vld [vmem:[#allocation14 + $0x20] sm:$0xff]  ;;  %491 = vmatpush.msra.mxu0 %v2982_v41  ;;  %220 = vmatpush.msra.mxu1 %v136_v42  ;;  %v3054_v40 = vld [vmem:[#allocation14 + $0xd8] sm:$0xff] }
  0x3b   :  { %v132_v45 = vld [vmem:[#allocation12] sm:$0xff]  ;;  %2448 = vmatpush.msra.mxu2 %v136_v42  ;;  %343 = vmatpush.msra.mxu3 %v139_v43  ;;  %v133_v42 = vld [vmem:[#allocation12 + $0x8] sm:$0xff]  ;;  %v3057_v43 = vld [vmem:[#allocation14 + $0xb8] sm:$0xff] }
  0x3c   :  { %492 = vmatpush.msra.mxu0 %v2985_v44  ;;  %221 = vmatpush.msra.mxu1 %v132_v45  ;;  %v2994_v51 = vld [vmem:[#allocation14] sm:$0xff] }
  0x3d   :  { %2449 = vmatpush.msra.mxu2 %v132_v45  ;;  %344 = vmatpush.msra.mxu3 %v135_v46  ;;  %v3024_v13 = vld [vmem:[#allocation6 + $0x10] sm:$0xff]  ;;  %v134_v45 = vld [vmem:[#allocation12 + $0x10] sm:$0xff]  ;;  %v3061_v46 = vld [vmem:[#allocation14 + $0x1e8] sm:$0xff] }
  0x3e   :  { %222 = vmatmul.f32.vlgmr.msra.gmra.mxu1 %v2988_v47  ;;  %234 = vmatmul.f32.vlgmr.msra.gmra.mxu2 %v2991_v48  ;;  %v3027_v15 = vld [vmem:[#allocation6 + $0x30] sm:$0xff] }
  0x3f   :  { %247 = vmatpush.msrb.mxu1 %v193_v49  ;;  %345 = vmatmul.f32.vlgmr.msra.gmra.mxu3 %v2988_v47  ;;  %v3064_v49 = vld [vmem:[#allocation14 + $0x1f0] sm:$0xff] }
  0x40   :  { %288 = vmatpush.msrb.mxu2 %v194_v50  ;;  %493 = vmatpush.msra.mxu0 %v2994_v51  ;;  %v3068_v50 = vld [vmem:[#allocation14 + $0x1c8] sm:$0xff] }
  0x41   :  { %248 = vmatpush.msrb.mxu1 %v189_v52  ;;  %494 = vmatmul.f32.vlgmr.msra.gmra.mxu0 %v2997_v53  ;;  %v3074_v52 = vld [vmem:[#allocation14 + $0x1d0] sm:$0xff] }
  0x42   :  { %289 = vmatpush.msrb.mxu2 %v190_v54  ;;  %538 = vmatpush.msrb.mxu3 %v3000_v56  ;;  %v3080_v54 = vld [vmem:[#allocation14 + $0x78] sm:$0xff] }
  0x43   :  { %249 = vmatpush.msrb.mxu1 %v185_v55  ;;  %701 = vmatpush.msrb.mxu0 %v2944_v4  ;;  %v170_v4 = vld [vmem:[#allocation12 + $0x130] sm:$0xff] }
  0x44   :  { %290 = vmatpush.msrb.mxu2 %v186_v57  ;;  %539 = vmatpush.msrb.mxu3 %v3004_v59  ;;  %v3083_v55 = vld [vmem:[#allocation14 + $0x1b0] sm:$0xff]  ;;  %v3086_v57 = vld [vmem:[#allocation14 + $0x188] sm:$0xff] }
  0x45   :  { %250 = vmatpush.msrb.mxu1 %v181_v58  ;;  %702 = vmatpush.msrb.mxu0 %v2947_v6  ;;  %v157_v6 = vld [vmem:[#allocation12 + $0xc8] sm:$0xff]  ;;  %v3094_v58 = vld [vmem:[#allocation14 + $0x190] sm:$0xff] }
  0x46   :  { %291 = vmatpush.msrb.mxu2 %v182_v60  ;;  %225 = vmatmul.f32.gmra.mxu1 %v3006_v61  ;;  %v3096_v60 = vld [vmem:[#allocation14 + $0x168] sm:$0xff] }
  0x47   :  { %237 = vmatmul.f32.gmra.mxu2 %v3009_v62  ;;  %251 = vmatpush.msrb.mxu1 %v177_v63  ;;  %v3102_v63 = vld [vmem:[#allocation14 + $0x170] sm:$0xff] }
  0x48   :  { %348 = vmatmul.f32.gmra.mxu3 %v3006_v61  ;;  %292 = vmatpush.msrb.mxu2 %v178_v0  ;;  %v3108_v0 = vld [vmem:[#allocation14 + $0x38] sm:$0xff] }
  0x49   :  { %252 = vmatpush.msrb.mxu1 %v173_v1  ;;  %540 = vmatpush.msrb.mxu3 %v3014_v2  ;;  %v3112_v1 = vld [vmem:[#allocation14 + $0x150] sm:$0xff] }
  0x4a   :  { %293 = vmatpush.msrb.mxu2 %v174_v3  ;;  %703 = vmatpush.msrb.mxu0 %v2949_v8  ;;  %v154_v8 = vld [vmem:[#allocation12 + $0xb0] sm:$0xff]  ;;  %v3118_v3 = vld [vmem:[#allocation14 + $0x18] sm:$0xff] }
  0x4b   :  { %253 = vmatpush.msrb.mxu1 %v169_v5  ;;  %541 = vmatpush.msrb.mxu3 %v3018_v7  ;;  %v3122_v5 = vld [vmem:[#allocation14 + $0x130] sm:$0xff] }
  0x4c   :  { %294 = vmatpush.msrb.mxu2 %v170_v4  ;;  %704 = vmatpush.msrb.mxu0 %v2952_v11  ;;  %v141_v11 = vld [vmem:[#allocation12 + $0x48] sm:$0xff] }
  0x4d   :  { %254 = vmatpush.msrb.mxu1 %v165_v9  ;;  %542 = vmatpush.msrb.mxu3 %v3021_v10  ;;  %v3124_v4 = vld [vmem:[#allocation14 + $0x108] sm:$0xff] }
  0x4e   :  { %295 = vmatpush.msrb.mxu2 %v166_v12  ;;  %228 = vmatmul.f32.gmra.mxu1 %v3024_v13  ;;  %v3132_v9 = vld [vmem:[#allocation14 + $0xe8] sm:$0xff]  ;;  %v3137_v12 = vld [vmem:[#allocation14 + $0xf0] sm:$0xff] }
  0x4f   :  { %240 = vmatmul.f32.gmra.mxu2 %v3027_v15  ;;  %255 = vmatpush.msrb.mxu1 %v161_v16  ;;  %v3146_v16 = vld [vmem:[#allocation14 + $0xd0] sm:$0xff] }
  0x50   :  { %351 = vmatmul.f32.gmra.mxu3 %v3024_v13  ;;  %296 = vmatpush.msrb.mxu2 %v162_v18  ;;  %v3149_v18 = vld [vmem:[#allocation14 + $0xa8] sm:$0xff] }
  0x51   :  { %256 = vmatpush.msrb.mxu1 %v157_v6  ;;  %543 = vmatpush.msrb.mxu3 %v3032_v19  ;;  %v3156_v6 = vld [vmem:[#allocation14 + $0x88] sm:$0xff] }
  0x52   :  { %297 = vmatpush.msrb.mxu2 %v158_v21  ;;  %705 = vmatpush.msrb.mxu0 %v2955_v14  ;;  %v138_v14 = vld [vmem:[#allocation12 + $0x30] sm:$0xff]  ;;  %v3164_v21 = vld [vmem:[#allocation14 + $0x68] sm:$0xff] }
  0x53   :  { %257 = vmatpush.msrb.mxu1 %v153_v22  ;;  %544 = vmatpush.msrb.mxu3 %v3036_v24  ;;  %v3171_v22 = vld [vmem:[#allocation14 + $0x48] sm:$0xff] }
  0x54   :  { %298 = vmatpush.msrb.mxu2 %v154_v8  ;;  %706 = vmatpush.msrb.mxu0 %v2958_v17  ;;  %v3070_v17 = vld [vmem:[#allocation14 + $0x98] sm:$0xff]  ;;  %v3178_v8 = vld [vmem:[#allocation14 + $0x50] sm:$0xff] }
  0x55   :  { %258 = vmatpush.msrb.mxu1 %v149_v25  ;;  %545 = vmatpush.msrb.mxu3 %v3039_v27  ;;  %v3185_v25 = vld [vmem:[#allocation14 + $0x30] sm:$0xff] }
  0x56   :  { %299 = vmatpush.msrb.mxu2 %v150_v28  ;;  %231 = vmatmul.f32.gmra.mxu1 %v3042_v30  ;;  %v3189_v28 = vld [vmem:[#allocation14 + $0x8] sm:$0xff] }
  0x57   :  { %243 = vmatmul.f32.gmra.mxu2 %v3045_v31  ;;  %259 = vmatpush.msrb.mxu1 %v145_v33 }
  0x58   :  { %354 = vmatmul.f32.gmra.mxu3 %v3042_v30  ;;  %300 = vmatpush.msrb.mxu2 %v146_v34 }
  0x59   :  { %260 = vmatpush.msrb.mxu1 %v141_v11  ;;  %546 = vmatpush.msrb.mxu3 %v3050_v36 }
  0x5a   :  { %301 = vmatpush.msrb.mxu2 %v142_v37  ;;  %707 = vmatpush.msrb.mxu0 %v2961_v20  ;;  %v3077_v20 = vld [vmem:[#allocation14 + $0x1a8] sm:$0xff] }
  0x5b   :  { %261 = vmatpush.msrb.mxu1 %v137_v39  ;;  %547 = vmatpush.msrb.mxu3 %v3054_v40 }
  0x5c   :  { %302 = vmatpush.msrb.mxu2 %v138_v14  ;;  %708 = vmatpush.msrb.mxu0 %v2964_v23  ;;  %v3105_v23 = vld [vmem:[#allocation14 + $0x148] sm:$0xff] }
  0x5d   :  { %262 = vmatpush.msrb.mxu1 %v133_v42  ;;  %548 = vmatpush.msrb.mxu3 %v3057_v43 }
  0x5e   :  { %303 = vmatpush.msrb.mxu2 %v134_v45  ;;  %263 = vmatmul.f32.vlgmr.msrb.gmra.mxu1 %v2988_v47 }
  0x5f   :  { %304 = vmatmul.f32.vlgmr.msrb.gmra.mxu2 %v2988_v47  ;;  %498 = vmatpush.msra.mxu1 %v3061_v46  ;;  %v3089_v47 = vld [vmem:[#allocation14 + $0x58] sm:$0xff] }
  0x60   :  { %357 = vmatmul.f32.gmra.mxu3 %v2991_v48  ;;  %518 = vmatpush.msra.mxu2 %v3064_v49 }
  0x61   :  { %499 = vmatpush.msra.mxu1 %v3068_v50  ;;  %549 = vmatpush.msrb.mxu3 %v3070_v17 }
  0x62   :  { %519 = vmatpush.msra.mxu2 %v3074_v52  ;;  %709 = vmatpush.msrb.mxu0 %v2967_v26  ;;  %v3115_v26 = vld [vmem:[#allocation14 + $0x128] sm:$0xff] }
  0x63   :  { %500 = vmatpush.msra.mxu1 %v3077_v20  ;;  %550 = vmatpush.msrb.mxu3 %v3080_v54 }
  0x64   :  { %520 = vmatpush.msra.mxu2 %v3083_v55  ;;  %710 = vmatpush.msrb.mxu0 %v2970_v29  ;;  %v3141_v29 = vld [vmem:[#allocation14 + $0xc8] sm:$0xff] }
  0x65   :  { %501 = vmatpush.msra.mxu1 %v3086_v57  ;;  %551 = vmatpush.msrb.mxu3 %v3089_v47 }
  0x66   :  { %266 = vmatmul.f32.gmra.mxu1 %v3006_v61  ;;  %521 = vmatpush.msra.mxu2 %v3094_v58 }
  0x67   :  { %307 = vmatmul.f32.gmra.mxu2 %v3006_v61  ;;  %502 = vmatpush.msra.mxu1 %v3096_v60  ;;  %v3130_v61 = vld [vmem:[#allocation14 + $0x110] sm:$0xff] }
  0x68   :  { %360 = vmatmul.f32.gmra.mxu3 %v3009_v62  ;;  %522 = vmatpush.msra.mxu2 %v3102_v63 }
  0x69   :  { %503 = vmatpush.msra.mxu1 %v3105_v23  ;;  %552 = vmatpush.msrb.mxu3 %v3108_v0 }
  0x6a   :  { %523 = vmatpush.msra.mxu2 %v3112_v1  ;;  %711 = vmatpush.msrb.mxu0 %v2973_v32  ;;  %v3153_v32 = vld [vmem:[#allocation14 + $0xb0] sm:$0xff] }
  0x6b   :  { %504 = vmatpush.msra.mxu1 %v3115_v26  ;;  %553 = vmatpush.msrb.mxu3 %v3118_v3 }
  0x6c   :  { %524 = vmatpush.msra.mxu2 %v3122_v5  ;;  %712 = vmatpush.msrb.mxu0 %v2976_v35  ;;  %v3176_v35 = vld [vmem:[#allocation14 + $0x70] sm:$0xff] }
  0x6d   :  { %761 = vmatpush.msra.mxu3 %v3000_v56  ;;  %505 = vmatpush.msra.mxu1 %v3124_v4 }
  0x6e   :  { %269 = vmatmul.f32.gmra.mxu1 %v3024_v13  ;;  %525 = vmatpush.msra.mxu2 %v3130_v61 }
  0x6f   :  { %310 = vmatmul.f32.gmra.mxu2 %v3024_v13  ;;  %506 = vmatpush.msra.mxu1 %v3132_v9  ;;  %v3161_v13 = vld [vmem:[#allocation14 + $0x90] sm:$0xff] }
  0x70   :  { %363 = vmatmul.f32.gmra.mxu3 %v3027_v15  ;;  %526 = vmatpush.msra.mxu2 %v3137_v12 }
  0x71   :  { %507 = vmatpush.msra.mxu1 %v3141_v29  ;;  %762 = vmatpush.msra.mxu3 %v3004_v59 }
  0x72   :  { %527 = vmatpush.msra.mxu2 %v3146_v16  ;;  %713 = vmatpush.msrb.mxu0 %v2979_v38  ;;  %v3181_v38 = vld [vmem:[#allocation14 + $0x28] sm:$0xff] }
  0x73   :  { %508 = vmatpush.msra.mxu1 %v3149_v18  ;;  %763 = vmatpush.msra.mxu3 %v3014_v2 }
  0x74   :  { %528 = vmatpush.msra.mxu2 %v3153_v32  ;;  %714 = vmatpush.msrb.mxu0 %v2982_v41 }
  0x75   :  { %509 = vmatpush.msra.mxu1 %v3156_v6  ;;  %764 = vmatpush.msra.mxu3 %v3018_v7 }
  0x76   :  { %272 = vmatmul.f32.gmra.mxu1 %v3042_v30  ;;  %529 = vmatpush.msra.mxu2 %v3161_v13 }
  0x77   :  { %313 = vmatmul.f32.gmra.mxu2 %v3042_v30  ;;  %510 = vmatpush.msra.mxu1 %v3164_v21  ;;  %v3193_v30 = vld [vmem:[#allocation14 + $0x10] sm:$0xff] }
  0x78   :  { %366 = vmatmul.f32.gmra.mxu3 %v3045_v31  ;;  %530 = vmatpush.msra.mxu2 %v3176_v35 }
  0x79   :  { %511 = vmatpush.msra.mxu1 %v3171_v22  ;;  %765 = vmatpush.msra.mxu3 %v3021_v10 }
  0x7a   :  { %531 = vmatpush.msra.mxu2 %v3178_v8  ;;  %715 = vmatpush.msrb.mxu0 %v2985_v44  ;;  %v196_v44 = vld [vmem:[%s4138_s5] sm:$0xf] }
  0x7b   :  { %512 = vmatpush.msra.mxu1 %v3181_v38  ;;  %766 = vmatpush.msra.mxu3 %v3032_v19  ;;  %v199_v45 = vperm.slane %v196_v44, 1 }
  0x7c   :  { %532 = vmatpush.msra.mxu2 %v3185_v25  ;;  %716 = vmatpush.msrb.mxu0 %v2994_v51 }
  0x7d   :  { %513 = vmatpush.msra.mxu1 %v3189_v28  ;;  %767 = vmatpush.msra.mxu3 %v3036_v24 }
  0x7e   :  { %275 = vmatmul.f32.gmra.mxu1 %v2991_v48  ;;  %533 = vmatpush.msra.mxu2 %v3193_v30 }
  0x7f   :  { %316 = vmatmul.f32.gmra.mxu2 %v2991_v48  ;;  %721 = vmatpush.msrb.mxu1 %v3061_v46  ;;  %v198_v48 = vperm.slane %v196_v44, 0 }
  0x80   :  { %554 = vmatmul.f32.vlgmr.msrb.gmra.mxu3 %v2997_v53  ;;  %741 = vmatpush.msrb.mxu2 %v3064_v49 }
  0x81   :  { %722 = vmatpush.msrb.mxu1 %v3068_v50  ;;  %768 = vmatpush.msra.mxu3 %v3039_v27 }
  0x82   :  { %742 = vmatpush.msrb.mxu2 %v3074_v52 }
  0x83   :  { %723 = vmatpush.msrb.mxu1 %v3077_v20  ;;  %769 = vmatpush.msra.mxu3 %v3050_v36 }
  0x84   :  { %743 = vmatpush.msrb.mxu2 %v3083_v55 }
  0x85   :  { %724 = vmatpush.msrb.mxu1 %v3086_v57  ;;  %770 = vmatpush.msra.mxu3 %v3054_v40 }
  0x86   :  { %278 = vmatmul.f32.gmra.mxu1 %v3009_v62  ;;  %744 = vmatpush.msrb.mxu2 %v3094_v58 }
  0x87   :  { %319 = vmatmul.f32.gmra.mxu2 %v3009_v62  ;;  %725 = vmatpush.msrb.mxu1 %v3096_v60 }
  0x88   :  { %745 = vmatpush.msrb.mxu2 %v3102_v63  ;;  %771 = vmatpush.msra.mxu3 %v3057_v43 }
  0x89   :  { %726 = vmatpush.msrb.mxu1 %v3105_v23 }
  0x8a   :  { %746 = vmatpush.msrb.mxu2 %v3112_v1  ;;  %772 = vmatpush.msra.mxu3 %v3070_v17 }
  0x8b   :  { %727 = vmatpush.msrb.mxu1 %v3115_v26 }
  0x8c   :  { %747 = vmatpush.msrb.mxu2 %v3122_v5  ;;  %773 = vmatpush.msra.mxu3 %v3080_v54 }
  0x8d   :  { %728 = vmatpush.msrb.mxu1 %v3124_v4 }
  0x8e   :  { %281 = vmatmul.f32.gmra.mxu1 %v3027_v15  ;;  %748 = vmatpush.msrb.mxu2 %v3130_v61 }
  0x8f   :  { %322 = vmatmul.f32.gmra.mxu2 %v3027_v15  ;;  %729 = vmatpush.msrb.mxu1 %v3132_v9 }
  0x90   :  { %749 = vmatpush.msrb.mxu2 %v3137_v12  ;;  %774 = vmatpush.msra.mxu3 %v3089_v47 }
  0x91   :  { %730 = vmatpush.msrb.mxu1 %v3141_v29 }
  0x92   :  { %750 = vmatpush.msrb.mxu2 %v3146_v16  ;;  %775 = vmatpush.msra.mxu3 %v3108_v0 }
  0x93   :  { %731 = vmatpush.msrb.mxu1 %v3149_v18 }
  0x94   :  { %751 = vmatpush.msrb.mxu2 %v3153_v32  ;;  %776 = vmatpush.msra.mxu3 %v3118_v3 }
  0x95   :  { %732 = vmatpush.msrb.mxu1 %v3156_v6 }
  0x96   :  { %985 = vmatpush.msrb.mxu3 %v3000_v56  ;;  %284 = vmatmul.f32.gmra.mxu1 %v3045_v31 }
  0x97   :  { %752 = vmatpush.msrb.mxu2 %v3161_v13  ;;  %733 = vmatpush.msrb.mxu1 %v3164_v21 }
  0x98   :  { %325 = vmatmul.f32.gmra.mxu2 %v3045_v31  ;;  %986 = vmatpush.msrb.mxu3 %v3004_v59 }
  0x99   :  { %753 = vmatpush.msrb.mxu2 %v3176_v35  ;;  %734 = vmatpush.msrb.mxu1 %v3171_v22 }
  0x9a   :  { %987 = vmatpush.msrb.mxu3 %v3014_v2  ;;  %v201_v2 = vperm.slane %v196_v44, 3 }
  0x9b   :  { %754 = vmatpush.msrb.mxu2 %v3178_v8  ;;  %735 = vmatpush.msrb.mxu1 %v3181_v38 }
  0x9c   :  { %988 = vmatpush.msrb.mxu3 %v3018_v7 }
  0x9d   :  { %755 = vmatpush.msrb.mxu2 %v3185_v25  ;;  %736 = vmatpush.msrb.mxu1 %v3189_v28 }
  0x9e   :  { %514 = vmatmul.f32.vlgmr.msra.gmra.mxu1 %v2997_v53  ;;  %989 = vmatpush.msrb.mxu3 %v3021_v10 }
  0x9f   :  { %756 = vmatpush.msrb.mxu2 %v3193_v30  ;;  %945 = vmatpush.msra.mxu1 %v3061_v46 }
  0xa0   :  { %534 = vmatmul.f32.vlgmr.msra.gmra.mxu2 %v2997_v53  ;;  %990 = vmatpush.msrb.mxu3 %v3032_v19 }
  0xa1   :  { %965 = vmatpush.msra.mxu2 %v3064_v49  ;;  %946 = vmatpush.msra.mxu1 %v3068_v50 }
  0xa2   :  { %991 = vmatpush.msrb.mxu3 %v3036_v24 }
  0xa3   :  { %966 = vmatpush.msra.mxu2 %v3074_v52  ;;  %947 = vmatpush.msra.mxu1 %v3077_v20  ;;  %v200_v20 = vperm.slane %v196_v44, 2 }
  0xa4   :  { %992 = vmatpush.msrb.mxu3 %v3039_v27 }
  0xa5   :  { %967 = vmatpush.msra.mxu2 %v3083_v55  ;;  %948 = vmatpush.msra.mxu1 %v3086_v57 }
  0xa6   :  { %993 = vmatpush.msrb.mxu3 %v3050_v36 }
  0xa7   :  { %968 = vmatpush.msra.mxu2 %v3094_v58  ;;  %949 = vmatpush.msra.mxu1 %v3096_v60 }
  0xa8   :  { %994 = vmatpush.msrb.mxu3 %v3054_v40 }
  0xa9   :  { %969 = vmatpush.msra.mxu2 %v3102_v63  ;;  %950 = vmatpush.msra.mxu1 %v3105_v23 }
  0xaa   :  { %995 = vmatpush.msrb.mxu3 %v3057_v43 }
  0xab   :  { %970 = vmatpush.msra.mxu2 %v3112_v1  ;;  %951 = vmatpush.msra.mxu1 %v3115_v26 }
  0xac   :  { %996 = vmatpush.msrb.mxu3 %v3070_v17 }
  0xad   :  { %971 = vmatpush.msra.mxu2 %v3122_v5  ;;  %952 = vmatpush.msra.mxu1 %v3124_v4 }
  0xae   :  { %997 = vmatpush.msrb.mxu3 %v3080_v54 }
  0xaf   :  { %972 = vmatpush.msra.mxu2 %v3130_v61  ;;  %953 = vmatpush.msra.mxu1 %v3132_v9 }
  0xb0   :  { %998 = vmatpush.msrb.mxu3 %v3089_v47 }
  0xb1   :  { %973 = vmatpush.msra.mxu2 %v3137_v12  ;;  %954 = vmatpush.msra.mxu1 %v3141_v29 }
  0xb2   :  { %999 = vmatpush.msrb.mxu3 %v3108_v0 }
  0xb3   :  { %974 = vmatpush.msra.mxu2 %v3146_v16  ;;  %955 = vmatpush.msra.mxu1 %v3149_v18 }
  0xb4   :  { %1000 = vmatpush.msrb.mxu3 %v3118_v3 }
  0xb5   :  { %975 = vmatpush.msra.mxu2 %v3153_v32  ;;  %956 = vmatpush.msra.mxu1 %v3156_v6 }
  0xb7   :  { %976 = vmatpush.msra.mxu2 %v3161_v13  ;;  %957 = vmatpush.msra.mxu1 %v3164_v21 }
  0xb9   :  { %977 = vmatpush.msra.mxu2 %v3176_v35  ;;  %958 = vmatpush.msra.mxu1 %v3171_v22 }
  0xbb   :  { %978 = vmatpush.msra.mxu2 %v3178_v8  ;;  %v223_v41 = vpop.f32.mrf.mxu1  ;;  %959 = vmatpush.msra.mxu1 %v3181_v38 }
  0xbc   :  { %v224_v6 = vadd.f32 %v223_v41, %v198_v48 }
  0xbd   :  { %979 = vmatpush.msra.mxu2 %v3185_v25  ;;  %960 = vmatpush.msra.mxu1 %v3189_v28 }
  0xbe   :  { %v495_v21 = vpop.f32.mrf.mxu0 }
  0xbf   :  { %980 = vmatpush.msra.mxu2 %v3193_v30  ;;  %v558_v22 = vadd.f32 %v495_v21, %v224_v6 }
  0xc1   :  { %v235_v51 = vpop.f32.mrf.mxu2  ;;  %v2410_v25 = vmul.f32 -1.442695, %v558_v22 }
  0xc2   :  { %v3305_v53 = vadd.f32 %v235_v51, %v198_v48  ;;  %v346_v56 = vpop.f32.mrf.mxu3 }
  0xc3   :  { %v226_v59 = vpop.f32.mrf.mxu1  ;;  %2464 = vpow2.f32 %v2410_v25  ;;  %v347_v44 = vadd.f32 %v346_v56, %v201_v2 }
  0xc4   :  { %4150 = vst [vmem:[#allocation27_spill] sm:$0xff] %v3305_v53  ;;  %v3307_v62 = vadd.f32 %v226_v59, %v198_v48 }
  0xca   :  { %v238_v7 = vpop.f32.mrf.mxu2 }
  0xcb   :  { %v3309_v10 = vadd.f32 %v238_v7, %v198_v48  ;;  %v349_v15 = vpop.f32.mrf.mxu3  ;;  %v229_v19 = vpop.f32.mrf.mxu1 }
  0xcc   :  { %v3311_v24 = vadd.f32 %v349_v15, %v201_v2  ;;  %v3313_v27 = vadd.f32 %v229_v19, %v198_v48 }
  0xcd   :  { %4151 = vst [vmem:[#allocation28_spill] sm:$0xff] %v3309_v10 }
  0xd2   :  { %v241_v31 = vpop.f32.mrf.mxu2 }
  0xd3   :  { %v3315_v33 = vadd.f32 %v241_v31, %v198_v48  ;;  %v352_v34 = vpop.f32.mrf.mxu3  ;;  %v232_v11 = vpop.f32.mrf.mxu1 }
  0xd4   :  { %v3317_v36 = vadd.f32 %v352_v34, %v201_v2  ;;  %v3319_v37 = vadd.f32 %v232_v11, %v198_v48 }
  0xd5   :  { %4152 = vst [vmem:[#allocation29_spill] sm:$0xff] %v3315_v33  ;;  %v3602_v33 = vld [vmem:[#allocation14 + $0x8] sm:$0xff] }
  0xd6   :  { %4153 = vst [vmem:[#allocation30_spill] sm:$0xff] %v3319_v37 }
  0xda   :  { %v244_v39 = vpop.f32.mrf.mxu2 }
  0xdb   :  { %v3321_v40 = vadd.f32 %v244_v39, %v198_v48  ;;  %v355_v14 = vpop.f32.mrf.mxu3  ;;  %v264_v42 = vpop.f32.mrf.mxu1 }
  0xdc   :  { %v3323_v43 = vadd.f32 %v355_v14, %v201_v2  ;;  %v2465_v48 = vpop.eup %2464  ;;  %v265_v34 = vadd.f32 %v264_v42, %v199_v45 }
  0xdd   :  { %4154 = vst [vmem:[#allocation31_spill] sm:$0xff] %v3321_v40  ;;  %v565_v31 = vadd.f32 1.0, %v2465_v48  ;;  %v3585_v40 = vld [vmem:[#allocation14 + $0x50] sm:$0xff] }
  0xde   :  { %4155 = vst [vmem:[#allocation32_spill] sm:$0xff] %v3323_v43 }
  0xdf   :  { %vm571_vm1 = vweird.f32 %v565_v31  ;;  %v575_v25 = vand.u32 2147483647, %v565_v31 }
  0xe1   :  { %vm576_vm6 = vcmp.eq.f32.partialorder %v575_v25, 8.507059e+37 }
  0xe2   :  { %v3325_v46 = vpop.f32.mrf.mxu2 }
  0xe3   :  { %v358_v49 = vpop.f32.mrf.mxu3  ;;  %v267_v50 = vpop.f32.mrf.mxu1  ;;  %v306_v42 = vadd.f32 %v3325_v46, %v200_v20 }
  0xe4   :  { %v3327_v17 = vadd.f32 %v358_v49, %v201_v2  ;;  %v3329_v52 = vadd.f32 %v267_v50, %v199_v45 }
  0xe6   :  { %4156 = vst [vmem:[#allocation33_spill] sm:$0xff] %v3327_v17 }
  0xea   :  { %v308_v54 = vpop.f32.mrf.mxu2 }
  0xeb   :  { %v3331_v55 = vadd.f32 %v308_v54, %v200_v20  ;;  %v361_v57 = vpop.f32.mrf.mxu3  ;;  %v270_v47 = vpop.f32.mrf.mxu1 }
  0xec   :  { %v3333_v58 = vadd.f32 %v361_v57, %v201_v2  ;;  %v3335_v60 = vadd.f32 %v270_v47, %v199_v45 }
  0xee   :  { %4157 = vst [vmem:[#allocation34_spill] sm:$0xff] %v3333_v58 }
  0xf2   :  { %v311_v63 = vpop.f32.mrf.mxu2 }
  0xf3   :  { %v3337_v23 = vadd.f32 %v311_v63, %v200_v20  ;;  %v364_v0 = vpop.f32.mrf.mxu3  ;;  %v273_v1 = vpop.f32.mrf.mxu1 }
  0xf4   :  { %v3339_v26 = vadd.f32 %v364_v0, %v201_v2  ;;  %v3341_v3 = vadd.f32 %v273_v1, %v199_v45 }
  0xf6   :  { %4158 = vst [vmem:[#allocation35_spill] sm:$0xff] %v3339_v26  ;;  %v3599_v26 = vld [vmem:[#allocation14 + $0x38] sm:$0xff] }
  0xf7   :  { %4159 = vst [vmem:[#allocation36_spill] sm:$0xff] %v3341_v3 }
  0xfa   :  { %v314_v5 = vpop.f32.mrf.mxu2 }
  0xfb   :  { %v3343_v4 = vadd.f32 %v314_v5, %v200_v20  ;;  %v367_v61 = vpop.f32.mrf.mxu3  ;;  %v276_v9 = vpop.f32.mrf.mxu1 }
  0xfc   :  { %v3345_v12 = vadd.f32 %v367_v61, %v201_v2  ;;  %v3347_v29 = vadd.f32 %v276_v9, %v199_v45 }
  0xfd   :  { %4160 = vst [vmem:[#allocation37_spill] sm:$0xff] %v3343_v4 }
  0xfe   :  { %4161 = vst [vmem:[#allocation38_spill] sm:$0xff] %v3345_v12 }
  0xff   :  { %4162 = vst [vmem:[#allocation39_spill] sm:$0xff] %v3347_v29 }
 0x102   :  { %v317_v16 = vpop.f32.mrf.mxu2 }
 0x103   :  { %v3349_v18 = vadd.f32 %v317_v16, %v200_v20  ;;  %v279_v32 = vpop.f32.mrf.mxu1  ;;  %v555_v30 = vpop.f32.mrf.mxu3 }
 0x104   :  { %v3351_v13 = vadd.f32 %v279_v32, %v199_v45  ;;  %v561_v59 = vadd.f32 %v555_v30, %v347_v44 }
 0x105   :  { %4163 = vst [vmem:[#allocation40_spill] sm:$0xff] %v3349_v18 }
 0x106   :  { %4164 = vst [vmem:[#allocation41_spill] sm:$0xff] %v3351_v13  ;;  %v2412_v19 = vmul.f32 -1.442695, %v561_v59 }
 0x108   :  { %2466 = vpow2.f32 %v2412_v19 }
 0x109   :  { %2468 = vrcp.f32 %v565_v31 }
 0x10a   :  { %v320_v35 = vpop.f32.mrf.mxu2 }
 0x10b   :  { %v3353_v8 = vadd.f32 %v320_v35, %v200_v20  ;;  %v282_v38 = vpop.f32.mrf.mxu1  ;;  %v577_v35 = vand.u32 2147483648, %v565_v31 }
 0x10c   :  { %v3355_v28 = vadd.f32 %v282_v38, %v199_v45 }
 0x10d   :  { %4165 = vst [vmem:[#allocation42_spill] sm:$0xff] %v3353_v8  ;;  %v578_v48 = vor.u32 1.1754944e-38, %v577_v35  ;;  %v3604_v8 = vld [vmem:[#allocation14 + $0x10] sm:$0xff] }
 0x10e   :  { %4166 = vst [vmem:[#allocation43_spill] sm:$0xff] %v3355_v28  ;;  %v2467_v56 = vpop.eup %2466 }
 0x10f   :  { %v2469_v2 = vpop.eup %2468  ;;  %v604_v54 = vadd.f32 1.0, %v2467_v56 }
 0x110   :  { %v567_v47 = vmul.f32 %v2469_v2, %v565_v31  ;;  %vm572_vm0 = vweird.f32 %v2469_v2 }
 0x111   :  { %vm573_vm3 = vmor %vm571_vm1, %vm572_vm0  ;;  %vm610_vm9 = vweird.f32 %v604_v54 }
 0x112   :  { %v323_v51 = vpop.f32.mrf.mxu2  ;;  %v568_v0 = vsub.f32 1.0, %v567_v47 }
 0x113   :  { %v3357_v7 = vadd.f32 %v323_v51, %v200_v20  ;;  %v285_v15 = vpop.f32.mrf.mxu1 }
 0x114   :  { %v3359_v41 = vadd.f32 %v285_v15, %v199_v45  ;;  %v569_v61 = vmul.f32 %v2469_v2, %v568_v0  ;;  %v404_v15 = vld [vmem:[#allocation11] sm:$0xff] }
 0x115   :  { %4167 = vst [vmem:[#allocation44_spill] sm:$0xff] %v3357_v7  ;;  %v3593_v7 = vld [vmem:[#allocation14 + $0x28] sm:$0xff] }
 0x116   :  { %4168 = vst [vmem:[#allocation45_spill] sm:$0xff] %v3359_v41  ;;  %v570_v21 = vadd.f32 %v2469_v2, %v569_v61  ;;  %v3382_v61 = vld [vmem:[#allocation14 + $0x180] sm:$0xff]  ;;  %v3583_v41 = vld [vmem:[#allocation14 + $0x48] sm:$0xff] }
 0x118   :  { %v574_v46 = vsel %vm573_vm3, %v2469_v2, %v570_v21  ;;  %v614_v2 = vand.u32 2147483647, %v604_v54  ;;  %v3397_v21 = vld [vmem:[#allocation14 + $0xe0] sm:$0xff] }
 0x11a   :  { %vm615_vm11 = vcmp.eq.f32.partialorder %v614_v2, 8.507059e+37 }
 0x11b   :  { %v326_v11 = vpop.f32.mrf.mxu2  ;;  %v515_v14 = vpop.f32.mrf.mxu1 }
 0x11c   :  { %v3361_v39 = vadd.f32 %v326_v11, %v200_v20  ;;  %v559_v49 = vadd.f32 %v515_v14, %v265_v34  ;;  %v579_v11 = vsel %vm576_vm6, %v578_v48, %v574_v46  ;;  %v3417_v48 = vld [vmem:[#allocation14 + $0x20] sm:$0xff] }
 0x11e   :  { %4169 = vst [vmem:[#allocation46_spill] sm:$0xff] %v3361_v39  ;;  %v2411_v50 = vmul.f32 -1.442695, %v559_v49 }
 0x120   :  { %2470 = vpow2.f32 %v2411_v50 }
 0x121   :  { %2472 = vrcp.f32 %v604_v54 }
 0x123   :  { %v535_v1 = vpop.f32.mrf.mxu2 }
 0x124   :  { %v560_v45 = vadd.f32 %v535_v1, %v306_v42 }
 0x126   :  { %v2471_v57 = vpop.eup %2470 }
 0x127   :  { %v584_v63 = vadd.f32 1.0, %v2471_v57  ;;  %v2473_v5 = vpop.eup %2472  ;;  %v616_v57 = vand.u32 2147483648, %v604_v54 }
 0x128   :  { %v606_v32 = vmul.f32 %v2473_v5, %v604_v54  ;;  %vm611_vm8 = vweird.f32 %v2473_v5  ;;  %v3376_v54 = vld [vmem:[#allocation14 + $0x1c0] sm:$0xff] }
 0x129   :  { %2474 = vrcp.f32 %v584_v63  ;;  %v596_v22 = vand.u32 2147483648, %v584_v63  ;;  %v594_v30 = vand.u32 2147483647, %v584_v63  ;;  %vm590_vm4 = vweird.f32 %v584_v63  ;;  %vm612_vm10 = vmor %vm610_vm9, %vm611_vm8 }
 0x12a   :  { %2476 = vtanh.f32 %v560_v45  ;;  %v607_v44 = vsub.f32 1.0, %v606_v32  ;;  %v3373_v45 = vld [vmem:[#allocation14 + $0x1e0] sm:$0xff] }
 0x12b   :  { %v597_v59 = vor.u32 1.1754944e-38, %v596_v22  ;;  %vm595_vm7 = vcmp.eq.f32.partialorder %v594_v30, 8.507059e+37  ;;  %925 = vmatpush.msra.mxu0 %v3373_v45  ;;  %v3391_v32 = vld [vmem:[#allocation14 + $0x120] sm:$0xff] }
 0x12c   :  { %v608_v34 = vmul.f32 %v2473_v5, %v607_v44  ;;  %v3405_v44 = vld [vmem:[#allocation14 + $0xa0] sm:$0xff] }
 0x12d   :  { %926 = vmatpush.msra.mxu0 %v3376_v54 }
 0x12e   :  { %v609_v56 = vadd.f32 %v2473_v5, %v608_v34  ;;  %v3420_v34 = vld [vmem:[#allocation14] sm:$0xff] }
 0x12f   :  { %v2475_v9 = vpop.eup %2474 }
 0x130   :  { %v586_v16 = vmul.f32 %v2475_v9, %v584_v63  ;;  %vm591_vm2 = vweird.f32 %v2475_v9  ;;  %v2477_v51 = vpop.eup %2476  ;;  %v613_v47 = vsel %vm612_vm10, %v2473_v5, %v609_v56  ;;  %v617_v63 = vor.u32 1.1754944e-38, %v616_v57  ;;  %v3379_v5 = vld [vmem:[#allocation14 + $0x1a0] sm:$0xff] }
 0x131   :  { %vm592_vm5 = vmor %vm590_vm4, %vm591_vm2  ;;  %v622_v50 = vmul.f32 %v2477_v51, %v579_v11  ;;  %927 = vmatpush.msra.mxu0 %v3379_v5  ;;  %v3408_v51 = vld [vmem:[#allocation14 + $0x80] sm:$0xff] }
 0x132   :  { %v587_v6 = vsub.f32 1.0, %v586_v16  ;;  %v618_v1 = vsel %vm615_vm11, %v617_v63, %v613_v47  ;;  %v3388_v16 = vld [vmem:[#allocation14 + $0x140] sm:$0xff] }
 0x133   :  { %928 = vmatpush.msra.mxu0 %v3382_v61 }
 0x134   :  { %v588_v38 = vmul.f32 %v2475_v9, %v587_v6  ;;  %v3394_v6 = vld [vmem:[#allocation14 + $0x100] sm:$0xff] }
 0x136   :  { %v589_v20 = vadd.f32 %v2475_v9, %v588_v38  ;;  %v3400_v38 = vld [vmem:[#allocation14 + $0xc0] sm:$0xff] }
 0x138   :  { %v593_v19 = vsel %vm592_vm5, %v2475_v9, %v589_v20  ;;  %v3385_v9 = vld [vmem:[#allocation14 + $0x160] sm:$0xff] }
 0x139   :  { %v598_v14 = vsel %vm595_vm7, %v597_v59, %v593_v19  ;;  %929 = vmatpush.msra.mxu0 %v3385_v9  ;;  %v3410_v59 = vld [vmem:[#allocation14 + $0x60] sm:$0xff] }
 0x13a   :  { %v621_v49 = vmul.f32 %v598_v14, %v404_v15  ;;  %v3413_v15 = vld [vmem:[#allocation14 + $0x40] sm:$0xff] }
 0x13b   :  { %930 = vmatpush.msra.mxu0 %v3388_v16 }
 0x13c   :  { %v3364_v31 = vadd.f32 %v622_v50, %v621_v49 }
 0x13d   :  { %931 = vmatpush.msra.mxu0 %v3391_v32 }
 0x13e   :  { %2478 = vtanh.f32 %v3364_v31 }
 0x13f   :  { %932 = vmatpush.msra.mxu0 %v3394_v6 }
 0x141   :  { %933 = vmatpush.msra.mxu0 %v3397_v21 }
 0x143   :  { %934 = vmatpush.msra.mxu0 %v3400_v38 }
 0x144   :  { %v2479_v0 = vpop.eup %2478 }
 0x145   :  { %v3367_v42 = vmul.f32 %v2479_v0, %v618_v1  ;;  %935 = vmatpush.msra.mxu0 %v3405_v44 }
 0x147   :  { %4170 = vst [vmem:[#allocation47_spill] sm:$0xff] %v3367_v42  ;;  %717 = vmatmul.f32.vlgmr.msrb.gmra.mxu0 %v3367_v42  ;;  %737 = vmatmul.f32.vlgmr.msrb.gmra.mxu1 %v3367_v42 }
 0x148   :  { %757 = vmatmul.f32.vlgmr.msrb.gmra.mxu2 %v3367_v42  ;;  %777 = vmatmul.f32.vlgmr.msra.gmra.mxu3 %v3367_v42 }
 0x149   :  { %936 = vmatpush.msra.mxu0 %v3408_v51 }
 0x14b   :  { %937 = vmatpush.msra.mxu0 %v3410_v59 }
 0x14d   :  { %938 = vmatpush.msra.mxu0 %v3413_v15 }
 0x14f   :  { %939 = vmatpush.msra.mxu0 %v3417_v48 }
 0x151   :  { %940 = vmatpush.msra.mxu0 %v3420_v34 }
 0x153   :  { %1149 = vmatpush.msrb.mxu0 %v3373_v45 }
 0x155   :  { %1150 = vmatpush.msrb.mxu0 %v3376_v54 }
 0x157   :  { %1151 = vmatpush.msrb.mxu0 %v3379_v5 }
 0x159   :  { %1152 = vmatpush.msrb.mxu0 %v3382_v61 }
 0x15b   :  { %1153 = vmatpush.msrb.mxu0 %v3385_v9 }
 0x15d   :  { %1154 = vmatpush.msrb.mxu0 %v3388_v16 }
 0x15f   :  { %1155 = vmatpush.msrb.mxu0 %v3391_v32 }
 0x161   :  { %1156 = vmatpush.msrb.mxu0 %v3394_v6 }
 0x163   :  { %1157 = vmatpush.msrb.mxu0 %v3397_v21 }
 0x165   :  { %1158 = vmatpush.msrb.mxu0 %v3400_v38 }
 0x167   :  { %1159 = vmatpush.msrb.mxu0 %v3405_v44 }
 0x169   :  { %1160 = vmatpush.msrb.mxu0 %v3408_v51 }
 0x16b   :  { %1161 = vmatpush.msrb.mxu0 %v3410_v59 }
 0x16d   :  { %1162 = vmatpush.msrb.mxu0 %v3413_v15 }
 0x16f   :  { %1163 = vmatpush.msrb.mxu0 %v3417_v48 }
 0x171   :  { %1164 = vmatpush.msrb.mxu0 %v3420_v34 }
 0x1c4   :  { %v718_v22 = vpop.f32.mrf.mxu0  ;;  %v738_v35 = vpop.f32.mrf.mxu1 }
 0x1c5   :  { %v781_v25 = vadd.f32 %v718_v22, %v3307_v62  ;;  %v782_v30 = vadd.f32 %v738_v35, %v3329_v52 }
 0x1c7   :  { %v2413_v46 = vmul.f32 -1.442695, %v781_v25  ;;  %v2414_v20 = vmul.f32 -1.442695, %v782_v30 }
 0x1c9   :  { %2480 = vpow2.f32 %v2413_v46 }
 0x1ca   :  { %2482 = vpow2.f32 %v2414_v20 }
 0x1cb   :  { %v778_v62 = vpop.f32.mrf.mxu3 }
 0x1cc   :  { %v784_v52 = vadd.f32 %v778_v62, %v3311_v24  ;;  %v758_v24 = vpop.f32.mrf.mxu2 }
 0x1cd   :  { %v783_v47 = vadd.f32 %v758_v24, %v3331_v55 }
 0x1ce   :  { %v2415_v19 = vmul.f32 -1.442695, %v784_v52 }
 0x1cf   :  { %v2481_v11 = vpop.eup %2480 }
 0x1d0   :  { %v2483_v14 = vpop.eup %2482  ;;  %v788_v49 = vadd.f32 1.0, %v2481_v11  ;;  %2484 = vpow2.f32 %v2415_v19 }
 0x1d1   :  { %v807_v50 = vadd.f32 1.0, %v2483_v14 }
 0x1d2   :  { %2486 = vrcp.f32 %v788_v49  ;;  %v800_v25 = vand.u32 2147483648, %v788_v49  ;;  %v798_v20 = vand.u32 2147483647, %v788_v49  ;;  %vm794_vm14 = vweird.f32 %v788_v49 }
 0x1d3   :  { %2488 = vrcp.f32 %v807_v50  ;;  %v819_v30 = vand.u32 2147483648, %v807_v50  ;;  %v817_v55 = vand.u32 2147483647, %v807_v50  ;;  %vm813_vm15 = vweird.f32 %v807_v50 }
 0x1d4   :  { %v801_v11 = vor.u32 1.1754944e-38, %v800_v25  ;;  %vm799_vm2 = vcmp.eq.f32.partialorder %v798_v20, 8.507059e+37 }
 0x1d5   :  { %vm818_vm3 = vcmp.eq.f32.partialorder %v817_v55, 8.507059e+37 }
 0x1d6   :  { %v2485_v56 = vpop.eup %2484 }
 0x1d7   :  { %v827_v57 = vadd.f32 1.0, %v2485_v56  ;;  %v820_v56 = vor.u32 1.1754944e-38, %v819_v30 }
 0x1d8   :  { %v2487_v2 = vpop.eup %2486 }
 0x1d9   :  { %v2489_v63 = vpop.eup %2488  ;;  %v790_v0 = vmul.f32 %v2487_v2, %v788_v49  ;;  %2490 = vrcp.f32 %v827_v57  ;;  %vm795_vm12 = vweird.f32 %v2487_v2  ;;  %vm833_vm5 = vweird.f32 %v827_v57 }
 0x1da   :  { %v809_v1 = vmul.f32 %v2489_v63, %v807_v50  ;;  %2492 = vtanh.f32 %v783_v47  ;;  %vm814_vm13 = vweird.f32 %v2489_v63  ;;  %vm796_vm0 = vmor %vm794_vm14, %vm795_vm12  ;;  %v837_v30 = vand.u32 2147483647, %v827_v57 }
 0x1db   :  { %v791_v22 = vsub.f32 1.0, %v790_v0  ;;  %vm815_vm1 = vmor %vm813_vm15, %vm814_vm13 }
 0x1dc   :  { %v810_v35 = vsub.f32 1.0, %v809_v1  ;;  %vm838_vm7 = vcmp.eq.f32.partialorder %v837_v30, 8.507059e+37 }
 0x1dd   :  { %v792_v46 = vmul.f32 %v2487_v2, %v791_v22 }
 0x1de   :  { %v811_v62 = vmul.f32 %v2489_v63, %v810_v35 }
 0x1df   :  { %v2491_v52 = vpop.eup %2490  ;;  %v793_v19 = vadd.f32 %v2487_v2, %v792_v46 }
 0x1e0   :  { %v812_v14 = vadd.f32 %v2489_v63, %v811_v62  ;;  %v829_v24 = vmul.f32 %v2491_v52, %v827_v57  ;;  %v2493_v0 = vpop.eup %2492  ;;  %vm834_vm4 = vweird.f32 %v2491_v52 }
 0x1e1   :  { %v797_v47 = vsel %vm796_vm0, %v2487_v2, %v793_v19  ;;  %vm835_vm6 = vmor %vm833_vm5, %vm834_vm4 }
 0x1e2   :  { %v802_v1 = vsel %vm799_vm2, %v801_v11, %v797_v47  ;;  %v816_v22 = vsel %vm815_vm1, %v2489_v63, %v812_v14  ;;  %v830_v35 = vsub.f32 1.0, %v829_v24  ;;  %v839_v63 = vand.u32 2147483648, %v827_v57  ;;  %v3514_v57 = vld [vmem:[#allocation14 + $0x150] sm:$0xff]  ;;  %v3521_v14 = vld [vmem:[#allocation14 + $0x128] sm:$0xff] }
 0x1e3   :  { %v821_v46 = vsel %vm818_vm3, %v820_v56, %v816_v22  ;;  %v845_v49 = vmul.f32 %v2493_v0, %v802_v1  ;;  %4172 = vst [vmem:[#allocation49_spill] sm:$0xff] %v3514_v57  ;;  %v3523_v24 = vld [vmem:[#allocation14 + $0x130] sm:$0xff]  ;;  %v3525_v56 = vld [vmem:[#allocation14 + $0x138] sm:$0xff]  ;;  %v3530_v47 = vld [vmem:[#allocation14 + $0x108] sm:$0xff] }
 0x1e4   :  { %v844_v50 = vmul.f32 %v821_v46, %v3364_v31  ;;  %v831_v25 = vmul.f32 %v2491_v52, %v830_v35  ;;  %v840_v20 = vor.u32 1.1754944e-38, %v839_v63  ;;  %4174 = vst [vmem:[#allocation51_spill] sm:$0xff] %v3521_v14  ;;  %v3532_v0 = vld [vmem:[#allocation14 + $0x110] sm:$0xff]  ;;  %v3534_v1 = vld [vmem:[#allocation14 + $0x118] sm:$0xff]  ;;  %v3539_v22 = vld [vmem:[#allocation14 + $0xe8] sm:$0xff] }
 0x1e5   :  { %4175 = vst [vmem:[#allocation52_spill] sm:$0xff] %v3525_v56  ;;  %v3541_v35 = vld [vmem:[#allocation14 + $0xf0] sm:$0xff]  ;;  %v3543_v46 = vld [vmem:[#allocation14 + $0xf8] sm:$0xff] }
 0x1e6   :  { %v3436_v62 = vadd.f32 %v845_v49, %v844_v50  ;;  %v832_v2 = vadd.f32 %v2491_v52, %v831_v25  ;;  %v3548_v25 = vld [vmem:[#allocation14 + $0xc8] sm:$0xff]  ;;  %v3552_v63 = vld [vmem:[#allocation14 + $0xd8] sm:$0xff] }
 0x1e8   :  { %2494 = vtanh.f32 %v3436_v62  ;;  %v836_v31 = vsel %vm835_vm6, %v2491_v52, %v832_v2  ;;  %v3516_v52 = vld [vmem:[#allocation14 + $0x158] sm:$0xff]  ;;  %v3550_v2 = vld [vmem:[#allocation14 + $0xd0] sm:$0xff] }
 0x1e9   :  { %v841_v19 = vsel %vm838_vm7, %v840_v20, %v836_v31  ;;  %4173 = vst [vmem:[#allocation50_spill] sm:$0xff] %v3516_v52  ;;  %v3559_v20 = vld [vmem:[#allocation14 + $0xa8] sm:$0xff] }
 0x1ee   :  { %v2495_v55 = vpop.eup %2494 }
 0x1ef   :  { %v3444_v11 = vmul.f32 %v2495_v55, %v841_v19  ;;  %v3561_v55 = vld [vmem:[#allocation14 + $0xb0] sm:$0xff]  ;;  %v3563_v19 = vld [vmem:[#allocation14 + $0xb8] sm:$0xff] }
 0x1f1   :  { %4171 = vst [vmem:[#allocation48_spill] sm:$0xff] %v3444_v11  ;;  %941 = vmatmul.f32.vlgmr.msra.gmra.mxu0 %v3444_v11  ;;  %961 = vmatmul.f32.vlgmr.msra.gmra.mxu1 %v3444_v11 }
 0x1f2   :  { %981 = vmatmul.f32.vlgmr.msra.gmra.mxu2 %v3444_v11  ;;  %1001 = vmatmul.f32.vlgmr.msrb.gmra.mxu3 %v3444_v11 }
 0x1f3   :  { %1373 = vmatpush.msra.mxu0 %v3373_v45  ;;  %v3467_v45 = vld [vmem:[#allocation14 + $0x1e8] sm:$0xff] }
 0x1f4   :  { %1169 = vmatpush.msrb.mxu1 %v3467_v45 }
 0x1f5   :  { %1374 = vmatpush.msra.mxu0 %v3376_v54  ;;  %v3469_v54 = vld [vmem:[#allocation14 + $0x1f0] sm:$0xff] }
 0x1f6   :  { %1189 = vmatpush.msrb.mxu2 %v3469_v54 }
 0x1f7   :  { %1375 = vmatpush.msra.mxu0 %v3379_v5  ;;  %v3471_v5 = vld [vmem:[#allocation14 + $0x1f8] sm:$0xff] }
 0x1f8   :  { %1209 = vmatpush.msra.mxu3 %v3471_v5 }
 0x1f9   :  { %1376 = vmatpush.msra.mxu0 %v3382_v61  ;;  %v3476_v61 = vld [vmem:[#allocation14 + $0x1c8] sm:$0xff] }
 0x1fa   :  { %1170 = vmatpush.msrb.mxu1 %v3476_v61 }
 0x1fb   :  { %1377 = vmatpush.msra.mxu0 %v3385_v9  ;;  %v3478_v9 = vld [vmem:[#allocation14 + $0x1d0] sm:$0xff] }
 0x1fc   :  { %1190 = vmatpush.msrb.mxu2 %v3478_v9 }
 0x1fd   :  { %1378 = vmatpush.msra.mxu0 %v3388_v16  ;;  %v3480_v16 = vld [vmem:[#allocation14 + $0x1d8] sm:$0xff] }
 0x1fe   :  { %1210 = vmatpush.msra.mxu3 %v3480_v16 }
 0x1ff   :  { %1379 = vmatpush.msra.mxu0 %v3391_v32  ;;  %v3485_v32 = vld [vmem:[#allocation14 + $0x1a8] sm:$0xff] }
 0x200   :  { %1171 = vmatpush.msrb.mxu1 %v3485_v32 }
 0x201   :  { %1380 = vmatpush.msra.mxu0 %v3394_v6  ;;  %v3487_v6 = vld [vmem:[#allocation14 + $0x1b0] sm:$0xff] }
 0x202   :  { %1191 = vmatpush.msrb.mxu2 %v3487_v6 }
 0x203   :  { %1381 = vmatpush.msra.mxu0 %v3397_v21  ;;  %v3489_v21 = vld [vmem:[#allocation14 + $0x1b8] sm:$0xff] }
 0x204   :  { %1211 = vmatpush.msra.mxu3 %v3489_v21 }
 0x205   :  { %1382 = vmatpush.msra.mxu0 %v3400_v38  ;;  %v3494_v38 = vld [vmem:[#allocation14 + $0x188] sm:$0xff] }
 0x206   :  { %1172 = vmatpush.msrb.mxu1 %v3494_v38 }
 0x207   :  { %1383 = vmatpush.msra.mxu0 %v3405_v44  ;;  %v3496_v44 = vld [vmem:[#allocation14 + $0x190] sm:$0xff] }
 0x208   :  { %1192 = vmatpush.msrb.mxu2 %v3496_v44 }
 0x209   :  { %1384 = vmatpush.msra.mxu0 %v3408_v51  ;;  %v3498_v51 = vld [vmem:[#allocation14 + $0x198] sm:$0xff] }
 0x20a   :  { %1212 = vmatpush.msra.mxu3 %v3498_v51 }
 0x20b   :  { %1385 = vmatpush.msra.mxu0 %v3410_v59  ;;  %v3503_v59 = vld [vmem:[#allocation14 + $0x168] sm:$0xff] }
 0x20c   :  { %1173 = vmatpush.msrb.mxu1 %v3503_v59 }
 0x20d   :  { %1386 = vmatpush.msra.mxu0 %v3413_v15  ;;  %v3505_v15 = vld [vmem:[#allocation14 + $0x170] sm:$0xff] }
 0x20e   :  { %1193 = vmatpush.msrb.mxu2 %v3505_v15 }
 0x20f   :  { %1387 = vmatpush.msra.mxu0 %v3417_v48  ;;  %v3507_v48 = vld [vmem:[#allocation14 + $0x178] sm:$0xff] }
 0x210   :  { %1213 = vmatpush.msra.mxu3 %v3507_v48  ;;  %1194 = vmatpush.msrb.mxu2 %v3514_v57 }
 0x211   :  { %1388 = vmatpush.msra.mxu0 %v3420_v34  ;;  %v3512_v34 = vld [vmem:[#allocation14 + $0x148] sm:$0xff] }
 0x212   :  { %1174 = vmatpush.msrb.mxu1 %v3512_v34  ;;  %1214 = vmatpush.msra.mxu3 %v3516_v52 }
 0x213   :  { %1195 = vmatpush.msrb.mxu2 %v3523_v24 }
 0x214   :  { %1175 = vmatpush.msrb.mxu1 %v3521_v14  ;;  %1215 = vmatpush.msra.mxu3 %v3525_v56 }
 0x215   :  { %1196 = vmatpush.msrb.mxu2 %v3532_v0 }
 0x216   :  { %1176 = vmatpush.msrb.mxu1 %v3530_v47  ;;  %1216 = vmatpush.msra.mxu3 %v3534_v1 }
 0x217   :  { %1197 = vmatpush.msrb.mxu2 %v3541_v35 }
 0x218   :  { %1177 = vmatpush.msrb.mxu1 %v3539_v22  ;;  %1217 = vmatpush.msra.mxu3 %v3543_v46 }
 0x219   :  { %1198 = vmatpush.msrb.mxu2 %v3550_v2 }
 0x21a   :  { %1178 = vmatpush.msrb.mxu1 %v3548_v25  ;;  %1218 = vmatpush.msra.mxu3 %v3552_v63 }
 0x21b   :  { %1199 = vmatpush.msrb.mxu2 %v3561_v55 }
 0x21c   :  { %1179 = vmatpush.msrb.mxu1 %v3559_v20  ;;  %1219 = vmatpush.msra.mxu3 %v3563_v19 }
 0x26e   :  { %v942_v49 = vpop.f32.mrf.mxu0  ;;  %v962_v50 = vpop.f32.mrf.mxu1 }
 0x26f   :  { %v1005_v30 = vadd.f32 %v942_v49, %v3313_v27  ;;  %v1006_v31 = vadd.f32 %v962_v50, %v3335_v60  ;;  %v3568_v27 = vld [vmem:[#allocation14 + $0x88] sm:$0xff]  ;;  %v3570_v60 = vld [vmem:[#allocation14 + $0x90] sm:$0xff]  ;;  %v3572_v49 = vld [vmem:[#allocation14 + $0x98] sm:$0xff] }
 0x270   :  { %1180 = vmatpush.msrb.mxu1 %v3568_v27  ;;  %1200 = vmatpush.msrb.mxu2 %v3570_v60  ;;  %v3576_v50 = vld [vmem:[#allocation14 + $0x68] sm:$0xff] }
 0x271   :  { %v2416_v39 = vmul.f32 -1.442695, %v1005_v30  ;;  %v2417_v12 = vmul.f32 -1.442695, %v1006_v31  ;;  %v3578_v30 = vld [vmem:[#allocation14 + $0x70] sm:$0xff]  ;;  %v3580_v31 = vld [vmem:[#allocation14 + $0x78] sm:$0xff]  ;;  %1220 = vmatpush.msra.mxu3 %v3572_v49 }
 0x272   :  { %1181 = vmatpush.msrb.mxu1 %v3576_v50  ;;  %1201 = vmatpush.msrb.mxu2 %v3578_v30 }
 0x273   :  { %2496 = vpow2.f32 %v2416_v39  ;;  %v3589_v39 = vld [vmem:[#allocation14 + $0x58] sm:$0xff]  ;;  %1221 = vmatpush.msra.mxu3 %v3580_v31 }
 0x274   :  { %2498 = vpow2.f32 %v2417_v12  ;;  %v3595_v12 = vld [vmem:[#allocation14 + $0x30] sm:$0xff]  ;;  %1182 = vmatpush.msrb.mxu1 %v3583_v41  ;;  %1202 = vmatpush.msrb.mxu2 %v3585_v40 }
 0x275   :  { %v1002_v11 = vpop.f32.mrf.mxu3  ;;  %1222 = vmatpush.msra.mxu3 %v3589_v39 }
 0x276   :  { %v1008_v42 = vadd.f32 %v1002_v11, %v3317_v36  ;;  %1183 = vmatpush.msrb.mxu1 %v3593_v7  ;;  %1203 = vmatpush.msrb.mxu2 %v3595_v12  ;;  %v3608_v11 = vld [vmem:[#allocation14 + $0x18] sm:$0xff] }
 0x277   :  { %1223 = vmatpush.msra.mxu3 %v3599_v26 }
 0x278   :  { %v2418_v28 = vmul.f32 -1.442695, %v1008_v42  ;;  %1184 = vmatpush.msrb.mxu1 %v3602_v33  ;;  %1204 = vmatpush.msrb.mxu2 %v3604_v8 }
 0x279   :  { %v2497_v36 = vpop.eup %2496  ;;  %1224 = vmatpush.msra.mxu3 %v3608_v11 }
 0x27a   :  { %v2499_v58 = vpop.eup %2498  ;;  %v3610_v13 = vadd.f32 1.0, %v2497_v36  ;;  %2500 = vpow2.f32 %v2418_v28  ;;  %1393 = vmatpush.msra.mxu1 %v3467_v45  ;;  %1413 = vmatpush.msra.mxu2 %v3469_v54 }
 0x27b   :  { %v3613_v42 = vadd.f32 1.0, %v2499_v58  ;;  %1433 = vmatpush.msrb.mxu3 %v3471_v5  ;;  %v982_v58 = vpop.f32.mrf.mxu2 }
 0x27c   :  { %2502 = vrcp.f32 %v3610_v13  ;;  %1394 = vmatpush.msra.mxu1 %v3476_v61  ;;  %1414 = vmatpush.msra.mxu2 %v3478_v9  ;;  %v1007_v18 = vadd.f32 %v982_v58, %v3337_v23  ;;  %v1024_v58 = vand.u32 2147483648, %v3610_v13  ;;  %v1022_v3 = vand.u32 2147483647, %v3610_v13 }
 0x27d   :  { %2504 = vrcp.f32 %v3613_v42  ;;  %1434 = vmatpush.msrb.mxu3 %v3480_v16  ;;  %v1043_v4 = vand.u32 2147483648, %v3613_v42  ;;  %v1041_v37 = vand.u32 2147483647, %v3613_v42  ;;  %vm1018_vm10 = vweird.f32 %v3610_v13 }
 0x27e   :  { %1395 = vmatpush.msra.mxu1 %v3485_v32  ;;  %1415 = vmatpush.msra.mxu2 %v3487_v6  ;;  %vm1037_vm11 = vweird.f32 %v3613_v42  ;;  %vm1023_vm14 = vcmp.eq.f32.partialorder %v1022_v3, 8.507059e+37 }
 0x27f   :  { %1435 = vmatpush.msrb.mxu3 %v3489_v21  ;;  %vm1042_vm15 = vcmp.eq.f32.partialorder %v1041_v37, 8.507059e+37 }
 0x280   :  { %v2501_v28 = vpop.eup %2500  ;;  %1396 = vmatpush.msra.mxu1 %v3494_v38  ;;  %1416 = vmatpush.msra.mxu2 %v3496_v44 }
 0x281   :  { %v3627_v36 = vadd.f32 1.0, %v2501_v28  ;;  %1436 = vmatpush.msrb.mxu3 %v3498_v51 }
 0x282   :  { %v2503_v10 = vpop.eup %2502  ;;  %1397 = vmatpush.msra.mxu1 %v3503_v59  ;;  %1417 = vmatpush.msra.mxu2 %v3505_v15 }
 0x283   :  { %v2505_v17 = vpop.eup %2504  ;;  %v1014_v29 = vmul.f32 %v2503_v10, %v3610_v13  ;;  %2506 = vrcp.f32 %v3627_v36  ;;  %1437 = vmatpush.msrb.mxu3 %v3507_v48  ;;  %vm1019_vm8 = vweird.f32 %v2503_v10  ;;  %vm1057_vm1 = vweird.f32 %v3627_v36 }
 0x284   :  { %v1033_v28 = vmul.f32 %v2505_v17, %v3613_v42  ;;  %2508 = vtanh.f32 %v1007_v18  ;;  %1398 = vmatpush.msra.mxu1 %v3512_v34  ;;  %1418 = vmatpush.msra.mxu2 %v3514_v57  ;;  %vm1038_vm9 = vweird.f32 %v2505_v17  ;;  %vm1020_vm12 = vmor %vm1018_vm10, %vm1019_vm8 }
 0x285   :  { %v1015_v53 = vsub.f32 1.0, %v1014_v29  ;;  %1438 = vmatpush.msrb.mxu3 %v3516_v52  ;;  %vm1039_vm13 = vmor %vm1037_vm11, %vm1038_vm9  ;;  %v1044_v52 = vor.u32 1.1754944e-38, %v1043_v4  ;;  %v1063_v4 = vand.u32 2147483648, %v3627_v36 }
 0x286   :  { %v1034_v23 = vsub.f32 1.0, %v1033_v28  ;;  %1399 = vmatpush.msra.mxu1 %v3521_v14  ;;  %1419 = vmatpush.msra.mxu2 %v3523_v24 }
 0x287   :  { %v1016_v43 = vmul.f32 %v2503_v10, %v1015_v53  ;;  %1439 = vmatpush.msrb.mxu3 %v3525_v56  ;;  %v1025_v53 = vor.u32 1.1754944e-38, %v1024_v58 }
 0x288   :  { %v1035_v29 = vmul.f32 %v2505_v17, %v1034_v23  ;;  %1400 = vmatpush.msra.mxu1 %v3530_v47  ;;  %1420 = vmatpush.msra.mxu2 %v3532_v0 }
 0x289   :  { %v2507_v28 = vpop.eup %2506  ;;  %v1017_v18 = vadd.f32 %v2503_v10, %v1016_v43  ;;  %1440 = vmatpush.msrb.mxu3 %v3534_v1 }
 0x28a   :  { %v1036_v57 = vadd.f32 %v2505_v17, %v1035_v29  ;;  %v1053_v23 = vmul.f32 %v2507_v28, %v3627_v36  ;;  %v2509_v43 = vpop.eup %2508  ;;  %1401 = vmatpush.msra.mxu1 %v3539_v22  ;;  %1421 = vmatpush.msra.mxu2 %v3541_v35  ;;  %vm1058_vm0 = vweird.f32 %v2507_v28 }
 0x28b   :  { %v1021_v14 = vsel %vm1020_vm12, %v2503_v10, %v1017_v18  ;;  %1441 = vmatpush.msrb.mxu3 %v3543_v46  ;;  %vm1059_vm2 = vmor %vm1057_vm1, %vm1058_vm0 }
 0x28c   :  { %v1026_v13 = vsel %vm1023_vm14, %v1025_v53, %v1021_v14  ;;  %v1040_v56 = vsel %vm1039_vm13, %v2505_v17, %v1036_v57  ;;  %v1054_v42 = vsub.f32 1.0, %v1053_v23  ;;  %1402 = vmatpush.msra.mxu1 %v3548_v25  ;;  %1422 = vmatpush.msra.mxu2 %v3550_v2 }
 0x28d   :  { %v1045_v58 = vsel %vm1042_vm15, %v1044_v52, %v1040_v56  ;;  %v1069_v29 = vmul.f32 %v2509_v43, %v1026_v13  ;;  %1442 = vmatpush.msrb.mxu3 %v3552_v63  ;;  %v1064_v52 = vor.u32 1.1754944e-38, %v1063_v4 }
 0x28e   :  { %v1068_v10 = vmul.f32 %v1045_v58, %v3436_v62  ;;  %v1055_v3 = vmul.f32 %v2507_v28, %v1054_v42  ;;  %1403 = vmatpush.msra.mxu1 %v3559_v20  ;;  %1423 = vmatpush.msra.mxu2 %v3561_v55  ;;  %v1061_v62 = vand.u32 2147483647, %v3627_v36 }
 0x28f   :  { %1443 = vmatpush.msrb.mxu3 %v3563_v19 }
 0x290   :  { %v3664_v17 = vadd.f32 %v1069_v29, %v1068_v10  ;;  %v1056_v37 = vadd.f32 %v2507_v28, %v1055_v3  ;;  %1404 = vmatpush.msra.mxu1 %v3568_v27  ;;  %1424 = vmatpush.msra.mxu2 %v3570_v60  ;;  %vm1062_vm3 = vcmp.eq.f32.partialorder %v1061_v62, 8.507059e+37 }
 0x291   :  { %1444 = vmatpush.msrb.mxu3 %v3572_v49 }
 0x292   :  { %2510 = vtanh.f32 %v3664_v17  ;;  %1405 = vmatpush.msra.mxu1 %v3576_v50  ;;  %v1060_v57 = vsel %vm1059_vm2, %v2507_v28, %v1056_v37  ;;  %1425 = vmatpush.msra.mxu2 %v3578_v30 }
 0x293   :  { %1445 = vmatpush.msrb.mxu3 %v3580_v31  ;;  %v1065_v56 = vsel %vm1062_vm3, %v1064_v52, %v1060_v57 }
 0x294   :  { %1406 = vmatpush.msra.mxu1 %v3583_v41  ;;  %1426 = vmatpush.msra.mxu2 %v3585_v40 }
 0x295   :  { %1446 = vmatpush.msrb.mxu3 %v3589_v39 }
 0x296   :  { %1407 = vmatpush.msra.mxu1 %v3593_v7  ;;  %1427 = vmatpush.msra.mxu2 %v3595_v12 }
 0x297   :  { %1447 = vmatpush.msrb.mxu3 %v3599_v26 }
 0x298   :  { %v2511_v14 = vpop.eup %2510  ;;  %1408 = vmatpush.msra.mxu1 %v3602_v33  ;;  %1428 = vmatpush.msra.mxu2 %v3604_v8 }
 0x299   :  { %v3683_v36 = vmul.f32 %v2511_v14, %v1065_v56  ;;  %1448 = vmatpush.msrb.mxu3 %v3608_v11  ;;  %v3759_v56 = vld [vmem:[#allocation14 + $0x1c0] sm:$0xff] }
 0x29b   :  { %1165 = vmatmul.f32.vlgmr.msrb.gmra.mxu0 %v3683_v36  ;;  %1185 = vmatmul.f32.vlgmr.msrb.gmra.mxu1 %v3683_v36 }
 0x29c   :  { %1205 = vmatmul.f32.vlgmr.msrb.gmra.mxu2 %v3683_v36  ;;  %1225 = vmatmul.f32.vlgmr.msra.gmra.mxu3 %v3683_v36 }
 0x29d   :  { %1617 = vmatpush.msrb.mxu1 %v3467_v45  ;;  %1637 = vmatpush.msrb.mxu2 %v3469_v54  ;;  %v4176_v45 = vld [vmem:[#allocation49_spill] sm:$0xff]  ;;  %v4177_v54 = vld [vmem:[#allocation50_spill] sm:$0xff] }
 0x29e   :  { %1657 = vmatpush.msra.mxu3 %v3471_v5  ;;  %v4178_v5 = vld [vmem:[#allocation51_spill] sm:$0xff] }
 0x29f   :  { %1618 = vmatpush.msrb.mxu1 %v3476_v61  ;;  %1638 = vmatpush.msrb.mxu2 %v3478_v9  ;;  %v4179_v61 = vld [vmem:[#allocation52_spill] sm:$0xff] }
 0x2a0   :  { %1658 = vmatpush.msra.mxu3 %v3480_v16 }
 0x2a1   :  { %1619 = vmatpush.msrb.mxu1 %v3485_v32  ;;  %1639 = vmatpush.msrb.mxu2 %v3487_v6  ;;  %v4180_v32 = vld [vmem:[#allocation30_spill] sm:$0xff]  ;;  %v4181_v6 = vld [vmem:[#allocation36_spill] sm:$0xff] }
 0x2a2   :  { %1659 = vmatpush.msra.mxu3 %v3489_v21 }
 0x2a3   :  { %1620 = vmatpush.msrb.mxu1 %v3494_v38  ;;  %1640 = vmatpush.msrb.mxu2 %v3496_v44  ;;  %v4182_v44 = vld [vmem:[#allocation32_spill] sm:$0xff] }
 0x2a4   :  { %1660 = vmatpush.msra.mxu3 %v3498_v51 }
 0x2a5   :  { %1621 = vmatpush.msrb.mxu1 %v3503_v59  ;;  %1641 = vmatpush.msrb.mxu2 %v3505_v15 }
 0x2a6   :  { %1661 = vmatpush.msra.mxu3 %v3507_v48 }
 0x2a7   :  { %1622 = vmatpush.msrb.mxu1 %v3512_v34  ;;  %1642 = vmatpush.msrb.mxu2 %v4176_v45  ;;  %v3762_v45 = vld [vmem:[#allocation14 + $0x1a0] sm:$0xff] }
 0x2a8   :  { %1662 = vmatpush.msra.mxu3 %v4177_v54  ;;  %v3765_v54 = vld [vmem:[#allocation14 + $0x180] sm:$0xff] }
 0x2a9   :  { %1623 = vmatpush.msrb.mxu1 %v4178_v5  ;;  %1643 = vmatpush.msrb.mxu2 %v3523_v24  ;;  %v3768_v5 = vld [vmem:[#allocation14 + $0x160] sm:$0xff] }
 0x2aa   :  { %1663 = vmatpush.msra.mxu3 %v4179_v61  ;;  %v3771_v61 = vld [vmem:[#allocation14 + $0x140] sm:$0xff] }
 0x2ab   :  { %1624 = vmatpush.msrb.mxu1 %v3530_v47  ;;  %1644 = vmatpush.msrb.mxu2 %v3532_v0  ;;  %v4183_v0 = vld [vmem:[#allocation37_spill] sm:$0xff] }
 0x2ac   :  { %1664 = vmatpush.msra.mxu3 %v3534_v1 }
 0x2ad   :  { %1625 = vmatpush.msrb.mxu1 %v3539_v22  ;;  %1645 = vmatpush.msrb.mxu2 %v3541_v35 }
 0x2ae   :  { %1665 = vmatpush.msra.mxu3 %v3543_v46 }
 0x2af   :  { %1626 = vmatpush.msrb.mxu1 %v3548_v25  ;;  %1646 = vmatpush.msrb.mxu2 %v3550_v2 }
 0x2b0   :  { %1666 = vmatpush.msra.mxu3 %v3552_v63 }
 0x2b1   :  { %1627 = vmatpush.msrb.mxu1 %v3559_v20  ;;  %1647 = vmatpush.msrb.mxu2 %v3561_v55 }
 0x2b2   :  { %1667 = vmatpush.msra.mxu3 %v3563_v19 }
 0x2b3   :  { %1628 = vmatpush.msrb.mxu1 %v3568_v27  ;;  %1648 = vmatpush.msrb.mxu2 %v3570_v60 }
 0x2b4   :  { %1668 = vmatpush.msra.mxu3 %v3572_v49 }
 0x2b5   :  { %1629 = vmatpush.msrb.mxu1 %v3576_v50  ;;  %1649 = vmatpush.msrb.mxu2 %v3578_v30 }
 0x2b6   :  { %1669 = vmatpush.msra.mxu3 %v3580_v31 }
 0x2b7   :  { %1630 = vmatpush.msrb.mxu1 %v3583_v41  ;;  %1650 = vmatpush.msrb.mxu2 %v3585_v40 }
 0x2b8   :  { %1670 = vmatpush.msra.mxu3 %v3589_v39 }
 0x2b9   :  { %1631 = vmatpush.msrb.mxu1 %v3593_v7  ;;  %1651 = vmatpush.msrb.mxu2 %v3595_v12 }
 0x2ba   :  { %1671 = vmatpush.msra.mxu3 %v3599_v26 }
 0x2bb   :  { %1632 = vmatpush.msrb.mxu1 %v3602_v33  ;;  %1652 = vmatpush.msrb.mxu2 %v3604_v8 }
 0x2bc   :  { %1672 = vmatpush.msra.mxu3 %v3608_v11 }
 0x318   :  { %v1166_v9 = vpop.f32.mrf.mxu0  ;;  %v1186_v16 = vpop.f32.mrf.mxu1 }
 0x319   :  { %v1229_v41 = vadd.f32 %v1166_v9, %v4180_v32  ;;  %v1230_v40 = vadd.f32 %v1186_v16, %v4181_v6  ;;  %v3774_v9 = vld [vmem:[#allocation14 + $0x120] sm:$0xff] }
 0x31a   :  { %v3777_v16 = vld [vmem:[#allocation14 + $0x100] sm:$0xff] }
 0x31b   :  { %v2419_v21 = vmul.f32 -1.442695, %v1229_v41  ;;  %v2420_v38 = vmul.f32 -1.442695, %v1230_v40  ;;  %v3780_v32 = vld [vmem:[#allocation14 + $0xe0] sm:$0xff] }
 0x31c   :  { %v3783_v40 = vld [vmem:[#allocation14 + $0xc0] sm:$0xff] }
 0x31d   :  { %2512 = vpow2.f32 %v2419_v21  ;;  %v4184_v21 = vld [vmem:[#allocation27_spill] sm:$0xff] }
 0x31e   :  { %2514 = vpow2.f32 %v2420_v38 }
 0x31f   :  { %v1226_v7 = vpop.f32.mrf.mxu3  ;;  %v1206_v48 = vpop.f32.mrf.mxu2 }
 0x320   :  { %v1232_v51 = vadd.f32 %v1226_v7, %v4182_v44  ;;  %v1231_v1 = vadd.f32 %v1206_v48, %v4183_v0  ;;  %v4185_v7 = vld [vmem:[#allocation39_spill] sm:$0xff] }
 0x322   :  { %v2421_v26 = vmul.f32 -1.442695, %v1232_v51  ;;  %v3788_v51 = vld [vmem:[#allocation14 + $0xa0] sm:$0xff] }
 0x323   :  { %v2513_v59 = vpop.eup %2512 }
 0x324   :  { %v2515_v33 = vpop.eup %2514  ;;  %v1236_v15 = vadd.f32 1.0, %v2513_v59  ;;  %2516 = vpow2.f32 %v2421_v26 }
 0x325   :  { %v1255_v8 = vadd.f32 1.0, %v2515_v33  ;;  %v3791_v33 = vld [vmem:[#allocation14 + $0x80] sm:$0xff] }
 0x326   :  { %2518 = vrcp.f32 %v1236_v15  ;;  %v1248_v63 = vand.u32 2147483648, %v1236_v15  ;;  %v1246_v19 = vand.u32 2147483647, %v1236_v15  ;;  %vm1242_vm6 = vweird.f32 %v1236_v15 }
 0x327   :  { %2520 = vrcp.f32 %v1255_v8  ;;  %v1267_v20 = vand.u32 2147483648, %v1255_v8  ;;  %v1265_v60 = vand.u32 2147483647, %v1255_v8  ;;  %vm1261_vm7 = vweird.f32 %v1255_v8 }
 0x328   :  { %v1249_v30 = vor.u32 1.1754944e-38, %v1248_v63  ;;  %vm1247_vm10 = vcmp.eq.f32.partialorder %v1246_v19, 8.507059e+37  ;;  %v4187_v19 = vld [vmem:[#allocation40_spill] sm:$0xff] }
 0x329   :  { %v1268_v12 = vor.u32 1.1754944e-38, %v1267_v20  ;;  %vm1266_vm11 = vcmp.eq.f32.partialorder %v1265_v60, 8.507059e+37 }
 0x32a   :  { %v2517_v34 = vpop.eup %2516 }
 0x32b   :  { %v1275_v24 = vadd.f32 1.0, %v2517_v34  ;;  %v4186_v34 = vld [vmem:[#allocation33_spill] sm:$0xff] }
 0x32c   :  { %v2519_v47 = vpop.eup %2518 }
 0x32d   :  { %v2521_v22 = vpop.eup %2520  ;;  %v1238_v35 = vmul.f32 %v2519_v47, %v1236_v15  ;;  %2522 = vrcp.f32 %v1275_v24  ;;  %vm1243_vm4 = vweird.f32 %v2519_v47  ;;  %v1287_v3 = vand.u32 2147483648, %v1275_v24  ;;  %v3793_v15 = vld [vmem:[#allocation14 + $0x60] sm:$0xff] }
 0x32e   :  { %v1257_v46 = vmul.f32 %v2521_v22, %v1255_v8  ;;  %2524 = vtanh.f32 %v1231_v1  ;;  %vm1262_vm5 = vweird.f32 %v2521_v22  ;;  %vm1244_vm8 = vmor %vm1242_vm6, %vm1243_vm4  ;;  %vm1281_vm13 = vweird.f32 %v1275_v24  ;;  %v3796_v8 = vld [vmem:[#allocation14 + $0x40] sm:$0xff] }
 0x32f   :  { %v1239_v25 = vsub.f32 1.0, %v1238_v35  ;;  %vm1263_vm9 = vmor %vm1261_vm7, %vm1262_vm5  ;;  %v1285_v37 = vand.u32 2147483647, %v1275_v24  ;;  %v1288_v62 = vor.u32 1.1754944e-38, %v1287_v3  ;;  %v3803_v1 = vld [vmem:[#allocation14] sm:$0xff] }
 0x330   :  { %v1258_v2 = vsub.f32 1.0, %v1257_v46 }
 0x331   :  { %v1240_v55 = vmul.f32 %v2519_v47, %v1239_v25  ;;  %vm1286_vm15 = vcmp.eq.f32.partialorder %v1285_v37, 8.507059e+37 }
 0x332   :  { %v1259_v27 = vmul.f32 %v2521_v22, %v1258_v2 }
 0x333   :  { %v2523_v49 = vpop.eup %2522  ;;  %v1241_v50 = vadd.f32 %v2519_v47, %v1240_v55 }
 0x334   :  { %v1260_v31 = vadd.f32 %v2521_v22, %v1259_v27  ;;  %v1277_v39 = vmul.f32 %v2523_v49, %v1275_v24  ;;  %v2525_v28 = vpop.eup %2524  ;;  %vm1282_vm12 = vweird.f32 %v2523_v49 }
 0x335   :  { %v1245_v11 = vsel %vm1244_vm8, %v2519_v47, %v1241_v50  ;;  %vm1283_vm14 = vmor %vm1281_vm13, %vm1282_vm12  ;;  %v3800_v47 = vld [vmem:[#allocation14 + $0x20] sm:$0xff] }
 0x336   :  { %v1250_v18 = vsel %vm1247_vm10, %v1249_v30, %v1245_v11  ;;  %v1264_v53 = vsel %vm1263_vm9, %v2521_v22, %v1260_v31  ;;  %v1278_v23 = vsub.f32 1.0, %v1277_v39 }
 0x337   :  { %v1269_v43 = vsel %vm1266_vm11, %v1268_v12, %v1264_v53  ;;  %v1293_v13 = vmul.f32 %v2525_v28, %v1250_v18 }
 0x338   :  { %v1292_v42 = vmul.f32 %v1269_v43, %v3664_v17  ;;  %v1279_v58 = vmul.f32 %v2523_v49, %v1278_v23  ;;  %v3756_v17 = vld [vmem:[#allocation14 + $0x1e0] sm:$0xff] }
 0x339   :  { %1597 = vmatpush.msrb.mxu0 %v3756_v17 }
 0x33a   :  { %v3747_v29 = vadd.f32 %v1293_v13, %v1292_v42  ;;  %v1280_v10 = vadd.f32 %v2523_v49, %v1279_v58 }
 0x33b   :  { %1598 = vmatpush.msrb.mxu0 %v3759_v56 }
 0x33c   :  { %2526 = vtanh.f32 %v3747_v29  ;;  %v1284_v4 = vsel %vm1283_vm14, %v2523_v49, %v1280_v10 }
 0x33d   :  { %v1289_v52 = vsel %vm1286_vm15, %v1288_v62, %v1284_v4  ;;  %1599 = vmatpush.msrb.mxu0 %v3762_v45 }
 0x33f   :  { %1600 = vmatpush.msrb.mxu0 %v3765_v54 }
 0x341   :  { %1601 = vmatpush.msrb.mxu0 %v3768_v5 }
 0x342   :  { %v2527_v57 = vpop.eup %2526 }
 0x343   :  { %v3750_v14 = vmul.f32 %v2527_v57, %v1289_v52  ;;  %1602 = vmatpush.msrb.mxu0 %v3771_v61 }
 0x345   :  { %1389 = vmatmul.f32.vlgmr.msra.gmra.mxu0 %v3750_v14  ;;  %1409 = vmatmul.f32.vlgmr.msra.gmra.mxu1 %v3750_v14 }
 0x346   :  { %1429 = vmatmul.f32.vlgmr.msra.gmra.mxu2 %v3750_v14  ;;  %1449 = vmatmul.f32.vlgmr.msrb.gmra.mxu3 %v3750_v14 }
 0x347   :  { %1603 = vmatpush.msrb.mxu0 %v3774_v9 }
 0x349   :  { %1604 = vmatpush.msrb.mxu0 %v3777_v16 }
 0x34b   :  { %1605 = vmatpush.msrb.mxu0 %v3780_v32 }
 0x34d   :  { %1606 = vmatpush.msrb.mxu0 %v3783_v40 }
 0x34f   :  { %1607 = vmatpush.msrb.mxu0 %v3788_v51 }
 0x351   :  { %1608 = vmatpush.msrb.mxu0 %v3791_v33 }
 0x353   :  { %1609 = vmatpush.msrb.mxu0 %v3793_v15 }
 0x355   :  { %1610 = vmatpush.msrb.mxu0 %v3796_v8 }
 0x357   :  { %1611 = vmatpush.msrb.mxu0 %v3800_v47 }
 0x359   :  { %1612 = vmatpush.msrb.mxu0 %v3803_v1 }
 0x35b   :  { %1821 = vmatpush.msra.mxu0 %v3756_v17 }
 0x35d   :  { %1822 = vmatpush.msra.mxu0 %v3759_v56 }
 0x35f   :  { %1823 = vmatpush.msra.mxu0 %v3762_v45 }
 0x361   :  { %1824 = vmatpush.msra.mxu0 %v3765_v54 }
 0x363   :  { %1825 = vmatpush.msra.mxu0 %v3768_v5 }
 0x365   :  { %1826 = vmatpush.msra.mxu0 %v3771_v61 }
 0x367   :  { %1827 = vmatpush.msra.mxu0 %v3774_v9 }
 0x369   :  { %1828 = vmatpush.msra.mxu0 %v3777_v16 }
 0x36b   :  { %1829 = vmatpush.msra.mxu0 %v3780_v32 }
 0x36d   :  { %1830 = vmatpush.msra.mxu0 %v3783_v40 }
 0x36f   :  { %1831 = vmatpush.msra.mxu0 %v3788_v51 }
 0x371   :  { %1832 = vmatpush.msra.mxu0 %v3791_v33 }
 0x373   :  { %1833 = vmatpush.msra.mxu0 %v3793_v15 }
 0x375   :  { %1834 = vmatpush.msra.mxu0 %v3796_v8 }
 0x377   :  { %1835 = vmatpush.msra.mxu0 %v3800_v47 }
 0x379   :  { %1836 = vmatpush.msra.mxu0 %v3803_v1 }
 0x3c2   :  { %v1390_v41 = vpop.f32.mrf.mxu0  ;;  %v1410_v6 = vpop.f32.mrf.mxu1 }
 0x3c3   :  { %v1453_v38 = vadd.f32 %v1390_v41, %v4184_v21  ;;  %v1454_v44 = vadd.f32 %v1410_v6, %v4185_v7 }
 0x3c5   :  { %v2422_v26 = vmul.f32 -1.442695, %v1453_v38  ;;  %v2423_v59 = vmul.f32 -1.442695, %v1454_v44 }
 0x3c7   :  { %2528 = vpow2.f32 %v2422_v26 }
 0x3c8   :  { %2530 = vpow2.f32 %v2423_v59 }
 0x3c9   :  { %v1450_v48 = vpop.f32.mrf.mxu3  ;;  %v1430_v2 = vpop.f32.mrf.mxu2 }
 0x3ca   :  { %v1456_v24 = vadd.f32 %v1450_v48, %v4186_v34  ;;  %v1455_v27 = vadd.f32 %v1430_v2, %v4187_v19  ;;  %v3913_v2 = vld [vmem:[#allocation14 + $0x108] sm:$0xff]  ;;  %v3924_v19 = vld [vmem:[#allocation14 + $0xf0] sm:$0xff] }
 0x3cc   :  { %v2424_v0 = vmul.f32 -1.442695, %v1456_v24 }
 0x3cd   :  { %v2529_v22 = vpop.eup %2528 }
 0x3ce   :  { %v2531_v35 = vpop.eup %2530  ;;  %v1460_v46 = vadd.f32 1.0, %v2529_v22  ;;  %2532 = vpow2.f32 %v2424_v0  ;;  %v3895_v0 = vld [vmem:[#allocation14 + $0x148] sm:$0xff]  ;;  %v3899_v22 = vld [vmem:[#allocation14 + $0x158] sm:$0xff] }
 0x3cf   :  { %v1479_v25 = vadd.f32 1.0, %v2531_v35  ;;  %v3904_v35 = vld [vmem:[#allocation14 + $0x128] sm:$0xff] }
 0x3d0   :  { %2534 = vrcp.f32 %v1460_v46  ;;  %v1472_v39 = vand.u32 2147483648, %v1460_v46  ;;  %v1470_v28 = vand.u32 2147483647, %v1460_v46  ;;  %vm1466_vm2 = vweird.f32 %v1460_v46 }
 0x3d1   :  { %2536 = vrcp.f32 %v1479_v25  ;;  %v1491_v12 = vand.u32 2147483648, %v1479_v25  ;;  %v1489_v53 = vand.u32 2147483647, %v1479_v25  ;;  %vm1485_vm3 = vweird.f32 %v1479_v25 }
 0x3d2   :  { %v1473_v13 = vor.u32 1.1754944e-38, %v1472_v39  ;;  %vm1471_vm6 = vcmp.eq.f32.partialorder %v1470_v28, 8.507059e+37  ;;  %v4188_v39 = vld [vmem:[#allocation28_spill] sm:$0xff] }
 0x3d3   :  { %v1492_v10 = vor.u32 1.1754944e-38, %v1491_v12  ;;  %vm1490_vm7 = vcmp.eq.f32.partialorder %v1489_v53, 8.507059e+37  ;;  %v3944_v53 = vld [vmem:[#allocation14 + $0xb0] sm:$0xff] }
 0x3d4   :  { %v2533_v63 = vpop.eup %2532 }
 0x3d5   :  { %v1499_v20 = vadd.f32 1.0, %v2533_v63  ;;  %v3915_v63 = vld [vmem:[#allocation14 + $0x110] sm:$0xff] }
 0x3d6   :  { %v2535_v55 = vpop.eup %2534 }
 0x3d7   :  { %v2537_v60 = vpop.eup %2536  ;;  %v1462_v49 = vmul.f32 %v2535_v55, %v1460_v46  ;;  %2538 = vrcp.f32 %v1499_v20  ;;  %vm1467_vm0 = vweird.f32 %v2535_v55  ;;  %v1511_v44 = vand.u32 2147483648, %v1499_v20  ;;  %v3906_v46 = vld [vmem:[#allocation14 + $0x130] sm:$0xff] }
 0x3d8   :  { %v1481_v50 = vmul.f32 %v2537_v60, %v1479_v25  ;;  %2540 = vtanh.f32 %v1455_v27  ;;  %vm1486_vm1 = vweird.f32 %v2537_v60  ;;  %vm1468_vm4 = vmor %vm1466_vm2, %vm1467_vm0  ;;  %vm1505_vm9 = vweird.f32 %v1499_v20  ;;  %v3908_v25 = vld [vmem:[#allocation14 + $0x138] sm:$0xff] }
 0x3d9   :  { %v1463_v30 = vsub.f32 1.0, %v1462_v49  ;;  %vm1487_vm5 = vmor %vm1485_vm3, %vm1486_vm1  ;;  %v1509_v26 = vand.u32 2147483647, %v1499_v20  ;;  %v1512_v59 = vor.u32 1.1754944e-38, %v1511_v44  ;;  %v3926_v27 = vld [vmem:[#allocation14 + $0xf8] sm:$0xff]  ;;  %v3978_v44 = vld [vmem:[#allocation14 + $0x30] sm:$0xff] }
 0x3da   :  { %v1482_v31 = vsub.f32 1.0, %v1481_v50  ;;  %v3931_v50 = vld [vmem:[#allocation14 + $0xc8] sm:$0xff] }
 0x3db   :  { %v1464_v11 = vmul.f32 %v2535_v55, %v1463_v30  ;;  %vm1510_vm11 = vcmp.eq.f32.partialorder %v1509_v26, 8.507059e+37  ;;  %v3933_v30 = vld [vmem:[#allocation14 + $0xd0] sm:$0xff]  ;;  %v3982_v26 = vld [vmem:[#allocation14 + $0x38] sm:$0xff] }
 0x3dc   :  { %v1483_v18 = vmul.f32 %v2537_v60, %v1482_v31  ;;  %v3935_v31 = vld [vmem:[#allocation14 + $0xd8] sm:$0xff] }
 0x3dd   :  { %v2539_v23 = vpop.eup %2538  ;;  %v1465_v43 = vadd.f32 %v2535_v55, %v1464_v11  ;;  %v4189_v11 = vld [vmem:[#allocation41_spill] sm:$0xff] }
 0x3de   :  { %v1484_v42 = vadd.f32 %v2537_v60, %v1483_v18  ;;  %v1501_v58 = vmul.f32 %v2539_v23, %v1499_v20  ;;  %v2541_v37 = vpop.eup %2540  ;;  %vm1506_vm8 = vweird.f32 %v2539_v23  ;;  %v3917_v20 = vld [vmem:[#allocation14 + $0x118] sm:$0xff]  ;;  %v3942_v18 = vld [vmem:[#allocation14 + $0xa8] sm:$0xff] }
 0x3df   :  { %v1469_v3 = vsel %vm1468_vm4, %v2535_v55, %v1465_v43  ;;  %vm1507_vm10 = vmor %vm1505_vm9, %vm1506_vm8  ;;  %v3922_v55 = vld [vmem:[#allocation14 + $0xe8] sm:$0xff] }
 0x3e0   :  { %v1474_v4 = vsel %vm1471_vm6, %v1473_v13, %v1469_v3  ;;  %v1488_v62 = vsel %vm1487_vm5, %v2537_v60, %v1484_v42  ;;  %v1502_v57 = vsub.f32 1.0, %v1501_v58  ;;  %v3951_v42 = vld [vmem:[#allocation14 + $0x88] sm:$0xff]  ;;  %v3953_v58 = vld [vmem:[#allocation14 + $0x90] sm:$0xff] }
 0x3e1   :  { %v1493_v52 = vsel %vm1490_vm7, %v1492_v10, %v1488_v62  ;;  %v1517_v41 = vmul.f32 %v2541_v37, %v1474_v4  ;;  %v3955_v10 = vld [vmem:[#allocation14 + $0x98] sm:$0xff]  ;;  %v3959_v3 = vld [vmem:[#allocation14 + $0x68] sm:$0xff]  ;;  %v3961_v37 = vld [vmem:[#allocation14 + $0x70] sm:$0xff] }
 0x3e2   :  { %v1516_v6 = vmul.f32 %v1493_v52, %v3747_v29  ;;  %v1503_v21 = vmul.f32 %v2539_v23, %v1502_v57  ;;  %v3963_v4 = vld [vmem:[#allocation14 + $0x78] sm:$0xff]  ;;  %v3966_v62 = vld [vmem:[#allocation14 + $0x48] sm:$0xff]  ;;  %v3968_v57 = vld [vmem:[#allocation14 + $0x50] sm:$0xff] }
 0x3e4   :  { %v3819_v38 = vadd.f32 %v1517_v41, %v1516_v6  ;;  %v1504_v7 = vadd.f32 %v2539_v23, %v1503_v21  ;;  %v3972_v41 = vld [vmem:[#allocation14 + $0x58] sm:$0xff]  ;;  %v4190_v6 = vld [vmem:[#allocation34_spill] sm:$0xff] }
 0x3e6   :  { %2542 = vtanh.f32 %v3819_v38  ;;  %v1508_v29 = vsel %vm1507_vm10, %v2539_v23, %v1504_v7  ;;  %v3946_v23 = vld [vmem:[#allocation14 + $0xb8] sm:$0xff]  ;;  %v3976_v7 = vld [vmem:[#allocation14 + $0x28] sm:$0xff] }
 0x3e7   :  { %v1513_v34 = vsel %vm1510_vm11, %v1512_v59, %v1508_v29  ;;  %v3985_v59 = vld [vmem:[#allocation14 + $0x8] sm:$0xff] }
 0x3ec   :  { %v2543_v48 = vpop.eup %2542 }
 0x3ed   :  { %v3827_v24 = vmul.f32 %v2543_v48, %v1513_v34  ;;  %v3987_v48 = vld [vmem:[#allocation14 + $0x10] sm:$0xff] }
 0x3ef   :  { %1613 = vmatmul.f32.vlgmr.msrb.gmra.mxu0 %v3827_v24  ;;  %1633 = vmatmul.f32.vlgmr.msrb.gmra.mxu1 %v3827_v24 }
 0x3f0   :  { %1653 = vmatmul.f32.vlgmr.msrb.gmra.mxu2 %v3827_v24  ;;  %1673 = vmatmul.f32.vlgmr.msra.gmra.mxu3 %v3827_v24 }
 0x3f1   :  { %2045 = vmatpush.msrb.mxu0 %v3756_v17  ;;  %v3850_v17 = vld [vmem:[#allocation14 + $0x1e8] sm:$0xff] }
 0x3f2   :  { %1841 = vmatpush.msra.mxu1 %v3850_v17 }
 0x3f3   :  { %2046 = vmatpush.msrb.mxu0 %v3759_v56  ;;  %v3852_v56 = vld [vmem:[#allocation14 + $0x1f0] sm:$0xff] }
 0x3f4   :  { %1861 = vmatpush.msra.mxu2 %v3852_v56 }
 0x3f5   :  { %2047 = vmatpush.msrb.mxu0 %v3762_v45  ;;  %v3854_v45 = vld [vmem:[#allocation14 + $0x1f8] sm:$0xff] }
 0x3f6   :  { %1881 = vmatpush.msrb.mxu3 %v3854_v45 }
 0x3f7   :  { %2048 = vmatpush.msrb.mxu0 %v3765_v54  ;;  %v3859_v54 = vld [vmem:[#allocation14 + $0x1c8] sm:$0xff] }
 0x3f8   :  { %1842 = vmatpush.msra.mxu1 %v3859_v54 }
 0x3f9   :  { %2049 = vmatpush.msrb.mxu0 %v3768_v5  ;;  %v3861_v5 = vld [vmem:[#allocation14 + $0x1d0] sm:$0xff] }
 0x3fa   :  { %1862 = vmatpush.msra.mxu2 %v3861_v5 }
 0x3fb   :  { %2050 = vmatpush.msrb.mxu0 %v3771_v61  ;;  %v3863_v61 = vld [vmem:[#allocation14 + $0x1d8] sm:$0xff] }
 0x3fc   :  { %1882 = vmatpush.msrb.mxu3 %v3863_v61 }
 0x3fd   :  { %2051 = vmatpush.msrb.mxu0 %v3774_v9  ;;  %v3868_v9 = vld [vmem:[#allocation14 + $0x1a8] sm:$0xff] }
 0x3fe   :  { %1843 = vmatpush.msra.mxu1 %v3868_v9 }
 0x3ff   :  { %2052 = vmatpush.msrb.mxu0 %v3777_v16  ;;  %v3870_v16 = vld [vmem:[#allocation14 + $0x1b0] sm:$0xff] }
 0x400   :  { %1863 = vmatpush.msra.mxu2 %v3870_v16 }
 0x401   :  { %2053 = vmatpush.msrb.mxu0 %v3780_v32  ;;  %v3872_v32 = vld [vmem:[#allocation14 + $0x1b8] sm:$0xff] }
 0x402   :  { %1883 = vmatpush.msrb.mxu3 %v3872_v32 }
 0x403   :  { %2054 = vmatpush.msrb.mxu0 %v3783_v40  ;;  %v3877_v40 = vld [vmem:[#allocation14 + $0x188] sm:$0xff] }
 0x404   :  { %1844 = vmatpush.msra.mxu1 %v3877_v40 }
 0x405   :  { %2055 = vmatpush.msrb.mxu0 %v3788_v51  ;;  %v3879_v51 = vld [vmem:[#allocation14 + $0x190] sm:$0xff] }
 0x406   :  { %1864 = vmatpush.msra.mxu2 %v3879_v51 }
 0x407   :  { %2056 = vmatpush.msrb.mxu0 %v3791_v33  ;;  %v3881_v33 = vld [vmem:[#allocation14 + $0x198] sm:$0xff] }
 0x408   :  { %1884 = vmatpush.msrb.mxu3 %v3881_v33 }
 0x409   :  { %2057 = vmatpush.msrb.mxu0 %v3793_v15  ;;  %v3886_v15 = vld [vmem:[#allocation14 + $0x168] sm:$0xff] }
 0x40a   :  { %1845 = vmatpush.msra.mxu1 %v3886_v15 }
 0x40b   :  { %2058 = vmatpush.msrb.mxu0 %v3796_v8  ;;  %v3888_v8 = vld [vmem:[#allocation14 + $0x170] sm:$0xff] }
 0x40c   :  { %1865 = vmatpush.msra.mxu2 %v3888_v8  ;;  %1846 = vmatpush.msra.mxu1 %v3895_v0 }
 0x40d   :  { %2059 = vmatpush.msrb.mxu0 %v3800_v47  ;;  %v3890_v47 = vld [vmem:[#allocation14 + $0x178] sm:$0xff] }
 0x40e   :  { %1885 = vmatpush.msrb.mxu3 %v3890_v47  ;;  %1847 = vmatpush.msra.mxu1 %v3904_v35 }
 0x40f   :  { %2060 = vmatpush.msrb.mxu0 %v3803_v1  ;;  %v3897_v1 = vld [vmem:[#allocation14 + $0x150] sm:$0xff] }
 0x410   :  { %1866 = vmatpush.msra.mxu2 %v3897_v1  ;;  %1886 = vmatpush.msrb.mxu3 %v3899_v22 }
 0x411   :  { %1848 = vmatpush.msra.mxu1 %v3913_v2 }
 0x412   :  { %1867 = vmatpush.msra.mxu2 %v3906_v46  ;;  %1887 = vmatpush.msrb.mxu3 %v3908_v25 }
 0x413   :  { %1849 = vmatpush.msra.mxu1 %v3922_v55 }
 0x414   :  { %1868 = vmatpush.msra.mxu2 %v3915_v63  ;;  %1888 = vmatpush.msrb.mxu3 %v3917_v20 }
 0x415   :  { %1850 = vmatpush.msra.mxu1 %v3931_v50 }
 0x416   :  { %1869 = vmatpush.msra.mxu2 %v3924_v19  ;;  %1889 = vmatpush.msrb.mxu3 %v3926_v27 }
 0x417   :  { %1851 = vmatpush.msra.mxu1 %v3942_v18 }
 0x418   :  { %1870 = vmatpush.msra.mxu2 %v3933_v30  ;;  %1890 = vmatpush.msrb.mxu3 %v3935_v31 }
 0x419   :  { %1852 = vmatpush.msra.mxu1 %v3951_v42 }
 0x41a   :  { %1871 = vmatpush.msra.mxu2 %v3944_v53  ;;  %1891 = vmatpush.msrb.mxu3 %v3946_v23 }
 0x41b   :  { %1853 = vmatpush.msra.mxu1 %v3959_v3 }
 0x41c   :  { %1872 = vmatpush.msra.mxu2 %v3953_v58  ;;  %1892 = vmatpush.msrb.mxu3 %v3955_v10 }
 0x41d   :  { %1854 = vmatpush.msra.mxu1 %v3966_v62 }
 0x41e   :  { %1873 = vmatpush.msra.mxu2 %v3961_v37  ;;  %1893 = vmatpush.msrb.mxu3 %v3963_v4 }
 0x41f   :  { %1855 = vmatpush.msra.mxu1 %v3976_v7 }
 0x420   :  { %1874 = vmatpush.msra.mxu2 %v3968_v57  ;;  %1894 = vmatpush.msrb.mxu3 %v3972_v41 }
 0x421   :  { %1856 = vmatpush.msra.mxu1 %v3985_v59 }
 0x422   :  { %1875 = vmatpush.msra.mxu2 %v3978_v44  ;;  %1895 = vmatpush.msrb.mxu3 %v3982_v26 }
 0x423   :  { %2065 = vmatpush.msrb.mxu1 %v3850_v17 }
 0x424   :  { %1876 = vmatpush.msra.mxu2 %v3987_v48 }
 0x425   :  { %2066 = vmatpush.msrb.mxu1 %v3859_v54 }
 0x426   :  { %2085 = vmatpush.msrb.mxu2 %v3852_v56  ;;  %v4191_v56 = vld [vmem:[#allocation42_spill] sm:$0xff] }
 0x427   :  { %2067 = vmatpush.msrb.mxu1 %v3868_v9 }
 0x428   :  { %2086 = vmatpush.msrb.mxu2 %v3861_v5 }
 0x429   :  { %2068 = vmatpush.msrb.mxu1 %v3877_v40 }
 0x42a   :  { %2087 = vmatpush.msrb.mxu2 %v3870_v16 }
 0x42b   :  { %2069 = vmatpush.msrb.mxu1 %v3886_v15 }
 0x42c   :  { %2088 = vmatpush.msrb.mxu2 %v3879_v51 }
 0x42d   :  { %2070 = vmatpush.msrb.mxu1 %v3895_v0 }
 0x42e   :  { %2089 = vmatpush.msrb.mxu2 %v3888_v8 }
 0x42f   :  { %2071 = vmatpush.msrb.mxu1 %v3904_v35 }
 0x430   :  { %2090 = vmatpush.msrb.mxu2 %v3897_v1 }
 0x431   :  { %2072 = vmatpush.msrb.mxu1 %v3913_v2 }
 0x432   :  { %2091 = vmatpush.msrb.mxu2 %v3906_v46 }
 0x433   :  { %2073 = vmatpush.msrb.mxu1 %v3922_v55 }
 0x434   :  { %2092 = vmatpush.msrb.mxu2 %v3915_v63 }
 0x435   :  { %2074 = vmatpush.msrb.mxu1 %v3931_v50 }
 0x436   :  { %2093 = vmatpush.msrb.mxu2 %v3924_v19 }
 0x437   :  { %2075 = vmatpush.msrb.mxu1 %v3942_v18  ;;  %v2220_v18 = vld [vmem:[#allocation15 + $0x78] sm:$0xff] }
 0x438   :  { %2094 = vmatpush.msrb.mxu2 %v3933_v30 }
 0x439   :  { %2076 = vmatpush.msrb.mxu1 %v3951_v42  ;;  %v2217_v42 = vld [vmem:[#allocation15 + $0x60] sm:$0xff] }
 0x43a   :  { %2095 = vmatpush.msrb.mxu2 %v3944_v53  ;;  %v2219_v53 = vld [vmem:[#allocation15 + $0x70] sm:$0xff] }
 0x43b   :  { %2077 = vmatpush.msrb.mxu1 %v3959_v3 }
 0x43c   :  { %2096 = vmatpush.msrb.mxu2 %v3953_v58  ;;  %v2216_v58 = vld [vmem:[#allocation15 + $0x58] sm:$0xff] }
 0x43d   :  { %2078 = vmatpush.msrb.mxu1 %v3966_v62 }
 0x43e   :  { %2097 = vmatpush.msrb.mxu2 %v3961_v37  ;;  %v2215_v37 = vld [vmem:[#allocation15 + $0x50] sm:$0xff] }
 0x43f   :  { %2079 = vmatpush.msrb.mxu1 %v3976_v7  ;;  %v2214_v7 = vld [vmem:[#allocation15 + $0x48] sm:$0xff] }
 0x440   :  { %2098 = vmatpush.msrb.mxu2 %v3968_v57  ;;  %v4193_v57 = vld [vmem:[#allocation43_spill] sm:$0xff] }
 0x441   :  { %2080 = vmatpush.msrb.mxu1 %v3985_v59  ;;  %v2213_v59 = vld [vmem:[#allocation15 + $0x40] sm:$0xff] }
 0x442   :  { %2099 = vmatpush.msrb.mxu2 %v3978_v44 }
 0x444   :  { %2100 = vmatpush.msrb.mxu2 %v3987_v48  ;;  %v2212_v48 = vld [vmem:[#allocation15 + $0x38] sm:$0xff] }
 0x46c   :  { %v1614_v60 = vpop.f32.mrf.mxu0  ;;  %v1634_v49 = vpop.f32.mrf.mxu1 }
 0x46d   :  { %v1677_v12 = vadd.f32 %v1614_v60, %v4188_v39  ;;  %v1678_v28 = vadd.f32 %v1634_v49, %v4189_v11  ;;  %v3991_v60 = vld [vmem:[#allocation14 + $0x18] sm:$0xff] }
 0x46e   :  { %1896 = vmatpush.msrb.mxu3 %v3991_v60 }
 0x46f   :  { %v2425_v43 = vmul.f32 -1.442695, %v1677_v12  ;;  %v2426_v13 = vmul.f32 -1.442695, %v1678_v28 }
 0x470   :  { %2105 = vmatpush.msra.mxu3 %v3854_v45 }
 0x471   :  { %2544 = vpow2.f32 %v2425_v43 }
 0x472   :  { %2546 = vpow2.f32 %v2426_v13  ;;  %2106 = vmatpush.msra.mxu3 %v3863_v61 }
 0x473   :  { %v1674_v52 = vpop.f32.mrf.mxu3  ;;  %v1654_v11 = vpop.f32.mrf.mxu2 }
 0x474   :  { %v1680_v21 = vadd.f32 %v1674_v52, %v4190_v6  ;;  %2107 = vmatpush.msra.mxu3 %v3872_v32  ;;  %v1679_v13 = vadd.f32 %v1654_v11, %v4191_v56 }
 0x476   :  { %v2427_v29 = vmul.f32 -1.442695, %v1680_v21  ;;  %2108 = vmatpush.msra.mxu3 %v3881_v33 }
 0x477   :  { %v2545_v34 = vpop.eup %2544 }
 0x478   :  { %v2547_v49 = vpop.eup %2546  ;;  %v3993_v39 = vadd.f32 1.0, %v2545_v34  ;;  %2548 = vpow2.f32 %v2427_v29  ;;  %2109 = vmatpush.msra.mxu3 %v3890_v47 }
 0x479   :  { %v3996_v12 = vadd.f32 1.0, %v2547_v49 }
 0x47a   :  { %2550 = vrcp.f32 %v3993_v39  ;;  %v1696_v16 = vand.u32 2147483648, %v3993_v39  ;;  %v1694_v51 = vand.u32 2147483647, %v3993_v39  ;;  %2110 = vmatpush.msra.mxu3 %v3899_v22  ;;  %vm1690_vm14 = vweird.f32 %v3993_v39 }
 0x47b   :  { %2552 = vrcp.f32 %v3996_v12  ;;  %v1715_v32 = vand.u32 2147483648, %v3996_v12  ;;  %v1713_v15 = vand.u32 2147483647, %v3996_v12  ;;  %vm1709_vm15 = vweird.f32 %v3996_v12 }
 0x47c   :  { %2111 = vmatpush.msra.mxu3 %v3908_v25  ;;  %v1697_v0 = vor.u32 1.1754944e-38, %v1696_v16  ;;  %vm1695_vm2 = vcmp.eq.f32.partialorder %v1694_v51, 8.507059e+37 }
 0x47d   :  { %v1716_v52 = vor.u32 1.1754944e-38, %v1715_v32  ;;  %vm1714_vm3 = vcmp.eq.f32.partialorder %v1713_v15, 8.507059e+37  ;;  %v4195_v15 = vld [vmem:[#allocation44_spill] sm:$0xff] }
 0x47e   :  { %v2549_v28 = vpop.eup %2548  ;;  %2112 = vmatpush.msra.mxu3 %v3917_v20 }
 0x47f   :  { %v4010_v43 = vadd.f32 1.0, %v2549_v28  ;;  %v2210_v28 = vld [vmem:[#allocation15 + $0x28] sm:$0xff] }
 0x480   :  { %v2551_v17 = vpop.eup %2550  ;;  %2113 = vmatpush.msra.mxu3 %v3926_v27 }
 0x481   :  { %v2553_v45 = vpop.eup %2552  ;;  %v1686_v54 = vmul.f32 %v2551_v17, %v3993_v39  ;;  %2554 = vrcp.f32 %v4010_v43  ;;  %vm1691_vm12 = vweird.f32 %v2551_v17  ;;  %vm1729_vm5 = vweird.f32 %v4010_v43 }
 0x482   :  { %v1705_v5 = vmul.f32 %v2553_v45, %v3996_v12  ;;  %2556 = vtanh.f32 %v1679_v13  ;;  %vm1710_vm13 = vweird.f32 %v2553_v45  ;;  %vm1692_vm0 = vmor %vm1690_vm14, %vm1691_vm12  ;;  %2114 = vmatpush.msra.mxu3 %v3935_v31  ;;  %v1733_v55 = vand.u32 2147483647, %v4010_v43  ;;  %v4194_v12 = vld [vmem:[#allocation35_spill] sm:$0xff] }
 0x483   :  { %v1687_v61 = vsub.f32 1.0, %v1686_v54  ;;  %vm1711_vm1 = vmor %vm1709_vm15, %vm1710_vm13 }
 0x484   :  { %v1706_v9 = vsub.f32 1.0, %v1705_v5  ;;  %2115 = vmatpush.msra.mxu3 %v3946_v23  ;;  %vm1734_vm7 = vcmp.eq.f32.partialorder %v1733_v55, 8.507059e+37  ;;  %v2218_v23 = vld [vmem:[#allocation15 + $0x68] sm:$0xff]  ;;  %v2208_v5 = vld [vmem:[#allocation15 + $0x18] sm:$0xff] }
 0x485   :  { %v1688_v40 = vmul.f32 %v2551_v17, %v1687_v61  ;;  %v2207_v61 = vld [vmem:[#allocation15 + $0x10] sm:$0xff] }
 0x486   :  { %v1707_v33 = vmul.f32 %v2553_v45, %v1706_v9  ;;  %2116 = vmatpush.msra.mxu3 %v3955_v10  ;;  %v2206_v9 = vld [vmem:[#allocation15 + $0x8] sm:$0xff] }
 0x487   :  { %v2555_v8 = vpop.eup %2554  ;;  %v1689_v47 = vadd.f32 %v2551_v17, %v1688_v40  ;;  %v2205_v40 = vld [vmem:[#allocation15] sm:$0xff] }
 0x488   :  { %v1708_v1 = vadd.f32 %v2553_v45, %v1707_v33  ;;  %v1725_v22 = vmul.f32 %v2555_v8, %v4010_v43  ;;  %v2557_v46 = vpop.eup %2556  ;;  %vm1730_vm4 = vweird.f32 %v2555_v8  ;;  %2117 = vmatpush.msra.mxu3 %v3963_v4  ;;  %v4192_v4 = vld [vmem:[#allocation29_spill] sm:$0xff] }
 0x489   :  { %v1693_v35 = vsel %vm1692_vm0, %v2551_v17, %v1689_v47  ;;  %vm1731_vm6 = vmor %vm1729_vm5, %vm1730_vm4  ;;  %v2209_v17 = vld [vmem:[#allocation15 + $0x20] sm:$0xff] }
 0x48a   :  { %v1698_v6 = vsel %vm1695_vm2, %v1697_v0, %v1693_v35  ;;  %v1712_v25 = vsel %vm1711_vm1, %v2553_v45, %v1708_v1  ;;  %v1726_v21 = vsub.f32 1.0, %v1725_v22  ;;  %2118 = vmatpush.msra.mxu3 %v3972_v41 }
 0x48b   :  { %v1717_v29 = vsel %vm1714_vm3, %v1716_v52, %v1712_v25  ;;  %v1741_v34 = vmul.f32 %v2557_v46, %v1698_v6 }
 0x48c   :  { %v1740_v2 = vmul.f32 %v1717_v29, %v3819_v38  ;;  %v1727_v49 = vmul.f32 %v2555_v8, %v1726_v21  ;;  %v1735_v38 = vand.u32 2147483648, %v4010_v43  ;;  %2119 = vmatpush.msra.mxu3 %v3982_v26 }
 0x48e   :  { %v4047_v63 = vadd.f32 %v1741_v34, %v1740_v2  ;;  %v1728_v20 = vadd.f32 %v2555_v8, %v1727_v49  ;;  %v1736_v27 = vor.u32 1.1754944e-38, %v1735_v38  ;;  %2120 = vmatpush.msra.mxu3 %v3991_v60  ;;  %v2211_v60 = vld [vmem:[#allocation15 + $0x30] sm:$0xff] }
 0x490   :  { %2558 = vtanh.f32 %v4047_v63  ;;  %v1732_v19 = vsel %vm1731_vm6, %v2555_v8, %v1728_v20 }
 0x491   :  { %v1737_v30 = vsel %vm1734_vm7, %v1736_v27, %v1732_v19 }
 0x496   :  { %v2559_v50 = vpop.eup %2558 }
 0x497   :  { %v4066_v31 = vmul.f32 %v2559_v50, %v1737_v30 }
 0x499   :  { %1837 = vmatmul.f32.vlgmr.msra.gmra.mxu0 %v4066_v31  ;;  %1857 = vmatmul.f32.vlgmr.msra.gmra.mxu1 %v4066_v31 }
 0x49a   :  { %1877 = vmatmul.f32.vlgmr.msra.gmra.mxu2 %v4066_v31  ;;  %1897 = vmatmul.f32.vlgmr.msrb.gmra.mxu3 %v4066_v31 }
 0x49b   :  { %2225 = vmatpush.msra.mxu0 %v2220_v18 }
 0x49d   :  { %2226 = vmatpush.msra.mxu0 %v2219_v53 }
 0x49f   :  { %2227 = vmatpush.msra.mxu0 %v2218_v23 }
 0x4a1   :  { %2228 = vmatpush.msra.mxu0 %v2217_v42 }
 0x4a3   :  { %2229 = vmatpush.msra.mxu0 %v2216_v58 }
 0x4a5   :  { %2230 = vmatpush.msra.mxu0 %v2215_v37 }
 0x4a7   :  { %2231 = vmatpush.msra.mxu0 %v2214_v7 }
 0x4a9   :  { %2232 = vmatpush.msra.mxu0 %v2213_v59 }
 0x4ab   :  { %2233 = vmatpush.msra.mxu0 %v2212_v48 }
 0x4ad   :  { %2234 = vmatpush.msra.mxu0 %v2211_v60  ;;  %v4198_v60 = vld [vmem:[#allocation31_spill] sm:$0xff] }
 0x4af   :  { %2235 = vmatpush.msra.mxu0 %v2210_v28 }
 0x4b1   :  { %2236 = vmatpush.msra.mxu0 %v2209_v17 }
 0x4b3   :  { %2237 = vmatpush.msra.mxu0 %v2208_v5 }
 0x4b5   :  { %2238 = vmatpush.msra.mxu0 %v2207_v61 }
 0x4b7   :  { %2239 = vmatpush.msra.mxu0 %v2206_v9 }
 0x4b9   :  { %2240 = vmatpush.msra.mxu0 %v2205_v40 }
 0x516   :  { %v1838_v10 = vpop.f32.mrf.mxu0  ;;  %v1858_v3 = vpop.f32.mrf.mxu1 }
 0x517   :  { %v1901_v62 = vadd.f32 %v1838_v10, %v4192_v4  ;;  %v1902_v41 = vadd.f32 %v1858_v3, %v4193_v57 }
 0x519   :  { %v2428_v44 = vmul.f32 -1.442695, %v1901_v62  ;;  %v2429_v26 = vmul.f32 -1.442695, %v1902_v41 }
 0x51b   :  { %2560 = vpow2.f32 %v2428_v44 }
 0x51c   :  { %2562 = vpow2.f32 %v2429_v26  ;;  %v4197_v26 = vld [vmem:[#allocation48_spill] sm:$0xff] }
 0x51d   :  { %v1898_v39 = vpop.f32.mrf.mxu3  ;;  %v1878_v16 = vpop.f32.mrf.mxu2 }
 0x51e   :  { %v1904_v11 = vadd.f32 %v1898_v39, %v4194_v12  ;;  %v1903_v8 = vadd.f32 %v1878_v16, %v4195_v15  ;;  %v4199_v12 = vld [vmem:[#allocation45_spill] sm:$0xff]  ;;  %v4201_v15 = vld [vmem:[#allocation46_spill] sm:$0xff] }
 0x520   :  { %v2430_v43 = vmul.f32 -1.442695, %v1904_v11 }
 0x521   :  { %v2561_v56 = vpop.eup %2560 }
 0x522   :  { %v2563_v13 = vpop.eup %2562  ;;  %v1908_v45 = vadd.f32 1.0, %v2561_v56  ;;  %2564 = vpow2.f32 %v2430_v43 }
 0x523   :  { %v1927_v54 = vadd.f32 1.0, %v2563_v13 }
 0x524   :  { %2566 = vrcp.f32 %v1908_v45  ;;  %v1920_v35 = vand.u32 2147483648, %v1908_v45  ;;  %v1918_v25 = vand.u32 2147483647, %v1908_v45  ;;  %vm1914_vm10 = vweird.f32 %v1908_v45 }
 0x525   :  { %2568 = vrcp.f32 %v1927_v54  ;;  %v1939_v46 = vand.u32 2147483648, %v1927_v54  ;;  %v1937_v29 = vand.u32 2147483647, %v1927_v54  ;;  %vm1933_vm11 = vweird.f32 %v1927_v54 }
 0x526   :  { %v1921_v49 = vor.u32 1.1754944e-38, %v1920_v35  ;;  %vm1919_vm14 = vcmp.eq.f32.partialorder %v1918_v25, 8.507059e+37 }
 0x527   :  { %v1940_v55 = vor.u32 1.1754944e-38, %v1939_v46  ;;  %vm1938_vm15 = vcmp.eq.f32.partialorder %v1937_v29, 8.507059e+37 }
 0x528   :  { %v2565_v32 = vpop.eup %2564 }
 0x529   :  { %v1947_v51 = vadd.f32 1.0, %v2565_v32 }
 0x52a   :  { %v2567_v33 = vpop.eup %2566 }
 0x52b   :  { %v2569_v47 = vpop.eup %2568  ;;  %v1910_v0 = vmul.f32 %v2567_v33, %v1908_v45  ;;  %2570 = vrcp.f32 %v1947_v51  ;;  %vm1915_vm8 = vweird.f32 %v2567_v33  ;;  %v1959_v37 = vand.u32 2147483648, %v1947_v51 }
 0x52c   :  { %v1929_v1 = vmul.f32 %v2569_v47, %v1927_v54  ;;  %2572 = vtanh.f32 %v1903_v8  ;;  %vm1934_vm9 = vweird.f32 %v2569_v47  ;;  %vm1916_vm12 = vmor %vm1914_vm10, %vm1915_vm8  ;;  %vm1953_vm1 = vweird.f32 %v1947_v51 }
 0x52d   :  { %v1911_v22 = vsub.f32 1.0, %v1910_v0  ;;  %vm1935_vm13 = vmor %vm1933_vm11, %vm1934_vm9  ;;  %v1957_v4 = vand.u32 2147483647, %v1947_v51  ;;  %v1960_v57 = vor.u32 1.1754944e-38, %v1959_v37 }
 0x52e   :  { %v1930_v52 = vsub.f32 1.0, %v1929_v1 }
 0x52f   :  { %v1912_v6 = vmul.f32 %v2567_v33, %v1911_v22  ;;  %vm1958_vm3 = vcmp.eq.f32.partialorder %v1957_v4, 8.507059e+37 }
 0x530   :  { %v1931_v21 = vmul.f32 %v2569_v47, %v1930_v52 }
 0x531   :  { %v2571_v34 = vpop.eup %2570  ;;  %v1913_v2 = vadd.f32 %v2567_v33, %v1912_v6 }
 0x532   :  { %v1932_v20 = vadd.f32 %v2569_v47, %v1931_v21  ;;  %v1949_v38 = vmul.f32 %v2571_v34, %v1947_v51  ;;  %v2573_v27 = vpop.eup %2572  ;;  %vm1954_vm0 = vweird.f32 %v2571_v34 }
 0x533   :  { %v1917_v19 = vsel %vm1916_vm12, %v2567_v33, %v1913_v2  ;;  %vm1955_vm2 = vmor %vm1953_vm1, %vm1954_vm0 }
 0x534   :  { %v1922_v50 = vsel %vm1919_vm14, %v1921_v49, %v1917_v19  ;;  %v1936_v30 = vsel %vm1935_vm13, %v2569_v47, %v1932_v20  ;;  %v1950_v18 = vsub.f32 1.0, %v1949_v38 }
 0x535   :  { %v1941_v53 = vsel %vm1938_vm15, %v1940_v55, %v1936_v30  ;;  %v1965_v23 = vmul.f32 %v2573_v27, %v1922_v50 }
 0x536   :  { %v1964_v42 = vmul.f32 %v1941_v53, %v4047_v63  ;;  %v1951_v58 = vmul.f32 %v2571_v34, %v1950_v18  ;;  %v4196_v63 = vld [vmem:[#allocation47_spill] sm:$0xff] }
 0x538   :  { %v4082_v10 = vadd.f32 %v1965_v23, %v1964_v42  ;;  %v1952_v3 = vadd.f32 %v2571_v34, %v1951_v58 }
 0x53a   :  { %2574 = vtanh.f32 %v4082_v10  ;;  %v1956_v62 = vsel %vm1955_vm2, %v2571_v34, %v1952_v3 }
 0x53b   :  { %v1961_v7 = vsel %vm1958_vm3, %v1960_v57, %v1956_v62 }
 0x540   :  { %v2575_v41 = vpop.eup %2574 }
 0x541   :  { %v1968_v44 = vmul.f32 %v2575_v41, %v1961_v7 }
 0x543   :  { %2061 = vmatmul.f32.vlgmr.msrb.gmra.mxu0 %v1968_v44  ;;  %2081 = vmatmul.f32.vlgmr.msrb.gmra.mxu1 %v1968_v44 }
 0x544   :  { %2101 = vmatmul.f32.vlgmr.msrb.gmra.mxu2 %v1968_v44  ;;  %2121 = vmatmul.f32.vlgmr.msra.gmra.mxu3 %v1968_v44 }
 0x54b   :  { %2241 = vmatmul.f32.vlgmr.msra.gmra.mxu0 %v4196_v63 }
 0x553   :  { %2244 = vmatmul.f32.gmra.mxu0 %v4197_v26 }
 0x55b   :  { %2247 = vmatmul.f32.gmra.mxu0 %v3683_v36  ;;  %v4096_v36 = vld [vmem:[%s4140_s7] ss:$0 sm:$0xff]  ;;  %s2862_s7 = smov [#allocation18]  }
 0x55c   :  { %s2368_s24 = sshll.u32 %s2862_s7, 4  ;;  %s2369_s24 = int_to_ptr.vmem [resolvable:$true] %s2368_s24 }
 0x563   :  { %2250 = vmatmul.f32.gmra.mxu0 %v3750_v14 }
 0x56b   :  { %2253 = vmatmul.f32.gmra.mxu0 %v3827_v24  ;;  %v4200_v24 = vld [vmem:[#allocation38_spill] sm:$0xff] }
 0x573   :  { %2256 = vmatmul.f32.gmra.mxu0 %v4066_v31 }
 0x57b   :  { %2259 = vmatmul.f32.gmra.mxu0 %v1968_v44 }
 0x5c0   :  { %v2062_v59 = vpop.f32.mrf.mxu0  ;;  %v2082_v48 = vpop.f32.mrf.mxu1 }
 0x5c1   :  { %v2125_v39 = vadd.f32 %v2062_v59, %v4198_v60  ;;  %v2126_v11 = vadd.f32 %v2082_v48, %v4199_v12 }
 0x5c3   :  { %v2431_v28 = vmul.f32 -1.442695, %v2125_v39  ;;  %v2432_v43 = vmul.f32 -1.442695, %v2126_v11 }
 0x5c5   :  { %2576 = vpow2.f32 %v2431_v28 }
 0x5c6   :  { %2578 = vpow2.f32 %v2432_v43 }
 0x5c7   :  { %v2122_v14 = vpop.f32.mrf.mxu3  ;;  %v2102_v16 = vpop.f32.mrf.mxu2 }
 0x5c8   :  { %v2128_v17 = vadd.f32 %v2122_v14, %v4200_v24  ;;  %v2242_v31 = vpop.f32.mrf.mxu0  ;;  %v2127_v8 = vadd.f32 %v2102_v16, %v4201_v15 }
 0x5c9   :  { %v4100_v56 = vadd.f32 %v4096_v36, %v2242_v31 }
 0x5ca   :  { %v2433_v13 = vmul.f32 -1.442695, %v2128_v17 }
 0x5cb   :  { %v2577_v45 = vpop.eup %2576  ;;  %2266 = vmax.xlane.f32.xlu0 %v4100_v56 }
 0x5cc   :  { %v2579_v54 = vpop.eup %2578  ;;  %v2132_v5 = vadd.f32 1.0, %v2577_v45  ;;  %2580 = vpow2.f32 %v2433_v13 }
 0x5cd   :  { %v2151_v61 = vadd.f32 1.0, %v2579_v54 }
 0x5ce   :  { %2582 = vrcp.f32 %v2132_v5  ;;  %v2142_v35 = vand.u32 2147483647, %v2132_v5  ;;  %v2144_v46 = vand.u32 2147483648, %v2132_v5  ;;  %vm2138_vm6 = vweird.f32 %v2132_v5 }
 0x5cf   :  { %2584 = vrcp.f32 %v2151_v61  ;;  %v2163_v25 = vand.u32 2147483648, %v2151_v61  ;;  %v2161_v2 = vand.u32 2147483647, %v2151_v61  ;;  %vm2157_vm7 = vweird.f32 %v2151_v61 }
 0x5d0   :  { %v2245_v9 = vpop.f32.mrf.mxu0  ;;  %v2145_v38 = vor.u32 1.1754944e-38, %v2144_v46  ;;  %vm2143_vm10 = vcmp.eq.f32.partialorder %v2142_v35, 8.507059e+37 }
 0x5d1   :  { %v4104_v32 = vadd.f32 %v4096_v36, %v2245_v9  ;;  %v2164_v27 = vor.u32 1.1754944e-38, %v2163_v25  ;;  %vm2162_vm11 = vcmp.eq.f32.partialorder %v2161_v2, 8.507059e+37 }
 0x5d2   :  { %v2581_v40 = vpop.eup %2580 }
 0x5d3   :  { %v2171_v51 = vadd.f32 1.0, %v2581_v40  ;;  %2268 = vmax.xlane.f32.xlu0 %v4104_v32 }
 0x5d4   :  { %v2583_v33 = vpop.eup %2582 }
 0x5d5   :  { %v2585_v47 = vpop.eup %2584  ;;  %v2134_v0 = vmul.f32 %v2583_v33, %v2132_v5  ;;  %2586 = vrcp.f32 %v2171_v51  ;;  %vm2139_vm4 = vweird.f32 %v2583_v33  ;;  %v2183_v7 = vand.u32 2147483648, %v2171_v51 }
 0x5d6   :  { %v2153_v1 = vmul.f32 %v2585_v47, %v2151_v61  ;;  %2588 = vtanh.f32 %v2127_v8  ;;  %vm2158_vm5 = vweird.f32 %v2585_v47  ;;  %vm2140_vm8 = vmor %vm2138_vm6, %vm2139_vm4  ;;  %vm2177_vm13 = vweird.f32 %v2171_v51 }
 0x5d7   :  { %v2135_v22 = vsub.f32 1.0, %v2134_v0  ;;  %vm2159_vm9 = vmor %vm2157_vm7, %vm2158_vm5  ;;  %v2181_v44 = vand.u32 2147483647, %v2171_v51  ;;  %v2184_v59 = vor.u32 1.1754944e-38, %v2183_v7 }
 0x5d8   :  { %v2154_v52 = vsub.f32 1.0, %v2153_v1  ;;  %v2248_v6 = vpop.f32.mrf.mxu0 }
 0x5d9   :  { %v2136_v21 = vmul.f32 %v2583_v33, %v2135_v22  ;;  %v4109_v29 = vadd.f32 %v4096_v36, %v2248_v6  ;;  %vm2182_vm15 = vcmp.eq.f32.partialorder %v2181_v44, 8.507059e+37 }
 0x5da   :  { %v2155_v34 = vmul.f32 %v2585_v47, %v2154_v52 }
 0x5db   :  { %v2587_v49 = vpop.eup %2586  ;;  %v2137_v20 = vadd.f32 %v2583_v33, %v2136_v21  ;;  %2270 = vmax.xlane.f32.xlu1 %v4109_v29 }
 0x5dc   :  { %v2156_v55 = vadd.f32 %v2585_v47, %v2155_v34  ;;  %v2173_v19 = vmul.f32 %v2587_v49, %v2171_v51  ;;  %v2589_v30 = vpop.eup %2588  ;;  %vm2178_vm12 = vweird.f32 %v2587_v49 }
 0x5dd   :  { %v2141_v50 = vsel %vm2140_vm8, %v2583_v33, %v2137_v20  ;;  %vm2179_vm14 = vmor %vm2177_vm13, %vm2178_vm12 }
 0x5de   :  { %v2146_v18 = vsel %vm2143_vm10, %v2145_v38, %v2141_v50  ;;  %v2160_v53 = vsel %vm2159_vm9, %v2585_v47, %v2156_v55  ;;  %v2174_v23 = vsub.f32 1.0, %v2173_v19 }
 0x5df   :  { %v2165_v42 = vsel %vm2162_vm11, %v2164_v27, %v2160_v53  ;;  %v2189_v58 = vmul.f32 %v2589_v30, %v2146_v18 }
 0x5e0   :  { %v2188_v3 = vmul.f32 %v2165_v42, %v4082_v10  ;;  %v2251_v37 = vpop.f32.mrf.mxu0  ;;  %v2175_v4 = vmul.f32 %v2587_v49, %v2174_v23 }
 0x5e1   :  { %v2252_v62 = vadd.f32 %v4096_v36, %v2251_v37 }
 0x5e2   :  { %v2190_v57 = vadd.f32 %v2189_v58, %v2188_v3  ;;  %v2176_v41 = vadd.f32 %v2587_v49, %v2175_v4 }
 0x5e3   :  { %2272 = vmax.xlane.f32.xlu1 %v2252_v62 }
 0x5e4   :  { %2349 = vst [vmem:[#allocation20] sm:$0xff] %v2190_v57  ;;  %2590 = vtanh.f32 %v2190_v57  ;;  %v2180_v63 = vsel %vm2179_vm14, %v2587_v49, %v2176_v41 }
 0x5e5   :  { %v2185_v60 = vsel %vm2182_vm15, %v2184_v59, %v2180_v63 }
 0x5e8   :  { %v2254_v26 = vpop.f32.mrf.mxu0 }
 0x5e9   :  { %v2255_v48 = vadd.f32 %v4096_v36, %v2254_v26 }
 0x5ea   :  { %v2591_v10 = vpop.eup %2590 }
 0x5eb   :  { %2274 = vmax.xlane.f32.xlu2 %v2255_v48  ;;  %v2192_v39 = vmul.f32 %v2591_v10, %v2185_v60 }
 0x5ed   :  { %2262 = vmatmul.f32.gmra.mxu0 %v2192_v39  ;;  %2347 = vst [vmem:[#allocation18] sm:$0xff] %v2192_v39 }
 0x5ee   :  { %2373 = dma.vmem_to_hbm [thread:$0]  %s2369_s24, 128, %s2371_s1, [#allocation19]  }
 0x5ef   :  { %2384 = dma.vmem_to_hbm [thread:$0]  %s2380_s28, 128, %s2382_s3, [#allocation19]  }
 0x5f0   :  { %v2257_v12 = vpop.f32.mrf.mxu0 }
 0x5f1   :  { %v2258_v11 = vadd.f32 %v4096_v36, %v2257_v12 }
 0x5f3   :  { %2276 = vmax.xlane.f32.xlu2 %v2258_v11 }
 0x5f8   :  { %v2260_v28 = vpop.f32.mrf.mxu0 }
 0x5f9   :  { %v2261_v43 = vadd.f32 %v4096_v36, %v2260_v28 }
 0x5fb   :  { %2278 = vmax.xlane.f32.xlu0 %v2261_v43 }
 0x63e   :  { %v2267_v14 = vpop.xlane.xlu0 %2266 }
 0x63f   :  { %v2282_v24 = vsub.f32 %v4100_v56, %v2267_v14 }
 0x641   :  { %v2290_v17 = vmul.f32 1.442695, %v2282_v24 }
 0x643   :  { %2592 = vpow2.f32 %v2290_v17 }
 0x646   :  { %v2269_v31 = vpop.xlane.xlu0 %2268 }
 0x647   :  { %v2283_v13 = vsub.f32 %v4104_v32, %v2269_v31 }
 0x649   :  { %v2593_v45 = vpop.eup %2592  ;;  %v2292_v54 = vmul.f32 1.442695, %v2283_v13 }
 0x64a   :  { %2306 = vadd.xlane.f32.xlu2 %v2593_v45 }
 0x64b   :  { %2594 = vpow2.f32 %v2292_v54 }
 0x64e   :  { %v2271_v5 = vpop.xlane.xlu1 %2270 }
 0x64f   :  { %v2284_v8 = vsub.f32 %v4109_v29, %v2271_v5 }
 0x651   :  { %v2595_v61 = vpop.eup %2594  ;;  %v2294_v47 = vmul.f32 1.442695, %v2284_v8 }
 0x652   :  { %2308 = vadd.xlane.f32.xlu0 %v2595_v61 }
 0x656   :  { %v2273_v9 = vpop.xlane.xlu1 %2272 }
 0x657   :  { %v2285_v16 = vsub.f32 %v2252_v62, %v2273_v9 }
 0x659   :  { %v2296_v40 = vmul.f32 1.442695, %v2285_v16 }
 0x65b   :  { %2596 = vpow2.f32 %v2296_v40 }
 0x65e   :  { %v2275_v51 = vpop.xlane.xlu2 %2274 }
 0x65f   :  { %v2286_v33 = vsub.f32 %v2255_v48, %v2275_v51 }
 0x661   :  { %v2597_v15 = vpop.eup %2596  ;;  %v2298_v56 = vmul.f32 1.442695, %v2286_v33 }
 0x662   :  { %2312 = vadd.xlane.f32.xlu2 %v2597_v15 }
 0x663   :  { %2598 = vpow2.f32 %v2298_v56 }
 0x664   :  { %2600 = vpow2.f32 %v2294_v47 }
 0x666   :  { %v2277_v1 = vpop.xlane.xlu2 %2276 }
 0x667   :  { %v2287_v52 = vsub.f32 %v2258_v11, %v2277_v1 }
 0x669   :  { %v2599_v32 = vpop.eup %2598  ;;  %v2300_v25 = vmul.f32 1.442695, %v2287_v52 }
 0x66a   :  { %v2263_v0 = vpop.f32.mrf.mxu0  ;;  %2314 = vadd.xlane.f32.xlu0 %v2599_v32  ;;  %v2601_v21 = vpop.eup %2600 }
 0x66b   :  { %v2264_v22 = vadd.f32 %v4096_v36, %v2263_v0 }
 0x66d   :  { %2280 = vmax.xlane.f32.xlu1 %v2264_v22 }
 0x66e   :  { %v2279_v35 = vpop.xlane.xlu0 %2278 }
 0x66f   :  { %v2288_v46 = vsub.f32 %v2261_v43, %v2279_v35 }
 0x671   :  { %v2302_v6 = vmul.f32 1.442695, %v2288_v46 }
 0x673   :  { %2602 = vpow2.f32 %v2302_v6 }
 0x674   :  { %2604 = vpow2.f32 %v2300_v25 }
 0x675   :  { %2310 = vadd.xlane.f32.xlu1 %v2601_v21 }
 0x679   :  { %v2603_v34 = vpop.eup %2602 }
 0x67a   :  { %2318 = vadd.xlane.f32.xlu2 %v2603_v34  ;;  %v2605_v29 = vpop.eup %2604 }
 0x67d   :  { %2316 = vadd.xlane.f32.xlu1 %v2605_v29 }
 0x6bd   :  { %v2307_v2 = vpop.xlane.xlu2 %2306 }
 0x6be   :  { %2606 = vrcp.f32 %v2307_v2 }
 0x6c4   :  { %v2607_v49 = vpop.eup %2606 }
 0x6c5   :  { %v2330_v20 = vmul.f32 %v2607_v49, %v2593_v45  ;;  %v2309_v36 = vpop.xlane.xlu0 %2308 }
 0x6c6   :  { %2608 = vrcp.f32 %v2309_v36 }
 0x6c7   :  { %2338 = vst [vmem:[#allocation17] sm:$0xff] %v2330_v20 }
 0x6cc   :  { %v2609_v38 = vpop.eup %2608 }
 0x6cd   :  { %v2331_v55 = vmul.f32 %v2609_v38, %v2595_v61 }
 0x6cf   :  { %2339 = vst [vmem:[#allocation17 + $0x8] sm:$0xff] %v2331_v55 }
 0x6d5   :  { %v2313_v19 = vpop.xlane.xlu2 %2312 }
 0x6d6   :  { %2610 = vrcp.f32 %v2313_v19 }
 0x6dc   :  { %v2611_v27 = vpop.eup %2610 }
 0x6dd   :  { %v2333_v50 = vmul.f32 %v2611_v27, %v2597_v15  ;;  %v2315_v30 = vpop.xlane.xlu0 %2314 }
 0x6de   :  { %2612 = vrcp.f32 %v2315_v30 }
 0x6df   :  { %2341 = vst [vmem:[#allocation17 + $0x18] sm:$0xff] %v2333_v50 }
 0x6e0   :  { %v2281_v18 = vpop.xlane.xlu1 %2280 }
 0x6e1   :  { %v2289_v53 = vsub.f32 %v2264_v22, %v2281_v18 }
 0x6e3   :  { %v2304_v23 = vmul.f32 1.442695, %v2289_v53 }
 0x6e4   :  { %v2613_v42 = vpop.eup %2612 }
 0x6e5   :  { %v2334_v58 = vmul.f32 %v2613_v42, %v2599_v32  ;;  %2614 = vpow2.f32 %v2304_v23 }
 0x6e7   :  { %2342 = vst [vmem:[#allocation17 + $0x20] sm:$0xff] %v2334_v58 }
 0x6e8   :  { %v2311_v3 = vpop.xlane.xlu1 %2310 }
 0x6e9   :  { %2616 = vrcp.f32 %v2311_v3 }
 0x6eb   :  { %v2615_v37 = vpop.eup %2614 }
 0x6ec   :  { %2320 = vadd.xlane.f32.xlu0 %v2615_v37 }
 0x6ed   :  { %v2319_v4 = vpop.xlane.xlu2 %2318 }
 0x6ee   :  { %2618 = vrcp.f32 %v2319_v4 }
 0x6ef   :  { %v2617_v62 = vpop.eup %2616 }
 0x6f0   :  { %v2332_v57 = vmul.f32 %v2617_v62, %v2601_v21  ;;  %v2317_v41 = vpop.xlane.xlu1 %2316 }
 0x6f1   :  { %2620 = vrcp.f32 %v2317_v41 }
 0x6f2   :  { %2340 = vst [vmem:[#allocation17 + $0x10] sm:$0xff] %v2332_v57 }
 0x6f4   :  { %v2619_v7 = vpop.eup %2618 }
 0x6f5   :  { %v2336_v44 = vmul.f32 %v2619_v7, %v2603_v34 }
 0x6f7   :  { %v2621_v63 = vpop.eup %2620  ;;  %2344 = vst [vmem:[#allocation17 + $0x30] sm:$0xff] %v2336_v44 }
 0x6f8   :  { %v2335_v26 = vmul.f32 %v2621_v63, %v2605_v29 }
 0x6fa   :  { %2343 = vst [vmem:[#allocation17 + $0x28] sm:$0xff] %v2335_v26 }
 0x75f   :  { %v2321_v59 = vpop.xlane.xlu0 %2320 }
 0x760   :  { %2622 = vrcp.f32 %v2321_v59 }
 0x766   :  { %v2623_v48 = vpop.eup %2622 }
 0x767   :  { %v2337_v10 = vmul.f32 %v2623_v48, %v2615_v37 }
 0x769   :  { %2345 = vst [vmem:[#allocation17 + $0x38] sm:$0xff] %v2337_v10 }
 0x76a   :  { %2362 = dma.vmem_to_hbm [thread:$0]  %s2355_s13, 1024, %s2357_s15, [#allocation8], %s2857_s11, %s2857_s11, %s2858_s12  }
 0x76b   :  { %2848 = dma.done.wait [#allocation8], 1024  }
 0x76c   :  { %2849 = vsyncadd [#allocation8], 4294966272 }
 0x76d   :  { %2850 = dma.done.wait [#allocation19], 256  }
 0x76e   :  { %2851 = vsyncadd [#allocation19], 4294967040 }
 0x76f   :  { %2397 = vsyncpa [#allocation7], 1 }
 0x770   :  { %2398 = vsyncpa [#allocation10], 1 }
 0x771   :  { %2399 = vsyncpa [#allocation13], 1 }
 0x772   :  { %2400 = vsyncpa [#allocation16], 1 }
 0x773   :  { %2401 = vsyncpa [#allocation8], 1 }
 0x774   :  { %2402 = vsyncpa [#allocation19], 1 }

</bundles_post_ra>
